<compile_context>
chip_gen: v7x
topology: tpu7x:2x2x1
jax: 0.10.0
libtpu: 0.0.40
codegen_flags: <defaults>
</compile_context>

<pallas_src>
import jax
import jax.numpy as jnp
import numpy as np
from jax.experimental import pallas as pl
from jax.experimental.pallas import tpu as pltpu


def _silu(x):
    return x * jax.nn.sigmoid(x)


# ------------------------------------------------------------------------------
# Fused kernel: conv1(stride 2) + IN + SiLU  ->  conv2(stride 1) + IN + SiLU.
# One batch element per grid step.
#   xp_ref  : (1, 4, PH, PW, Cp)  bf16  polyphase components of padded input
#   w1_ref  : (9*Cp, Cp)          bf16  conv1 weight, tap-major rows
#   w2_ref  : (9*Cp, Cp)          bf16  conv2 weight, tap-major rows
#   aff_ref : (4, Cp)             f32   [gamma1; beta1; gamma2; beta2]
#   o_ref   : (1, OH*OW, Cp)      bf16  output block
#   cols_ref: (OH*OW, 9*Cp)       bf16  VMEM im2col slab (reused by both convs)
#   y1p_ref : (OH+2, OW+2, Cp)    bf16  VMEM zero-haloed intermediate
# ------------------------------------------------------------------------------
def down_block_kernel(xp_ref, w1_ref, w2_ref, aff_ref, o_ref, cols_ref, y1p_ref):
    OH = y1p_ref.shape[0] - 2
    OW = y1p_ref.shape[1] - 2
    Cp = o_ref.shape[-1]
    P = OH * OW

    def inorm_silu(acc, gamma, beta):
        # InstanceNorm over the spatial axis (per batch, per channel) + SiLU.
        # Single-pass sum / sum-of-squares stats, all in f32.
        inv_p = 1.0 / P
        mean = jnp.sum(acc, axis=0, keepdims=True) * inv_p
        var = jnp.sum(acc * acc, axis=0, keepdims=True) * inv_p - mean * mean
        yn = (acc - mean) * jax.lax.rsqrt(var + 1e-5)
        yn = yn * gamma + beta
        return yn * jax.nn.sigmoid(yn)

    # ---- conv1: 3x3 stride-2.  Assemble one im2col slab from the polyphase
    #      components (unit-stride static windows), then a single MXU matmul
    #      with K = 9*Cp and f32 accumulation.
    for kh in range(3):
        for kw in range(3):
            t = 3 * kh + kw
            phase = 2 * (kh % 2) + (kw % 2)
            cols_ref[:, t * Cp:(t + 1) * Cp] = xp_ref[
                0, phase,
                kh // 2:kh // 2 + OH,
                kw // 2:kw // 2 + OW, :].reshape(P, Cp)
    acc = jnp.dot(cols_ref[...], w1_ref[...], preferred_element_type=jnp.float32)
    y1 = inorm_silu(acc, aff_ref[0:1, :], aff_ref[1:2, :])

    # ---- keep y1 VMEM-resident with a zero halo for the stride-1 conv2.
    #      Zero ONLY the 1-wide halo ring; the interior is overwritten below.
    zrow = jnp.zeros((1, OW + 2, Cp), y1p_ref.dtype)
    zcol = jnp.zeros((OH + 2, 1, Cp), y1p_ref.dtype)
    y1p_ref[0:1, :, :] = zrow
    y1p_ref[OH + 1:OH + 2, :, :] = zrow
    y1p_ref[:, 0:1, :] = zcol
    y1p_ref[:, OW + 1:OW + 2, :] = zcol
    y1p_ref[1:OH + 1, 1:OW + 1, :] = y1.reshape(OH, OW, Cp).astype(y1p_ref.dtype)

    # ---- conv2: 3x3 stride-1.  Reuse the same im2col slab; one MXU matmul.
    for kh in range(3):
        for kw in range(3):
            t = 3 * kh + kw
            cols_ref[:, t * Cp:(t + 1) * Cp] = y1p_ref[
                kh:kh + OH, kw:kw + OW, :].reshape(P, Cp)
    acc2 = jnp.dot(cols_ref[...], w2_ref[...], preferred_element_type=jnp.float32)

    o_ref[0] = inorm_silu(acc2, aff_ref[2:3, :], aff_ref[3:4, :]).astype(o_ref.dtype)


# ------------------------------------------------------------------------------
# Wrapper: NCHW in / NCHW out.
# ------------------------------------------------------------------------------
def down_block_forward(x_nchw, t_emb, c_emb, params):
    B, C_in, H, W = x_nchw.shape
    C_out = params["w1"].shape[0]
    assert H % 2 == 0 and W % 2 == 0
    OH, OW = H // 2, W // 2
    P = OH * OW
    Cp = 128 * (-(-max(C_in, C_out) // 128))          # lane-dense channel pad

    # --- tiny embedders in plain JAX (negligible FLOPs; torch Linear is (out,in))
    add = (_silu(t_emb) @ params["wt"].T + params["bt"]
           + _silu(c_emb) @ params["wc"].T + params["bc"])           # (B, C_in)

    # --- layout prep (single fused XLA pass over x): NCHW->NHWC, fuse the
    #     embedding add, cast to bf16 BEFORE the relayout (halves HBM bytes of
    #     this pass), pad channels/space, polyphase split for the stride-2 conv.
    x = (jnp.transpose(x_nchw, (0, 2, 3, 1))
         + add[:, None, None, :]).astype(jnp.bfloat16)
    x = jnp.pad(x, ((0, 0), (1, 1), (1, 1), (0, Cp - C_in)))          # (B,H+2,W+2,Cp)
    PH, PW = (H + 2) // 2, (W + 2) // 2
    xpoly = x.reshape(B, PH, 2, PW, 2, Cp).transpose(0, 2, 4, 1, 3, 5)
    xpoly = xpoly.reshape(B, 4, PH, PW, Cp)                           # bf16

    # --- weights: torch (Cout, Cin, kh, kw) -> (9*Cp, Cp) tap-major, bf16 -----
    def prep_w(w, cin):
        w = jnp.transpose(w, (2, 3, 1, 0))                            # kh,kw,ci,co
        w = jnp.pad(w, ((0, 0), (0, 0), (0, Cp - cin), (0, Cp - C_out)))
        return w.reshape(9 * Cp, Cp).astype(jnp.bfloat16)

    w1 = prep_w(params["w1"], C_in)
    w2 = prep_w(params["w2"], C_out)
    affine = jnp.stack([
        jnp.pad(params["g1"], (0, Cp - C_out), constant_values=1.0),
        jnp.pad(params["b1"], (0, Cp - C_out)),
        jnp.pad(params["g2"], (0, Cp - C_out), constant_values=1.0),
        jnp.pad(params["b2"], (0, Cp - C_out)),
    ]).astype(jnp.float32)                                            # (4, Cp)

    out = pl.pallas_call(
        down_block_kernel,
        out_shape=jax.ShapeDtypeStruct((B, P, Cp), jnp.bfloat16),     # bf16 writeback
        grid_spec=pltpu.PrefetchScalarGridSpec(
            num_scalar_prefetch=0,
            # One batch element per grid step; whole-image VMEM residency.
            # (Real UNet resolutions on v7x: add an OH-row tile axis + two-pass IN.)
            grid=(B,),
            in_specs=[
                pl.BlockSpec((1, 4, PH, PW, Cp), lambda b: (b, 0, 0, 0, 0)),
                pl.BlockSpec((9 * Cp, Cp), lambda b: (0, 0)),  # resident weights
                pl.BlockSpec((9 * Cp, Cp), lambda b: (0, 0)),
                pl.BlockSpec((4, Cp), lambda b: (0, 0)),
            ],
            out_specs=pl.BlockSpec((1, P, Cp), lambda b: (b, 0, 0)),
            scratch_shapes=[
                pltpu.VMEM((P, 9 * Cp), jnp.bfloat16),                # im2col slab
                pltpu.VMEM((OH + 2, OW + 2, Cp), jnp.bfloat16),       # y1 + halo
            ],
        ),
        compiler_params=pltpu.CompilerParams(
            # Batch axis is independent -> shard across TensorCores (v7x megacore).
            dimension_semantics=("parallel",),
            # Explicit scoped-VMEM budget (> v5e's 16 MiB default, < v7x's 64 MiB).
            vmem_limit_bytes=48 * 1024 * 1024,
        ),
    )(xpoly, w1, w2, affine)

    y = out.reshape(B, OH, OW, Cp)[..., :C_out].astype(jnp.float32)
    return jnp.transpose(y, (0, 3, 1, 2))                             # NHWC -> NCHW


# ------------------------------------------------------------------------------
# Pure-JAX reference (f32, HIGHEST precision) for correctness checking.
# ------------------------------------------------------------------------------
def _instance_norm(x_nhwc, gamma, beta, eps=1e-5):
    mean = jnp.mean(x_nhwc, axis=(1, 2), keepdims=True)
    var = jnp.mean(jnp.square(x_nhwc - mean), axis=(1, 2), keepdims=True)
    return (x_nhwc - mean) * jax.lax.rsqrt(var + eps) * gamma + beta


def reference_forward(x_nchw, t_emb, c_emb, params, *, stride=2):
    x = jnp.transpose(x_nchw, (0, 2, 3, 1))
    te = _silu(t_emb) @ params["wt"].T + params["bt"]
    ce = _silu(c_emb) @ params["wc"].T + params["bc"]
    x = x + te[:, None, None, :] + ce[:, None, None, :]
    dn = ("NHWC", "HWIO", "NHWC")
    hp = jax.lax.Precision.HIGHEST
    w1 = jnp.transpose(params["w1"], (2, 3, 1, 0))
    y = jax.lax.conv_general_dilated(x, w1, (stride, stride), ((1, 1), (1, 1)),
                                     dimension_numbers=dn, precision=hp)
    y = _silu(_instance_norm(y, params["g1"], params["b1"]))
    w2 = jnp.transpose(params["w2"], (2, 3, 1, 0))
    y = jax.lax.conv_general_dilated(y, w2, (1, 1), ((1, 1), (1, 1)),
                                     dimension_numbers=dn, precision=hp)
    y = _silu(_instance_norm(y, params["g2"], params["b2"]))
    return jnp.transpose(y, (0, 3, 1, 2))


if __name__ == "__main__":
    B, C_in, C_out, H, W = 2, 4, 8, 16, 16
    T_DIM, COND_DIM = 32, 32

    key = jax.random.PRNGKey(0)
    ks = jax.random.split(key, 10)
    params = {
        # nn.Linear(time_emb_dim, in_ch): weight (in_ch, time_emb_dim), bias (in_ch,)
        "wt": jax.random.normal(ks[0], (C_in, T_DIM), jnp.float32) * 0.1,
        "bt": jax.random.normal(ks[1], (C_in,), jnp.float32) * 0.1,
        "wc": jax.random.normal(ks[2], (C_in, COND_DIM), jnp.float32) * 0.1,
        "bc": jax.random.normal(ks[3], (C_in,), jnp.float32) * 0.1,
        # conv weights, torch layout (C_out, C_in, kH, kW); bias=False (MONAI UnetBasicBlock)
        "w1": jax.random.normal(ks[4], (C_out, C_in, 3, 3), jnp.float32) * 0.1,
        "g1": jnp.ones((C_out,), jnp.float32),
        "b1": jnp.zeros((C_out,), jnp.float32),
        "w2": jax.random.normal(ks[5], (C_out, C_out, 3, 3), jnp.float32) * 0.1,
        "g2": jnp.ones((C_out,), jnp.float32),
        "b2": jnp.zeros((C_out,), jnp.float32),
    }

    x = jax.random.normal(ks[6], (B, C_in, H, W), jnp.float32)
    t_emb = jax.random.normal(ks[7], (B, T_DIM), jnp.float32)
    c_emb = jax.random.normal(ks[8], (B, COND_DIM), jnp.float32)

    fwd = jax.jit(down_block_forward)
    out = jax.block_until_ready(fwd(x, t_emb, c_emb, params))

    ref = jax.block_until_ready(reference_forward(x, t_emb, c_emb, params))
    assert out.shape == (B, C_out, H // 2, W // 2), out.shape
    # bf16 MXU inputs / bf16 intermediate / bf16 output writeback vs. an f32
    # HIGHEST-precision reference: tolerance documented accordingly.
    assert np.allclose(np.asarray(out), np.asarray(ref), atol=4e-2, rtol=4e-2), (
        "max abs diff %g" % float(np.max(np.abs(np.asarray(out) - np.asarray(ref)))))

    print("KERNEL_OK")
</pallas_src>

<mosaic_0001>
module attributes {stable_mosaic.version = 11 : i64} {
  func.func @down_block_kernel(%arg0: i32, %arg1: memref<1x4x9x9x128xbf16, #tpu.memory_space<vmem>>, %arg2: memref<1152x128xbf16, #tpu.memory_space<vmem>>, %arg3: memref<1152x128xbf16, #tpu.memory_space<vmem>>, %arg4: memref<4x128xf32, #tpu.memory_space<vmem>>, %arg5: memref<1x64x128xbf16, #tpu.memory_space<vmem>>, %arg6: memref<64x1152xbf16, #tpu.memory_space<vmem>>, %arg7: memref<10x10x128xbf16, #tpu.memory_space<vmem>>) attributes {dimension_semantics = [#tpu.dimension_semantics<parallel>], iteration_bounds = array<i64: 2>, scalar_prefetch = 0 : i64, scratch_operands = 2 : i64, tpu.core_type = #tpu.core_type<tc>, window_params = [{transform_indices = @transform_0, window_bounds = array<i64: 1, 4, 9, 9, 128>}, {pipeline_mode = #tpu.pipeline_mode<synchronous>, transform_indices = @transform_1, window_bounds = array<i64: 1152, 128>}, {pipeline_mode = #tpu.pipeline_mode<synchronous>, transform_indices = @transform_2, window_bounds = array<i64: 1152, 128>}, {pipeline_mode = #tpu.pipeline_mode<synchronous>, transform_indices = @transform_3, window_bounds = array<i64: 4, 128>}, {transform_indices = @transform_4, window_bounds = array<i64: 1, 64, 128>}]} {
    %c0 = arith.constant 0 : index
    %c0_0 = arith.constant 0 : index
    %c0_1 = arith.constant 0 : index
    %c0_2 = arith.constant 0 : index
    %c0_3 = arith.constant 0 : index
    %0 = vector.load %arg1[%c0, %c0_0, %c0_1, %c0_2, %c0_3] : memref<1x4x9x9x128xbf16, #tpu.memory_space<vmem>>, vector<1x1x8x8x128xbf16>
    %1 = vector.shape_cast %0 : vector<1x1x8x8x128xbf16> to vector<8x8x128xbf16>
    %2 = vector.shape_cast %1 : vector<8x8x128xbf16> to vector<64x128xbf16>
    %c0_4 = arith.constant 0 : index
    %c0_5 = arith.constant 0 : index
    %3 = vector.load %arg6[%c0_4, %c0_5] : memref<64x1152xbf16, #tpu.memory_space<vmem>>, vector<64x128xbf16>
    tpu.vector_store %arg6[%c0_4, %c0_5], %2 {strides = array<i32>} : memref<64x1152xbf16, #tpu.memory_space<vmem>>, vector<64x128xbf16>,
    %c0_6 = arith.constant 0 : index
    %c1 = arith.constant 1 : index
    %c0_7 = arith.constant 0 : index
    %c0_8 = arith.constant 0 : index
    %c0_9 = arith.constant 0 : index
    %4 = vector.load %arg1[%c0_6, %c1, %c0_7, %c0_8, %c0_9] : memref<1x4x9x9x128xbf16, #tpu.memory_space<vmem>>, vector<1x1x8x8x128xbf16>
    %5 = vector.shape_cast %4 : vector<1x1x8x8x128xbf16> to vector<8x8x128xbf16>
    %6 = vector.shape_cast %5 : vector<8x8x128xbf16> to vector<64x128xbf16>
    %c0_10 = arith.constant 0 : index
    %c128 = arith.constant 128 : index
    %7 = vector.load %arg6[%c0_10, %c128] : memref<64x1152xbf16, #tpu.memory_space<vmem>>, vector<64x128xbf16>
    tpu.vector_store %arg6[%c0_10, %c128], %6 {strides = array<i32>} : memref<64x1152xbf16, #tpu.memory_space<vmem>>, vector<64x128xbf16>,
    %c0_11 = arith.constant 0 : index
    %c0_12 = arith.constant 0 : index
    %c0_13 = arith.constant 0 : index
    %c1_14 = arith.constant 1 : index
    %c0_15 = arith.constant 0 : index
    %8 = vector.load %arg1[%c0_11, %c0_12, %c0_13, %c1_14, %c0_15] : memref<1x4x9x9x128xbf16, #tpu.memory_space<vmem>>, vector<1x1x8x8x128xbf16>
    %9 = vector.shape_cast %8 : vector<1x1x8x8x128xbf16> to vector<8x8x128xbf16>
    %10 = vector.shape_cast %9 : vector<8x8x128xbf16> to vector<64x128xbf16>
    %c0_16 = arith.constant 0 : index
    %c256 = arith.constant 256 : index
    %11 = vector.load %arg6[%c0_16, %c256] : memref<64x1152xbf16, #tpu.memory_space<vmem>>, vector<64x128xbf16>
    tpu.vector_store %arg6[%c0_16, %c256], %10 {strides = array<i32>} : memref<64x1152xbf16, #tpu.memory_space<vmem>>, vector<64x128xbf16>,
    %c0_17 = arith.constant 0 : index
    %c2 = arith.constant 2 : index
    %c0_18 = arith.constant 0 : index
    %c0_19 = arith.constant 0 : index
    %c0_20 = arith.constant 0 : index
    %12 = vector.load %arg1[%c0_17, %c2, %c0_18, %c0_19, %c0_20] : memref<1x4x9x9x128xbf16, #tpu.memory_space<vmem>>, vector<1x1x8x8x128xbf16>
    %13 = vector.shape_cast %12 : vector<1x1x8x8x128xbf16> to vector<8x8x128xbf16>
    %14 = vector.shape_cast %13 : vector<8x8x128xbf16> to vector<64x128xbf16>
    %c0_21 = arith.constant 0 : index
    %c384 = arith.constant 384 : index
    %15 = vector.load %arg6[%c0_21, %c384] : memref<64x1152xbf16, #tpu.memory_space<vmem>>, vector<64x128xbf16>
    tpu.vector_store %arg6[%c0_21, %c384], %14 {strides = array<i32>} : memref<64x1152xbf16, #tpu.memory_space<vmem>>, vector<64x128xbf16>,
    %c0_22 = arith.constant 0 : index
    %c3 = arith.constant 3 : index
    %c0_23 = arith.constant 0 : index
    %c0_24 = arith.constant 0 : index
    %c0_25 = arith.constant 0 : index
    %16 = vector.load %arg1[%c0_22, %c3, %c0_23, %c0_24, %c0_25] : memref<1x4x9x9x128xbf16, #tpu.memory_space<vmem>>, vector<1x1x8x8x128xbf16>
    %17 = vector.shape_cast %16 : vector<1x1x8x8x128xbf16> to vector<8x8x128xbf16>
    %18 = vector.shape_cast %17 : vector<8x8x128xbf16> to vector<64x128xbf16>
    %c0_26 = arith.constant 0 : index
    %c512 = arith.constant 512 : index
    %19 = vector.load %arg6[%c0_26, %c512] : memref<64x1152xbf16, #tpu.memory_space<vmem>>, vector<64x128xbf16>
    tpu.vector_store %arg6[%c0_26, %c512], %18 {strides = array<i32>} : memref<64x1152xbf16, #tpu.memory_space<vmem>>, vector<64x128xbf16>,
    %c0_27 = arith.constant 0 : index
    %c2_28 = arith.constant 2 : index
    %c0_29 = arith.constant 0 : index
    %c1_30 = arith.constant 1 : index
    %c0_31 = arith.constant 0 : index
    %20 = vector.load %arg1[%c0_27, %c2_28, %c0_29, %c1_30, %c0_31] : memref<1x4x9x9x128xbf16, #tpu.memory_space<vmem>>, vector<1x1x8x8x128xbf16>
    %21 = vector.shape_cast %20 : vector<1x1x8x8x128xbf16> to vector<8x8x128xbf16>
    %22 = vector.shape_cast %21 : vector<8x8x128xbf16> to vector<64x128xbf16>
    %c0_32 = arith.constant 0 : index
    %c640 = arith.constant 640 : index
    %23 = vector.load %arg6[%c0_32, %c640] : memref<64x1152xbf16, #tpu.memory_space<vmem>>, vector<64x128xbf16>
    tpu.vector_store %arg6[%c0_32, %c640], %22 {strides = array<i32>} : memref<64x1152xbf16, #tpu.memory_space<vmem>>, vector<64x128xbf16>,
    %c0_33 = arith.constant 0 : index
    %c0_34 = arith.constant 0 : index
    %c1_35 = arith.constant 1 : index
    %c0_36 = arith.constant 0 : index
    %c0_37 = arith.constant 0 : index
    %24 = vector.load %arg1[%c0_33, %c0_34, %c1_35, %c0_36, %c0_37] : memref<1x4x9x9x128xbf16, #tpu.memory_space<vmem>>, vector<1x1x8x8x128xbf16>
    %25 = vector.shape_cast %24 : vector<1x1x8x8x128xbf16> to vector<8x8x128xbf16>
    %26 = vector.shape_cast %25 : vector<8x8x128xbf16> to vector<64x128xbf16>
    %c0_38 = arith.constant 0 : index
    %c768 = arith.constant 768 : index
    %27 = vector.load %arg6[%c0_38, %c768] : memref<64x1152xbf16, #tpu.memory_space<vmem>>, vector<64x128xbf16>
    tpu.vector_store %arg6[%c0_38, %c768], %26 {strides = array<i32>} : memref<64x1152xbf16, #tpu.memory_space<vmem>>, vector<64x128xbf16>,
    %c0_39 = arith.constant 0 : index
    %c1_40 = arith.constant 1 : index
    %c1_41 = arith.constant 1 : index
    %c0_42 = arith.constant 0 : index
    %c0_43 = arith.constant 0 : index
    %28 = vector.load %arg1[%c0_39, %c1_40, %c1_41, %c0_42, %c0_43] : memref<1x4x9x9x128xbf16, #tpu.memory_space<vmem>>, vector<1x1x8x8x128xbf16>
    %29 = vector.shape_cast %28 : vector<1x1x8x8x128xbf16> to vector<8x8x128xbf16>
    %30 = vector.shape_cast %29 : vector<8x8x128xbf16> to vector<64x128xbf16>
    %c0_44 = arith.constant 0 : index
    %c896 = arith.constant 896 : index
    %31 = vector.load %arg6[%c0_44, %c896] : memref<64x1152xbf16, #tpu.memory_space<vmem>>, vector<64x128xbf16>
    tpu.vector_store %arg6[%c0_44, %c896], %30 {strides = array<i32>} : memref<64x1152xbf16, #tpu.memory_space<vmem>>, vector<64x128xbf16>,
    %c0_45 = arith.constant 0 : index
    %c0_46 = arith.constant 0 : index
    %c1_47 = arith.constant 1 : index
    %c1_48 = arith.constant 1 : index
    %c0_49 = arith.constant 0 : index
    %32 = vector.load %arg1[%c0_45, %c0_46, %c1_47, %c1_48, %c0_49] : memref<1x4x9x9x128xbf16, #tpu.memory_space<vmem>>, vector<1x1x8x8x128xbf16>
    %33 = vector.shape_cast %32 : vector<1x1x8x8x128xbf16> to vector<8x8x128xbf16>
    %34 = vector.shape_cast %33 : vector<8x8x128xbf16> to vector<64x128xbf16>
    %c0_50 = arith.constant 0 : index
    %c1024 = arith.constant 1024 : index
    %35 = vector.load %arg6[%c0_50, %c1024] : memref<64x1152xbf16, #tpu.memory_space<vmem>>, vector<64x128xbf16>
    tpu.vector_store %arg6[%c0_50, %c1024], %34 {strides = array<i32>} : memref<64x1152xbf16, #tpu.memory_space<vmem>>, vector<64x128xbf16>,
    %c0_51 = arith.constant 0 : index
    %c0_52 = arith.constant 0 : index
    %36 = vector.load %arg6[%c0_51, %c0_52] : memref<64x1152xbf16, #tpu.memory_space<vmem>>, vector<64x1152xbf16>
    %c0_53 = arith.constant 0 : index
    %c0_54 = arith.constant 0 : index
    %37 = vector.load %arg2[%c0_53, %c0_54] : memref<1152x128xbf16, #tpu.memory_space<vmem>>, vector<1152x128xbf16>
    %cst = arith.constant dense<0.000000e+00> : vector<64x128xf32>
    %38 = tpu.matmul %36, %37, %cst {dimension_numbers = #tpu.dot_dimension_numbers<[1], [0], [0], [1], [0, 0, 1, 1], [], []>} : vector<64x1152xbf16>, vector<1152x128xbf16>, vector<64x128xf32> -> vector<64x128xf32>
    %c0_55 = arith.constant 0 : index
    %c0_56 = arith.constant 0 : index
    %39 = vector.load %arg4[%c0_55, %c0_56] : memref<4x128xf32, #tpu.memory_space<vmem>>, vector<1x128xf32>
    %c1_57 = arith.constant 1 : index
    %c0_58 = arith.constant 0 : index
    %40 = vector.load %arg4[%c1_57, %c0_58] : memref<4x128xf32, #tpu.memory_space<vmem>>, vector<1x128xf32>
    %cst_59 = arith.constant dense<0.000000e+00> : vector<128xf32>
    %41 = vector.multi_reduction <add>, %38, %cst_59 [0] : vector<64x128xf32> to vector<128xf32>
    %42 = vector.shape_cast %41 : vector<128xf32> to vector<1x128xf32>
    %cst_60 = arith.constant 1.562500e-02 : f32
    %43 = vector.broadcast %cst_60 : f32 to vector<1x128xf32>
    %44 = arith.mulf %42, %43 : vector<1x128xf32>
    %45 = arith.mulf %38, %38 : vector<64x128xf32>
    %cst_61 = arith.constant dense<0.000000e+00> : vector<128xf32>
    %46 = vector.multi_reduction <add>, %45, %cst_61 [0] : vector<64x128xf32> to vector<128xf32>
    %47 = vector.shape_cast %46 : vector<128xf32> to vector<1x128xf32>
    %cst_62 = arith.constant 1.562500e-02 : f32
    %48 = vector.broadcast %cst_62 : f32 to vector<1x128xf32>
    %49 = arith.mulf %47, %48 : vector<1x128xf32>
    %50 = arith.mulf %44, %44 : vector<1x128xf32>
    %51 = arith.subf %49, %50 : vector<1x128xf32>
    %52 = vector.broadcast %44 : vector<1x128xf32> to vector<64x128xf32>
    %53 = arith.subf %38, %52 : vector<64x128xf32>
    %cst_63 = arith.constant 9.99999974E-6 : f32
    %54 = vector.broadcast %cst_63 : f32 to vector<1x128xf32>
    %55 = arith.addf %51, %54 : vector<1x128xf32>
    %56 = math.rsqrt %55 : vector<1x128xf32>
    %57 = vector.broadcast %56 : vector<1x128xf32> to vector<64x128xf32>
    %58 = arith.mulf %53, %57 : vector<64x128xf32>
    %59 = vector.broadcast %39 : vector<1x128xf32> to vector<64x128xf32>
    %60 = arith.mulf %58, %59 : vector<64x128xf32>
    %61 = vector.broadcast %40 : vector<1x128xf32> to vector<64x128xf32>
    %62 = arith.addf %60, %61 : vector<64x128xf32>
    %63 = arith.negf %62 : vector<64x128xf32>
    %64 = math.exp %63 : vector<64x128xf32>
    %cst_64 = arith.constant 1.000000e+00 : f32
    %65 = vector.broadcast %cst_64 : f32 to vector<64x128xf32>
    %66 = arith.addf %65, %64 : vector<64x128xf32>
    %67 = arith.divf %65, %66 : vector<64x128xf32>
    %68 = arith.mulf %62, %67 : vector<64x128xf32>
    %cst_65 = arith.constant 0.000000e+00 : bf16
    %69 = vector.broadcast %cst_65 : bf16 to vector<1x10x128xbf16>
    %cst_66 = arith.constant 0.000000e+00 : bf16
    %70 = vector.broadcast %cst_66 : bf16 to vector<10x1x128xbf16>
    %c0_67 = arith.constant 0 : index
    %c0_68 = arith.constant 0 : index
    %c0_69 = arith.constant 0 : index
    %71 = vector.load %arg7[%c0_67, %c0_68, %c0_69] : memref<10x10x128xbf16, #tpu.memory_space<vmem>>, vector<1x10x128xbf16>
    tpu.vector_store %arg7[%c0_67, %c0_68, %c0_69], %69 {strides = array<i32>} : memref<10x10x128xbf16, #tpu.memory_space<vmem>>, vector<1x10x128xbf16>,
    %c9 = arith.constant 9 : index
    %c0_70 = arith.constant 0 : index
    %c0_71 = arith.constant 0 : index
    %72 = vector.load %arg7[%c9, %c0_70, %c0_71] : memref<10x10x128xbf16, #tpu.memory_space<vmem>>, vector<1x10x128xbf16>
    tpu.vector_store %arg7[%c9, %c0_70, %c0_71], %69 {strides = array<i32>} : memref<10x10x128xbf16, #tpu.memory_space<vmem>>, vector<1x10x128xbf16>,
    %c0_72 = arith.constant 0 : index
    %c0_73 = arith.constant 0 : index
    %c0_74 = arith.constant 0 : index
    %73 = vector.load %arg7[%c0_72, %c0_73, %c0_74] : memref<10x10x128xbf16, #tpu.memory_space<vmem>>, vector<10x1x128xbf16>
    tpu.vector_store %arg7[%c0_72, %c0_73, %c0_74], %70 {strides = array<i32>} : memref<10x10x128xbf16, #tpu.memory_space<vmem>>, vector<10x1x128xbf16>,
    %c0_75 = arith.constant 0 : index
    %c9_76 = arith.constant 9 : index
    %c0_77 = arith.constant 0 : index
    %74 = vector.load %arg7[%c0_75, %c9_76, %c0_77] : memref<10x10x128xbf16, #tpu.memory_space<vmem>>, vector<10x1x128xbf16>
    tpu.vector_store %arg7[%c0_75, %c9_76, %c0_77], %70 {strides = array<i32>} : memref<10x10x128xbf16, #tpu.memory_space<vmem>>, vector<10x1x128xbf16>,
    %75 = vector.shape_cast %68 : vector<64x128xf32> to vector<8x8x128xf32>
    %76 = arith.truncf %75 : vector<8x8x128xf32> to vector<8x8x128xbf16>
    %c1_78 = arith.constant 1 : index
    %c1_79 = arith.constant 1 : index
    %c0_80 = arith.constant 0 : index
    %77 = vector.load %arg7[%c1_78, %c1_79, %c0_80] : memref<10x10x128xbf16, #tpu.memory_space<vmem>>, vector<8x8x128xbf16>
    tpu.vector_store %arg7[%c1_78, %c1_79, %c0_80], %76 {strides = array<i32>} : memref<10x10x128xbf16, #tpu.memory_space<vmem>>, vector<8x8x128xbf16>,
    %c0_81 = arith.constant 0 : index
    %c0_82 = arith.constant 0 : index
    %c0_83 = arith.constant 0 : index
    %78 = vector.load %arg7[%c0_81, %c0_82, %c0_83] : memref<10x10x128xbf16, #tpu.memory_space<vmem>>, vector<8x8x128xbf16>
    %79 = vector.shape_cast %78 : vector<8x8x128xbf16> to vector<64x128xbf16>
    %c0_84 = arith.constant 0 : index
    %c0_85 = arith.constant 0 : index
    %80 = vector.load %arg6[%c0_84, %c0_85] : memref<64x1152xbf16, #tpu.memory_space<vmem>>, vector<64x128xbf16>
    tpu.vector_store %arg6[%c0_84, %c0_85], %79 {strides = array<i32>} : memref<64x1152xbf16, #tpu.memory_space<vmem>>, vector<64x128xbf16>,
    %c0_86 = arith.constant 0 : index
    %c1_87 = arith.constant 1 : index
    %c0_88 = arith.constant 0 : index
    %81 = vector.load %arg7[%c0_86, %c1_87, %c0_88] : memref<10x10x128xbf16, #tpu.memory_space<vmem>>, vector<8x8x128xbf16>
    %82 = vector.shape_cast %81 : vector<8x8x128xbf16> to vector<64x128xbf16>
    %c0_89 = arith.constant 0 : index
    %c128_90 = arith.constant 128 : index
    %83 = vector.load %arg6[%c0_89, %c128_90] : memref<64x1152xbf16, #tpu.memory_space<vmem>>, vector<64x128xbf16>
    tpu.vector_store %arg6[%c0_89, %c128_90], %82 {strides = array<i32>} : memref<64x1152xbf16, #tpu.memory_space<vmem>>, vector<64x128xbf16>,
    %c0_91 = arith.constant 0 : index
    %c2_92 = arith.constant 2 : index
    %c0_93 = arith.constant 0 : index
    %84 = vector.load %arg7[%c0_91, %c2_92, %c0_93] : memref<10x10x128xbf16, #tpu.memory_space<vmem>>, vector<8x8x128xbf16>
    %85 = vector.shape_cast %84 : vector<8x8x128xbf16> to vector<64x128xbf16>
    %c0_94 = arith.constant 0 : index
    %c256_95 = arith.constant 256 : index
    %86 = vector.load %arg6[%c0_94, %c256_95] : memref<64x1152xbf16, #tpu.memory_space<vmem>>, vector<64x128xbf16>
    tpu.vector_store %arg6[%c0_94, %c256_95], %85 {strides = array<i32>} : memref<64x1152xbf16, #tpu.memory_space<vmem>>, vector<64x128xbf16>,
    %c1_96 = arith.constant 1 : index
    %c0_97 = arith.constant 0 : index
    %c0_98 = arith.constant 0 : index
    %87 = vector.load %arg7[%c1_96, %c0_97, %c0_98] : memref<10x10x128xbf16, #tpu.memory_space<vmem>>, vector<8x8x128xbf16>
    %88 = vector.shape_cast %87 : vector<8x8x128xbf16> to vector<64x128xbf16>
    %c0_99 = arith.constant 0 : index
    %c384_100 = arith.constant 384 : index
    %89 = vector.load %arg6[%c0_99, %c384_100] : memref<64x1152xbf16, #tpu.memory_space<vmem>>, vector<64x128xbf16>
    tpu.vector_store %arg6[%c0_99, %c384_100], %88 {strides = array<i32>} : memref<64x1152xbf16, #tpu.memory_space<vmem>>, vector<64x128xbf16>,
    %c1_101 = arith.constant 1 : index
    %c1_102 = arith.constant 1 : index
    %c0_103 = arith.constant 0 : index
    %90 = vector.load %arg7[%c1_101, %c1_102, %c0_103] : memref<10x10x128xbf16, #tpu.memory_space<vmem>>, vector<8x8x128xbf16>
    %91 = vector.shape_cast %90 : vector<8x8x128xbf16> to vector<64x128xbf16>
    %c0_104 = arith.constant 0 : index
    %c512_105 = arith.constant 512 : index
    %92 = vector.load %arg6[%c0_104, %c512_105] : memref<64x1152xbf16, #tpu.memory_space<vmem>>, vector<64x128xbf16>
    tpu.vector_store %arg6[%c0_104, %c512_105], %91 {strides = array<i32>} : memref<64x1152xbf16, #tpu.memory_space<vmem>>, vector<64x128xbf16>,
    %c1_106 = arith.constant 1 : index
    %c2_107 = arith.constant 2 : index
    %c0_108 = arith.constant 0 : index
    %93 = vector.load %arg7[%c1_106, %c2_107, %c0_108] : memref<10x10x128xbf16, #tpu.memory_space<vmem>>, vector<8x8x128xbf16>
    %94 = vector.shape_cast %93 : vector<8x8x128xbf16> to vector<64x128xbf16>
    %c0_109 = arith.constant 0 : index
    %c640_110 = arith.constant 640 : index
    %95 = vector.load %arg6[%c0_109, %c640_110] : memref<64x1152xbf16, #tpu.memory_space<vmem>>, vector<64x128xbf16>
    tpu.vector_store %arg6[%c0_109, %c640_110], %94 {strides = array<i32>} : memref<64x1152xbf16, #tpu.memory_space<vmem>>, vector<64x128xbf16>,
    %c2_111 = arith.constant 2 : index
    %c0_112 = arith.constant 0 : index
    %c0_113 = arith.constant 0 : index
    %96 = vector.load %arg7[%c2_111, %c0_112, %c0_113] : memref<10x10x128xbf16, #tpu.memory_space<vmem>>, vector<8x8x128xbf16>
    %97 = vector.shape_cast %96 : vector<8x8x128xbf16> to vector<64x128xbf16>
    %c0_114 = arith.constant 0 : index
    %c768_115 = arith.constant 768 : index
    %98 = vector.load %arg6[%c0_114, %c768_115] : memref<64x1152xbf16, #tpu.memory_space<vmem>>, vector<64x128xbf16>
    tpu.vector_store %arg6[%c0_114, %c768_115], %97 {strides = array<i32>} : memref<64x1152xbf16, #tpu.memory_space<vmem>>, vector<64x128xbf16>,
    %c2_116 = arith.constant 2 : index
    %c1_117 = arith.constant 1 : index
    %c0_118 = arith.constant 0 : index
    %99 = vector.load %arg7[%c2_116, %c1_117, %c0_118] : memref<10x10x128xbf16, #tpu.memory_space<vmem>>, vector<8x8x128xbf16>
    %100 = vector.shape_cast %99 : vector<8x8x128xbf16> to vector<64x128xbf16>
    %c0_119 = arith.constant 0 : index
    %c896_120 = arith.constant 896 : index
    %101 = vector.load %arg6[%c0_119, %c896_120] : memref<64x1152xbf16, #tpu.memory_space<vmem>>, vector<64x128xbf16>
    tpu.vector_store %arg6[%c0_119, %c896_120], %100 {strides = array<i32>} : memref<64x1152xbf16, #tpu.memory_space<vmem>>, vector<64x128xbf16>,
    %c2_121 = arith.constant 2 : index
    %c2_122 = arith.constant 2 : index
    %c0_123 = arith.constant 0 : index
    %102 = vector.load %arg7[%c2_121, %c2_122, %c0_123] : memref<10x10x128xbf16, #tpu.memory_space<vmem>>, vector<8x8x128xbf16>
    %103 = vector.shape_cast %102 : vector<8x8x128xbf16> to vector<64x128xbf16>
    %c0_124 = arith.constant 0 : index
    %c1024_125 = arith.constant 1024 : index
    %104 = vector.load %arg6[%c0_124, %c1024_125] : memref<64x1152xbf16, #tpu.memory_space<vmem>>, vector<64x128xbf16>
    tpu.vector_store %arg6[%c0_124, %c1024_125], %103 {strides = array<i32>} : memref<64x1152xbf16, #tpu.memory_space<vmem>>, vector<64x128xbf16>,
    %c0_126 = arith.constant 0 : index
    %c0_127 = arith.constant 0 : index
    %105 = vector.load %arg6[%c0_126, %c0_127] : memref<64x1152xbf16, #tpu.memory_space<vmem>>, vector<64x1152xbf16>
    %c0_128 = arith.constant 0 : index
    %c0_129 = arith.constant 0 : index
    %106 = vector.load %arg3[%c0_128, %c0_129] : memref<1152x128xbf16, #tpu.memory_space<vmem>>, vector<1152x128xbf16>
    %cst_130 = arith.constant dense<0.000000e+00> : vector<64x128xf32>
    %107 = tpu.matmul %105, %106, %cst_130 {dimension_numbers = #tpu.dot_dimension_numbers<[1], [0], [0], [1], [0, 0, 1, 1], [], []>} : vector<64x1152xbf16>, vector<1152x128xbf16>, vector<64x128xf32> -> vector<64x128xf32>
    %c2_131 = arith.constant 2 : index
    %c0_132 = arith.constant 0 : index
    %108 = vector.load %arg4[%c2_131, %c0_132] : memref<4x128xf32, #tpu.memory_space<vmem>>, vector<1x128xf32>
    %c3_133 = arith.constant 3 : index
    %c0_134 = arith.constant 0 : index
    %109 = vector.load %arg4[%c3_133, %c0_134] : memref<4x128xf32, #tpu.memory_space<vmem>>, vector<1x128xf32>
    %cst_135 = arith.constant dense<0.000000e+00> : vector<128xf32>
    %110 = vector.multi_reduction <add>, %107, %cst_135 [0] : vector<64x128xf32> to vector<128xf32>
    %111 = vector.shape_cast %110 : vector<128xf32> to vector<1x128xf32>
    %cst_136 = arith.constant 1.562500e-02 : f32
    %112 = vector.broadcast %cst_136 : f32 to vector<1x128xf32>
    %113 = arith.mulf %111, %112 : vector<1x128xf32>
    %114 = arith.mulf %107, %107 : vector<64x128xf32>
    %cst_137 = arith.constant dense<0.000000e+00> : vector<128xf32>
    %115 = vector.multi_reduction <add>, %114, %cst_137 [0] : vector<64x128xf32> to vector<128xf32>
    %116 = vector.shape_cast %115 : vector<128xf32> to vector<1x128xf32>
    %cst_138 = arith.constant 1.562500e-02 : f32
    %117 = vector.broadcast %cst_138 : f32 to vector<1x128xf32>
    %118 = arith.mulf %116, %117 : vector<1x128xf32>
    %119 = arith.mulf %113, %113 : vector<1x128xf32>
    %120 = arith.subf %118, %119 : vector<1x128xf32>
    %121 = vector.broadcast %113 : vector<1x128xf32> to vector<64x128xf32>
    %122 = arith.subf %107, %121 : vector<64x128xf32>
    %cst_139 = arith.constant 9.99999974E-6 : f32
    %123 = vector.broadcast %cst_139 : f32 to vector<1x128xf32>
    %124 = arith.addf %120, %123 : vector<1x128xf32>
    %125 = math.rsqrt %124 : vector<1x128xf32>
    %126 = vector.broadcast %125 : vector<1x128xf32> to vector<64x128xf32>
    %127 = arith.mulf %122, %126 : vector<64x128xf32>
    %128 = vector.broadcast %108 : vector<1x128xf32> to vector<64x128xf32>
    %129 = arith.mulf %127, %128 : vector<64x128xf32>
    %130 = vector.broadcast %109 : vector<1x128xf32> to vector<64x128xf32>
    %131 = arith.addf %129, %130 : vector<64x128xf32>
    %132 = arith.negf %131 : vector<64x128xf32>
    %133 = math.exp %132 : vector<64x128xf32>
    %cst_140 = arith.constant 1.000000e+00 : f32
    %134 = vector.broadcast %cst_140 : f32 to vector<64x128xf32>
    %135 = arith.addf %134, %133 : vector<64x128xf32>
    %136 = arith.divf %134, %135 : vector<64x128xf32>
    %137 = arith.mulf %131, %136 : vector<64x128xf32>
    %138 = arith.truncf %137 : vector<64x128xf32> to vector<64x128xbf16>
    %c0_141 = arith.constant 0 : index
    %c0_142 = arith.constant 0 : index
    %c0_143 = arith.constant 0 : index
    %139 = vector.load %arg5[%c0_141, %c0_142, %c0_143] : memref<1x64x128xbf16, #tpu.memory_space<vmem>>, vector<1x64x128xbf16>
    %140 = vector.shape_cast %139 : vector<1x64x128xbf16> to vector<64x128xbf16>
    %141 = vector.shape_cast %138 : vector<64x128xbf16> to vector<1x64x128xbf16>
    tpu.vector_store %arg5[%c0_141, %c0_142, %c0_143], %141 {strides = array<i32>} : memref<1x64x128xbf16, #tpu.memory_space<vmem>>, vector<1x64x128xbf16>,
    return
  }
  func.func @transform_0(%arg0: i32) -> (i32, i32, i32, i32, i32) {
    %c0_i32 = arith.constant 0 : i32
    %c0_i32_0 = arith.constant 0 : i32
    %c0_i32_1 = arith.constant 0 : i32
    %c0_i32_2 = arith.constant 0 : i32
    %c0_i32_3 = arith.constant 0 : i32
    return %arg0, %c0_i32, %c0_i32_0, %c0_i32_1, %c0_i32_2 : i32, i32, i32, i32, i32
  }
  func.func @transform_1(%arg0: i32) -> (i32, i32) {
    %c0_i32 = arith.constant 0 : i32
    %c0_i32_0 = arith.constant 0 : i32
    %c0_i32_1 = arith.constant 0 : i32
    return %c0_i32, %c0_i32_0 : i32, i32
  }
  func.func @transform_2(%arg0: i32) -> (i32, i32) {
    %c0_i32 = arith.constant 0 : i32
    %c0_i32_0 = arith.constant 0 : i32
    %c0_i32_1 = arith.constant 0 : i32
    return %c0_i32, %c0_i32_0 : i32, i32
  }
  func.func @transform_3(%arg0: i32) -> (i32, i32) {
    %c0_i32 = arith.constant 0 : i32
    %c0_i32_0 = arith.constant 0 : i32
    %c0_i32_1 = arith.constant 0 : i32
    return %c0_i32, %c0_i32_0 : i32, i32
  }
  func.func @transform_4(%arg0: i32) -> (i32, i32, i32) {
    %c0_i32 = arith.constant 0 : i32
    %c0_i32_0 = arith.constant 0 : i32
    %c0_i32_1 = arith.constant 0 : i32
    return %arg0, %c0_i32, %c0_i32_0 : i32, i32, i32
  }
}

</mosaic_0001>

<bundles_post_ra>
// kernel: down_block_forward.1
= control target key start
LH: loop header
LB: loop body
LE: loop exit
PB: predicated region body
PF: predicated region fallthrough
CT: control target
= control target key end

     0   :  { %s5235_s15 = smov 0   ;;  %s6196_s0 = inlined_call_operand.vmem [shape: bf16[2,4,9,9,128], index: 0, kind: input, shape index: {}]   ;;  %s6197_s1 = inlined_call_operand.vmem [shape: bf16[1152,128], index: 1, kind: input, shape index: {}]   ;;  %s6198_s2 = inlined_call_operand.vmem [shape: bf16[1152,128], index: 2, kind: input, shape index: {}]   ;;  %s6199_s3 = inlined_call_operand.vmem [shape: f32[4,128], index: 3, kind: input, shape index: {}]   ;;  %s6200_s4 = inlined_call_operand.vmem [shape: bf16[2,64,128], index: 4, kind: output, shape index: {}]  }
   0x1 LB: > { %s4153_s16 = sadd.s32 4294967295, %s5207_s15   ;;  %p4157_p0 = scmp.ge.s32.totalorder %s5207_s15, 1  ;;  %s5207_s15 = sphi %s5235_s15, %s14_s15  }
   0x2   : > { %p162_p1 = scmp.lt.s32.totalorder %s5207_s15, 3 }
   0x4   : > { %p163_p2 = pnand %p4157_p0, %p162_p1 }
   0x5   : > { %v4953_v0 = vld [vmem:[%s6197_s1 + $0x40] sm:$0xff] (!%p163_p2)   ;;  %v4957_v4 = vld [vmem:[%s6197_s1 + $0x48] sm:$0xff] (!%p163_p2)   ;;  %v4961_v8 = vld [vmem:[%s6197_s1 + $0x50] sm:$0xff] (!%p163_p2)   ;;  %p188_p3 = scmp.lt.s32.totalorder (!%p163_p2), %s4153_s16, 1  ;;  %vm288_vm0 = vsmask.f32 (!%p163_p2), 3328 }
   0x6   : > { %166 = sbr.rel (%p163_p2) target bundleno = 813 (0x32d), region = 36  ;;  %v4954_v1 = vld [vmem:[%s6197_s1 + $0xc0] sm:$0xff] (!%p163_p2)   ;;  %4551 = vmatprep.subr.bf16.mxu0 (!%p163_p2), %v4953_v0  ;;  %v4958_v5 = vld [vmem:[%s6197_s1 + $0xc8] sm:$0xff] (!%p163_p2)   ;;  %v4962_v9 = vld [vmem:[%s6197_s1 + $0xd0] sm:$0xff] (!%p163_p2)   ;;  %vm289_vm1 = vsmask.f32 (!%p163_p2), 7440 }
   0x7   : > { %v4955_v2 = vld [vmem:[%s6197_s1] sm:$0xff] (!%p163_p2)   ;;  %4591 = vmatprep.subr.bf16.mxu1 (!%p163_p2), %v4954_v1  ;;  %v4959_v6 = vld [vmem:[%s6197_s1 + $0x8] sm:$0xff] (!%p163_p2)   ;;  %v4963_v10 = vld [vmem:[%s6197_s1 + $0x10] sm:$0xff] (!%p163_p2)   ;;  %vm1947_vm3 = vcmask (!%p163_p2), 1040384   ;;  %vm1948_vm4 = vsmask.f32 (!%p163_p2), 256 }
   0x8   : > { %v4956_v3 = vld [vmem:[%s6197_s1 + $0x80] sm:$0xff] (!%p163_p2)   ;;  %4552 = vmatpush3.bf16.msra.mxu0 (!%p163_p2), %v4955_v2  ;;  %v4960_v7 = vld [vmem:[%s6197_s1 + $0x88] sm:$0xff] (!%p163_p2)   ;;  %v4964_v11 = vld [vmem:[%s6197_s1 + $0x90] sm:$0xff] (!%p163_p2)   ;;  %vm1980_vm5 = vsmask.f32 (!%p163_p2), 7938  ;;  %vm2125_vm8 = vcmask (!%p163_p2), 1043456  }
   0x9   : > { %4592 = vmatpush3.bf16.msra.mxu1 (!%p163_p2), %v4956_v3  ;;  %4553 = vmatprep.subr.bf16.mxu0 (!%p163_p2), %v4957_v4  ;;  %v4965_v12 = vld [vmem:[%s6197_s1 + $0x58] sm:$0xff] (!%p163_p2)   ;;  %v4969_v16 = vld [vmem:[%s6197_s1 + $0x60] sm:$0xff] (!%p163_p2)   ;;  %v4973_v20 = vld [vmem:[%s6197_s1 + $0x68] sm:$0xff] (!%p163_p2)   ;;  %vm2391_vm9 = vcmask (!%p163_p2), 1042432   ;;  %vm2392_vm10 = vcmask (!%p163_p2), 1046532  }
   0xa   : > { %4593 = vmatprep.subr.bf16.mxu1 (!%p163_p2), %v4958_v5  ;;  %v4966_v13 = vld [vmem:[%s6197_s1 + $0xd8] sm:$0xff] (!%p163_p2)   ;;  %v4970_v17 = vld [vmem:[%s6197_s1 + $0xe0] sm:$0xff] (!%p163_p2)   ;;  %v4974_v21 = vld [vmem:[%s6197_s1 + $0xe8] sm:$0xff] (!%p163_p2)  }
   0xb   : > { %v4967_v14 = vld [vmem:[%s6197_s1 + $0x18] sm:$0xff] (!%p163_p2)   ;;  %v4971_v18 = vld [vmem:[%s6197_s1 + $0x20] sm:$0xff] (!%p163_p2)   ;;  %v4975_v22 = vld [vmem:[%s6197_s1 + $0x28] sm:$0xff] (!%p163_p2)  }
   0xc   : > { %4554 = vmatpush3.bf16.msra.mxu0 (!%p163_p2), %v4959_v6  ;;  %v4968_v15 = vld [vmem:[%s6197_s1 + $0x98] sm:$0xff] (!%p163_p2)   ;;  %v4972_v19 = vld [vmem:[%s6197_s1 + $0xa0] sm:$0xff] (!%p163_p2)   ;;  %v4976_v23 = vld [vmem:[%s6197_s1 + $0xa8] sm:$0xff] (!%p163_p2)  }
   0xd   : > { %4594 = vmatpush3.bf16.msra.mxu1 %v4960_v7  ;;  %4555 = vmatprep.subr.bf16.mxu0 %v4961_v8  ;;  %s6212_s16 = smov (!%p188_p3, %s4153_s16), 1  ;;  %v4977_v24 = vld [vmem:[%s6197_s1 + $0x70] sm:$0xff]   ;;  %v4981_v28 = vld [vmem:[%s6197_s1 + $0x78] sm:$0xff]   ;;  %v4988_v45 = vld [vmem:[%s6197_s1 + $0x140] sm:$0xff]  }
   0xe   : > { %4595 = vmatprep.subr.bf16.mxu1 %v4962_v9  ;;  %v4978_v25 = vld [vmem:[%s6197_s1 + $0xf0] sm:$0xff]   ;;  %s4943_s25 = smul.u32 288, %s6212_s16  ;;  %v4982_v29 = vld [vmem:[%s6197_s1 + $0xf8] sm:$0xff]   ;;  %v4989_v46 = vld [vmem:[%s6197_s1 + $0x100] sm:$0xff]   ;;  %s4511_s5 = sshll.u32 %s6212_s16, 5 }
   0xf   : > { %v4979_v26 = vld [vmem:[%s6197_s1 + $0x30] sm:$0xff]   ;;  %v4983_v30 = vld [vmem:[%s6197_s1 + $0x38] sm:$0xff]   ;;  %v4990_v53 = vld [vmem:[%s6197_s1 + $0x1c0] sm:$0xff]   ;;  %s197_s8 = scalar_lea.vmem %s6200_s4, %s4511_s5 }
  0x10   : > { %4556 = vmatpush3.bf16.msra.mxu0 %v4963_v10  ;;  %v4980_v27 = vld [vmem:[%s6197_s1 + $0xb0] sm:$0xff]   ;;  %v4984_v31 = vld [vmem:[%s6197_s1 + $0xb8] sm:$0xff]   ;;  %s5349_s10 = scalar_lea.vmem %s6196_s0, %s4943_s25  ;;  %vm5369_vm2 = vmor %vm288_vm0, %vm289_vm1 }
  0x11   : > { %4596 = vmatpush3.bf16.msra.mxu1 %v4964_v11  ;;  %4557 = vmatprep.subr.bf16.mxu0 %v4965_v12  ;;  %v4985_v32 = vld [vmem:[%s5349_s10 + $0x48] ss:$8 sps:$4 sm:$0xff]   ;;  %v272_v35 = vld [vmem:[%s5349_s10] sm:$0xf]  ;;  %v273_v36 = vld [vmem:[%s5349_s10 + $0x4] sm:$0x1] }
  0x12   : > { %4597 = vmatprep.subr.bf16.mxu1 %v4966_v13  ;;  %v4986_v33 = vld [vmem:[%s5349_s10 + $0x90] ss:$8 sps:$4 sm:$0xff]   ;;  %1511 = vmatprep.mubr.bf16.mxu0 %v4985_v32  ;;  %v4987_v34 = vld [vmem:[%s5349_s10] ss:$8 sps:$4 sm:$0xff]   ;;  %v275_v38 = vld [vmem:[%s5349_s10 + $0xc] sm:$0x1] }
  0x13   : > { %1576 = vmatprep.mubr.bf16.mxu1 %v4986_v33  ;;  %v274_v37 = vld [vmem:[%s5349_s10 + $0x8] sm:$0xf]  ;;  %v292_v39 = vshrl.u32 %v272_v35, 16  ;;  %v295_v40 = vshll.u32 %v272_v35, 16  ;;  %v301_v41 = vshll.u32 %v273_v36, 16  ;;  %v315_v44 = vshll.u32 %v275_v38, 16  ;;  %vm5634_vm6 = vmand %vm1947_vm3, %vm1948_vm4 }
  0x14   : > { %4558 = vmatpush3.bf16.msra.mxu0 %v4967_v14  ;;  %v306_v42 = vshrl.u32 %v274_v37, 16  ;;  %v309_v43 = vshll.u32 %v274_v37, 16  ;;  %v4992_v58 = vld [vmem:[%s6197_s1 + $0x148] sm:$0xff]   ;;  %v4991_v60 = vld [vmem:[%s6197_s1 + $0x180] sm:$0xff]   ;;  %v4998_v5 = vld [vmem:[%s5349_s10 + $0x10] ss:$8 sps:$4 sm:$0xff]  }
  0x15   : > { %4598 = vmatpush3.bf16.msra.mxu1 %v4968_v15  ;;  %4559 = vmatprep.subr.bf16.mxu0 %v4969_v16  ;;  %v294_v47 = vrot.slane %v292_v39, 4  ;;  %v297_v48 = vrot.slane %v295_v40, 5  ;;  %v303_v52 = vrot.slane %v301_v41, 5  ;;  %v317_v56 = vrot.slane %v315_v44, 5  ;;  %v4993_v61 = vld [vmem:[%s6197_s1 + $0x108] sm:$0xff]   ;;  %v4999_v16 = vld [vmem:[%s6197_s1 + $0x150] sm:$0xff]   ;;  %vm5642_vm7 = vmand %vm1947_vm3, %vm1980_vm5 }
  0x16   : > { %4599 = vmatprep.subr.bf16.mxu1 %v4970_v17  ;;  %v308_v49 = vrot.slane %v306_v42, 4  ;;  %v311_v50 = vrot.slane %v309_v43, 5  ;;  %v4994_v63 = vld [vmem:[%s6197_s1 + $0x1c8] sm:$0xff]   ;;  %v4995_v1 = vld [vmem:[%s5349_s10 + $0x58] ss:$8 sps:$4 sm:$0xff]   ;;  %v5000_v17 = vld [vmem:[%s6197_s1 + $0x110] sm:$0xff]  }
  0x17   : > { %v298_v51 = vor.u32 %v297_v48, %v294_v47  ;;  %v4996_v3 = vld [vmem:[%s5349_s10 + $0xa0] ss:$8 sps:$4 sm:$0xff]   ;;  %v276_v6 = vld [vmem:[%s5349_s10 + $0x10] sm:$0xf]  ;;  %v277_v7 = vld [vmem:[%s5349_s10 + $0x14] sm:$0x1] }
  0x18   : > { %4560 = vmatpush3.bf16.msra.mxu0 %v4971_v18  ;;  %v312_v55 = vor.u32 %v311_v50, %v308_v49  ;;  %v4997_v4 = vld [vmem:[%s6197_s1 + $0x188] sm:$0xff]   ;;  %v278_v8 = vld [vmem:[%s5349_s10 + $0x18] sm:$0xf]  ;;  %v279_v9 = vld [vmem:[%s5349_s10 + $0x1c] sm:$0x1]  ;;  %v320_v10 = vshrl.u32 %v276_v6, 16 }
  0x19   : > { %4600 = vmatpush3.bf16.msra.mxu1 %v4972_v19  ;;  %4561 = vmatprep.subr.bf16.mxu0 %v4973_v20  ;;  %v299_v57 = vrot.slane %v298_v51, 4  ;;  %v323_v11 = vshll.u32 %v276_v6, 16  ;;  %v329_v12 = vshll.u32 %v277_v7, 16  ;;  %v334_v13 = vshrl.u32 %v278_v8, 16  ;;  %v5005_v33 = vld [vmem:[%s6197_s1 + $0x1d8] sm:$0xff]   ;;  %v5010_v50 = vld [vmem:[%s6197_s1 + $0x160] sm:$0xff]   ;;  %vm5863_vm11 = vmand %vm2125_vm8, %vm1980_vm5 }
  0x1a   : > { %4601 = vmatprep.subr.bf16.mxu1 %v4974_v21  ;;  %v313_v59 = vrot.slane %v312_v55, 4  ;;  %v337_v14 = vshll.u32 %v278_v8, 16  ;;  %v343_v15 = vshll.u32 %v279_v9, 16  ;;  %v322_v18 = vrot.slane %v320_v10, 4  ;;  %v5006_v35 = vld [vmem:[%s5349_s10 + $0x68] ss:$8 sps:$4 sm:$0xff]   ;;  %vm5887_vm12 = vmor %vm2391_vm9, %vm2392_vm10 }
  0x1b   : > { %v304_v62 = vsel %vm5369_vm2, %v299_v57, %v303_v52  ;;  %v325_v19 = vrot.slane %v323_v11, 5  ;;  %v336_v20 = vrot.slane %v334_v13, 4  ;;  %v5007_v37 = vld [vmem:[%s5349_s10 + $0xb0] ss:$8 sps:$4 sm:$0xff]   ;;  %v5009_v39 = vld [vmem:[%s5349_s10 + $0x20] ss:$8 sps:$4 sm:$0xff]  }
  0x1c   : > { %4562 = vmatpush3.bf16.msra.mxu0 %v4975_v22  ;;  %v318_v0 = vsel %vm5369_vm2, %v313_v59, %v317_v56  ;;  %v339_v21 = vrot.slane %v337_v14, 5  ;;  %v5008_v38 = vld [vmem:[%s6197_s1 + $0x198] sm:$0xff]   ;;  %v280_v40 = vld [vmem:[%s5349_s10 + $0x20] sm:$0xf]  ;;  %v281_v41 = vld [vmem:[%s5349_s10 + $0x24] sm:$0x1] }
  0x1d   : > { %4602 = vmatpush3.bf16.msra.mxu1 %v4976_v23  ;;  %4563 = vmatprep.subr.bf16.mxu0 %v4977_v24  ;;  %v4177_v2 = vcombine.low %v304_v62, %v318_v0  ;;  %v326_v22 = vor.u32 %v325_v19, %v322_v18  ;;  %v331_v23 = vrot.slane %v329_v12, 5  ;;  %v5001_v24 = vld [vmem:[%s6197_s1 + $0x1d0] sm:$0xff]   ;;  %v282_v42 = vld [vmem:[%s5349_s10 + $0x28] sm:$0xf]  ;;  %v283_v43 = vld [vmem:[%s5349_s10 + $0x2c] sm:$0x1] }
  0x1e   : > { %4603 = vmatprep.subr.bf16.mxu1 %v4978_v25  ;;  %v340_v25 = vor.u32 %v339_v21, %v336_v20  ;;  %v348_v44 = vshrl.u32 %v280_v40, 16  ;;  %v362_v47 = vshrl.u32 %v282_v42, 16  ;;  %v365_v48 = vshll.u32 %v282_v42, 16  ;;  %v5011_v51 = vld [vmem:[%s6197_s1 + $0x120] sm:$0xff]   ;;  %v5014_v0 = vld [vmem:[%s6197_s1 + $0x168] sm:$0xff]   ;;  %v5021_v21 = vld [vmem:[%s6197_s1 + $0x170] sm:$0xff]  }
  0x1f   : > { %v371_v49 = vshll.u32 %v283_v43, 16  ;;  %v5012_v59 = vld [vmem:[%s6197_s1 + $0x1e0] sm:$0xff]   ;;  %v5019_v9 = vld [vmem:[%s6197_s1 + $0x1a8] sm:$0xff]   ;;  %v5020_v10 = vld [vmem:[%s5349_s10 + $0x30] ss:$8 sps:$4 sm:$0xff]  }
  0x20   : > { %4564 = vmatpush3.bf16.msra.mxu0 %v4979_v26  ;;  %v345_v26 = vrot.slane %v343_v15, 5  ;;  %v350_v52 = vrot.slane %v348_v44, 4  ;;  %v364_v55 = vrot.slane %v362_v47, 4  ;;  %v367_v56 = vrot.slane %v365_v48, 5  ;;  %v5013_v62 = vld [vmem:[%s6197_s1 + $0x1a0] sm:$0xff]   ;;  %v5028_v48 = vld [vmem:[%s6197_s1 + $0x1b8] sm:$0xff]  }
  0x21   : > { %4604 = vmatpush3.bf16.msra.mxu1 %v4980_v27  ;;  %4565 = vmatprep.subr.bf16.mxu0 %v4981_v28  ;;  %v5002_v27 = vld [vmem:[%s6197_s1 + $0x190] sm:$0xff]   ;;  %v327_v28 = vrot.slane %v326_v22, 4  ;;  %v5017_v6 = vld [vmem:[%s5349_s10 + $0x78] ss:$8 sps:$4 sm:$0xff]   ;;  %v287_v14 = vld [vmem:[%s5349_s10 + $0x3c] sm:$0x1] }
  0x22   : > { %4605 = vmatprep.subr.bf16.mxu1 %v4982_v29  ;;  %v5003_v29 = vld [vmem:[%s6197_s1 + $0x158] sm:$0xff]   ;;  %v5018_v8 = vld [vmem:[%s5349_s10 + $0xc0] ss:$8 sps:$4 sm:$0xff]   ;;  %v284_v11 = vld [vmem:[%s5349_s10 + $0x30] sm:$0xf]  ;;  %v399_v20 = vshll.u32 %v287_v14, 16 }
  0x23   : > { %v332_v32 = vsel %vm5369_vm2, %v327_v28, %v331_v23  ;;  %v285_v12 = vld [vmem:[%s5349_s10 + $0x34] sm:$0x1]  ;;  %v286_v13 = vld [vmem:[%s5349_s10 + $0x38] sm:$0xf]  ;;  %v376_v15 = vshrl.u32 %v284_v11, 16 }
  0x24   : > { %4566 = vmatpush3.bf16.msra.mxu0 %v4983_v30  ;;  %v341_v30 = vrot.slane %v340_v25, 4  ;;  %v390_v18 = vshrl.u32 %v286_v13, 16  ;;  %v393_v19 = vshll.u32 %v286_v13, 16  ;;  %v5022_v22 = vld [vmem:[%s6197_s1 + $0x130] sm:$0xff]   ;;  %v4207_v42 = vld [vmem:[%s5349_s10 + $0x98] sm:$0xf] }
  0x25   : > { %4606 = vmatpush3.bf16.msra.mxu1 %v4984_v31  ;;  %4631 = vmatprep.subr.bf16.mxu0 %v4988_v45  ;;  %v5004_v31 = vld [vmem:[%s6197_s1 + $0x118] sm:$0xff]   ;;  %v351_v45 = vshll.u32 %v280_v40, 16  ;;  %v378_v23 = vrot.slane %v376_v15, 4  ;;  %v5033_v15 = vld [vmem:[%s6197_s1 + $0x208] sm:$0xff]  }
  0x26   : > { %4671 = vmatprep.subr.bf16.mxu1 %v4990_v53  ;;  %v392_v25 = vrot.slane %v390_v18, 4  ;;  %v4208_v43 = vld [vmem:[%s5349_s10 + $0x9c] sm:$0x1] }
  0x27   : > { %1512 = vmatmul.mubr.bf16.vlgmr.msra.gmra.mrb[0].mxu0 %v4987_v34  ;;  %v346_v34 = vsel %vm5369_vm2, %v341_v30, %v345_v26  ;;  %v353_v53 = vrot.slane %v351_v45, 5  ;;  %v395_v26 = vrot.slane %v393_v19, 5 }
  0x28   : > { %4632 = vmatpush3.bf16.msra.mxu0 %v4989_v46  ;;  %1519 = vmatprep.mubr.bf16.mxu0 %v4995_v1  ;;  %v4178_v36 = vcombine.low %v332_v32, %v346_v34  ;;  %v357_v46 = vshll.u32 %v281_v41, 16  ;;  %v5024_v32 = vld [vmem:[%s6197_s1 + $0x1b0] sm:$0xff]   ;;  %v5025_v34 = vld [vmem:[%s6197_s1 + $0x178] sm:$0xff]  }
  0x29   : > { %4633 = vmatprep.subr.bf16.mxu0 %v4992_v58  ;;  %1577 = vmatmul.mubr.bf16.vlgmr.msra.gmra.mrb[0].mxu1 %v4177_v2  ;;  %v354_v57 = vor.u32 %v353_v53, %v350_v52  ;;  %v5015_v2 = vld [vmem:[%s6197_s1 + $0x128] sm:$0xff]   ;;  %v396_v30 = vor.u32 %v395_v26, %v392_v25  ;;  %v4206_v41 = vld [vmem:[%s5349_s10 + $0x94] sm:$0x1]  ;;  %v5030_v52 = vld [vmem:[%s6197_s1 + $0x200] sm:$0xff]  }
  0x2a   : > { %4672 = vmatpush3.bf16.msra.mxu1 %v4991_v60  ;;  %1584 = vmatprep.mubr.bf16.mxu1 %v4996_v3  ;;  %v359_v58 = vrot.slane %v357_v46, 5  ;;  %v368_v60 = vor.u32 %v367_v56, %v364_v55  ;;  %v523_v47 = vshll.u32 %v4206_v41, 16  ;;  %v5036_v25 = vld [vmem:[%s5349_s10 + $0x60] ss:$8 sps:$4 sm:$0xff]  }
  0x2b   : > { %4673 = vmatprep.subr.bf16.mxu1 %v4994_v63  ;;  %v355_v63 = vrot.slane %v354_v57, 4 }
  0x2c   : > { %4634 = vmatpush3.bf16.msra.mxu0 %v4993_v61  ;;  %v373_v61 = vrot.slane %v371_v49, 5  ;;  %v369_v1 = vrot.slane %v368_v60, 4  ;;  %v528_v49 = vshrl.u32 %v4207_v42, 16 }
  0x2d   : > { %4635 = vmatprep.subr.bf16.mxu0 %v4999_v16  ;;  %v360_v3 = vsel %vm5369_vm2, %v355_v63, %v359_v58  ;;  %v379_v16 = vshll.u32 %v284_v11, 16 }
  0x2e   : > { %4674 = vmatpush3.bf16.msra.mxu1 %v4997_v4  ;;  %v5016_v4 = vld [vmem:[%s6197_s1 + $0x1e8] sm:$0xff]   ;;  %v530_v56 = vrot.slane %v528_v49, 4 }
  0x2f   : > { %1520 = vmatmul.mubr.bf16.gmra.mrb[4].mxu0 %v4998_v5  ;;  %4675 = vmatprep.subr.bf16.mxu1 %v5001_v24  ;;  %v374_v5 = vsel %vm5369_vm2, %v369_v1, %v373_v61  ;;  %v381_v24 = vrot.slane %v379_v16, 5  ;;  %v5029_v1 = vld [vmem:[%s5349_s10 + $0xd8] ss:$8 sps:$4 sm:$0xff]  }
  0x30   : > { %4636 = vmatpush3.bf16.msra.mxu0 %v5000_v17  ;;  %1527 = vmatprep.mubr.bf16.mxu0 %v5006_v35  ;;  %v4179_v7 = vcombine.low %v360_v3, %v374_v5  ;;  %v385_v17 = vshll.u32 %v285_v12, 16  ;;  %v397_v35 = vrot.slane %v396_v30, 4  ;;  %v4210_v5 = vld [vmem:[%s5349_s10 + $0xa4] sm:$0x1]  ;;  %v5037_v30 = vld [vmem:[%s5349_s10 + $0x18] ss:$8 sps:$4 sm:$0xff]  }
  0x31   : > { %4637 = vmatprep.subr.bf16.mxu0 %v5003_v29  ;;  %1585 = vmatmul.mubr.bf16.gmra.mrb[4].mxu1 %v4178_v36  ;;  %v5023_v29 = vld [vmem:[%s6197_s1 + $0x1f0] sm:$0xff]   ;;  %v5026_v36 = vld [vmem:[%s6197_s1 + $0x138] sm:$0xff]   ;;  %v551_v12 = vshll.u32 %v4210_v5, 16 }
  0x32   : > { %4676 = vmatpush3.bf16.msra.mxu1 %v5002_v27  ;;  %1592 = vmatprep.mubr.bf16.mxu1 %v5007_v37  ;;  %v382_v27 = vor.u32 %v381_v24, %v378_v23  ;;  %v387_v28 = vrot.slane %v385_v17, 5 }
  0x33   : > { %4677 = vmatprep.subr.bf16.mxu1 %v5005_v33 }
  0x34   : > { %4638 = vmatpush3.bf16.msra.mxu0 %v5004_v31  ;;  %v401_v31 = vrot.slane %v399_v20, 5  ;;  %v383_v33 = vrot.slane %v382_v27, 4  ;;  %v5035_v27 = vld [vmem:[%s6197_s1 + $0x210] sm:$0xff]  }
  0x35   : > { %4639 = vmatprep.subr.bf16.mxu0 %v5010_v50  ;;  %v531_v50 = vshll.u32 %v4207_v42, 16 }
  0x36   : > { %4678 = vmatpush3.bf16.msra.mxu1 %v5008_v38  ;;  %v388_v37 = vsel %vm5369_vm2, %v383_v33, %v387_v28  ;;  %v5027_v38 = vld [vmem:[%s6197_s1 + $0x1f8] sm:$0xff]   ;;  %v402_v40 = vsel %vm5369_vm2, %v397_v35, %v401_v31  ;;  %v4214_v33 = vld [vmem:[%s5349_s10 + $0xb4] sm:$0x1] }
  0x37   : > { %1528 = vmatmul.mubr.bf16.gmra.mrb[8].mxu0 %v5009_v39  ;;  %4679 = vmatprep.subr.bf16.mxu1 %v5012_v59  ;;  %v4205_v39 = vld [vmem:[%s5349_s10 + $0x90] sm:$0xf]  ;;  %v4180_v44 = vcombine.low %v388_v37, %v402_v40  ;;  %v533_v57 = vrot.slane %v531_v50, 5  ;;  %v525_v59 = vrot.slane %v523_v47, 5  ;;  %v4215_v35 = vld [vmem:[%s5349_s10 + $0xb8] sm:$0xf] }
  0x38   : > { %4640 = vmatpush3.bf16.msra.mxu0 %v5011_v51  ;;  %1535 = vmatprep.mubr.bf16.mxu0 %v5017_v6  ;;  %v514_v45 = vshrl.u32 %v4205_v39, 16  ;;  %v517_v46 = vshll.u32 %v4205_v39, 16  ;;  %v537_v51 = vshll.u32 %v4208_v43, 16  ;;  %v579_v40 = vshll.u32 %v4214_v33, 16  ;;  %v5038_v43 = vld [vmem:[%s6197_s1 + $0x218] sm:$0xff]  }
  0x39   : > { %4641 = vmatprep.subr.bf16.mxu0 %v5014_v0  ;;  %1593 = vmatmul.mubr.bf16.gmra.mrb[8].mxu1 %v4179_v7  ;;  %v534_v61 = vor.u32 %v533_v57, %v530_v56  ;;  %v4211_v7 = vld [vmem:[%s5349_s10 + $0xa8] sm:$0xf]  ;;  %v584_v41 = vshrl.u32 %v4215_v35, 16  ;;  %v587_v42 = vshll.u32 %v4215_v35, 16  ;;  %v5040_v56 = vld [vmem:[%s6197_s1 + $0x220] sm:$0xff]   ;;  %v5048_v33 = vld [vmem:[%s6197_s1 + $0x238] sm:$0xff]  }
  0x3a   : > { %4680 = vmatpush3.bf16.msra.mxu1 %v5013_v62  ;;  %1600 = vmatprep.mubr.bf16.mxu1 %v5018_v8  ;;  %v516_v53 = vrot.slane %v514_v45, 4  ;;  %v519_v55 = vrot.slane %v517_v46, 5  ;;  %v539_v60 = vrot.slane %v537_v51, 5  ;;  %v5031_v62 = vld [vmem:[%s5349_s10 + $0x50] ss:$8 sps:$4 sm:$0xff]   ;;  %v556_v13 = vshrl.u32 %v4211_v7, 16 }
  0x3b   : > { %4681 = vmatprep.subr.bf16.mxu1 %v5016_v4  ;;  %v535_v0 = vrot.slane %v534_v61, 4  ;;  %v4209_v4 = vld [vmem:[%s5349_s10 + $0xa0] sm:$0xf]  ;;  %v4212_v8 = vld [vmem:[%s5349_s10 + $0xac] sm:$0x1]  ;;  %v559_v14 = vshll.u32 %v4211_v7, 16 }
  0x3c   : > { %4642 = vmatpush3.bf16.msra.mxu0 %v5015_v2  ;;  %v520_v58 = vor.u32 %v519_v55, %v516_v53  ;;  %v5032_v2 = vld [vmem:[%s5349_s10 + $0x8] ss:$8 sps:$4 sm:$0xff]   ;;  %v565_v18 = vshll.u32 %v4212_v8, 16  ;;  %v558_v19 = vrot.slane %v556_v13, 4  ;;  %v586_v47 = vrot.slane %v584_v41, 4 }
  0x3d   : > { %4643 = vmatprep.subr.bf16.mxu0 %v5021_v21  ;;  %v540_v6 = vsel %vm5369_vm2, %v535_v0, %v539_v60  ;;  %v561_v20 = vrot.slane %v559_v14, 5  ;;  %v581_v50 = vrot.slane %v579_v40, 5  ;;  %v5041_v53 = vld [vmem:[%s5349_s10 + $0x70] ss:$8 sps:$4 sm:$0xff]   ;;  %v4217_v61 = vld [vmem:[%s5349_s10 + $0xc0] sm:$0xf] }
  0x3e   : > { %4682 = vmatpush3.bf16.msra.mxu1 %v5019_v9  ;;  %v521_v63 = vrot.slane %v520_v58, 4  ;;  %v542_v9 = vshrl.u32 %v4209_v4, 16  ;;  %v567_v23 = vrot.slane %v565_v18, 5  ;;  %v5039_v58 = vld [vmem:[%s5349_s10 + $0xf8] ss:$8 sps:$4 sm:$0xff]   ;;  %v5043_v8 = vld [vmem:[%s6197_s1 + $0x228] sm:$0xff]  }
  0x3f   : > { %1536 = vmatmul.mubr.bf16.gmra.mrb[12].mxu0 %v5020_v10  ;;  %4683 = vmatprep.subr.bf16.mxu1 %v5023_v29  ;;  %v545_v10 = vshll.u32 %v4209_v4, 16  ;;  %v562_v24 = vor.u32 %v561_v20, %v558_v19  ;;  %v5034_v29 = vld [vmem:[%s5349_s10 + $0xe8] ss:$8 sps:$4 sm:$0xff]   ;;  %v4254_v41 = vld [vmem:[%s5349_s10 + $0x1c] sm:$0x1] }
  0x40   : > { %4644 = vmatpush3.bf16.msra.mxu0 %v5022_v22  ;;  %v526_v3 = vsel %vm5369_vm2, %v521_v63, %v525_v59  ;;  %v544_v16 = vrot.slane %v542_v9, 4  ;;  %v553_v22 = vrot.slane %v551_v12, 5  ;;  %v5042_v59 = vld [vmem:[%s5349_s10 + $0x28] ss:$8 sps:$4 sm:$0xff]  }
  0x41   : > { %4645 = vmatprep.subr.bf16.mxu0 %v5025_v34  ;;  %1601 = vmatmul.mubr.bf16.gmra.mrb[12].mxu1 %v4180_v44  ;;  %v4221_v11 = vcombine.low %v526_v3, %v540_v6  ;;  %v547_v17 = vrot.slane %v545_v10, 5  ;;  %v563_v28 = vrot.slane %v562_v24, 4  ;;  %v4219_v0 = vld [vmem:[%s5349_s10 + $0xc8] sm:$0xf]  ;;  %v601_v3 = vshll.u32 %v4217_v61, 16  ;;  %v5045_v20 = vld [vmem:[%s6197_s1 + $0x230] sm:$0xff]  }
  0x42   : > { %4684 = vmatpush3.bf16.msra.mxu1 %v5024_v32  ;;  %1706 = vmatprep.mubr.bf16.mxu1 %v5031_v62  ;;  %v4213_v32 = vld [vmem:[%s5349_s10 + $0xb0] sm:$0xf]  ;;  %v4218_v62 = vld [vmem:[%s5349_s10 + $0xc4] sm:$0x1]  ;;  %v612_v6 = vshrl.u32 %v4219_v0, 16  ;;  %v615_v7 = vshll.u32 %v4219_v0, 16 }
  0x43   : > { %4685 = vmatprep.subr.bf16.mxu1 %v5027_v38  ;;  %1641 = vmatprep.mubr.bf16.mxu0 %v4221_v11  ;;  %v548_v21 = vor.u32 %v547_v17, %v544_v16  ;;  %v568_v34 = vsel %vm5369_vm2, %v563_v28, %v567_v23  ;;  %v570_v37 = vshrl.u32 %v4213_v32, 16  ;;  %v573_v38 = vshll.u32 %v4213_v32, 16  ;;  %v5046_v18 = vld [vmem:[%s5349_s10 + $0x80] ss:$8 sps:$4 sm:$0xff]   ;;  %v4251_v28 = vld [vmem:[%s5349_s10 + $0x10] sm:$0xf] }
  0x44   : > { %4646 = vmatpush3.bf16.msra.mxu0 %v5026_v36  ;;  %v4216_v36 = vld [vmem:[%s5349_s10 + $0xbc] sm:$0x1]  ;;  %v607_v5 = vshll.u32 %v4218_v62, 16  ;;  %v603_v10 = vrot.slane %v601_v3, 5  ;;  %v614_v12 = vrot.slane %v612_v6, 4  ;;  %v617_v13 = vrot.slane %v615_v7, 5 }
  0x45   : > { %4895 = vmatprep.subr.bf16.mxu0 %v5030_v52  ;;  %v549_v26 = vrot.slane %v548_v21, 4  ;;  %v572_v44 = vrot.slane %v570_v37, 4  ;;  %v575_v45 = vrot.slane %v573_v38, 5  ;;  %v593_v46 = vshll.u32 %v4216_v36, 16  ;;  %v5047_v23 = vld [vmem:[%s5349_s10 + $0x38] ss:$8 sps:$4 sm:$0xff]  }
  0x46   : > { %4686 = vmatpush3.bf16.msra.mxu1 %v5028_v48  ;;  %v589_v48 = vrot.slane %v587_v42, 5  ;;  %v618_v17 = vor.u32 %v617_v13, %v614_v12  ;;  %v750_v35 = vshrl.u32 %v4251_v28, 16  ;;  %v753_v36 = vshll.u32 %v4251_v28, 16  ;;  %v4253_v37 = vld [vmem:[%s5349_s10 + $0x18] sm:$0xf] }
  0x47   : > { %1642 = vmatmul.mubr.bf16.vlgmr.msra.gmra.mrb[16].mxu0 %v5029_v1  ;;  %v554_v31 = vsel %vm5369_vm2, %v549_v26, %v553_v22  ;;  %v576_v49 = vor.u32 %v575_v45, %v572_v44  ;;  %v595_v51 = vrot.slane %v593_v46, 5  ;;  %v4220_v1 = vld [vmem:[%s5349_s10 + $0xcc] sm:$0x1]  ;;  %v5044_v22 = vld [vmem:[%s5349_s10 + $0x108] ss:$8 sps:$4 sm:$0xff]   ;;  %v764_v42 = vshrl.u32 %v4253_v37, 16 }
  0x48   : > { %4896 = vmatpush3.bf16.msra.mxu0 %v5030_v52  ;;  %v4222_v39 = vcombine.low %v554_v31, %v568_v34  ;;  %v590_v52 = vor.u32 %v589_v48, %v586_v47  ;;  %v621_v11 = vshll.u32 %v4220_v1, 16  ;;  %v619_v21 = vrot.slane %v618_v17, 4  ;;  %v4250_v26 = vld [vmem:[%s5349_s10 + $0xc] sm:$0x1]  ;;  %v4255_v46 = vld [vmem:[%s5349_s10 + $0x20] sm:$0xf] }
  0x49   : > { %1707 = vmatmul.mubr.bf16.vlgmr.msra.gmra.mrb[16].mxu1 %v5032_v2  ;;  %4897 = vmatprep.subr.bf16.mxu0 %v5033_v15  ;;  %v577_v55 = vrot.slane %v576_v49, 4  ;;  %v598_v2 = vshrl.u32 %v4217_v61, 16  ;;  %v745_v34 = vshll.u32 %v4250_v26, 16  ;;  %v752_v44 = vrot.slane %v750_v35, 4  ;;  %v4258_v62 = vld [vmem:[%s5349_s10 + $0x2c] sm:$0x1] }
  0x4a   : > { %1714 = vmatprep.mubr.bf16.mxu1 %v5036_v25  ;;  %1649 = vmatprep.mubr.bf16.mxu0 %v4222_v39  ;;  %v591_v57 = vrot.slane %v590_v52, 4  ;;  %v623_v16 = vrot.slane %v621_v11, 5  ;;  %v4249_v25 = vld [vmem:[%s5349_s10 + $0x8] sm:$0xf]  ;;  %v755_v45 = vrot.slane %v753_v36, 5  ;;  %v767_v47 = vshll.u32 %v4253_v37, 16 }
  0x4b   : > { %v582_v60 = vsel %vm5369_vm2, %v577_v55, %v581_v50  ;;  %v600_v9 = vrot.slane %v598_v2, 4  ;;  %v739_v31 = vshll.u32 %v4249_v25, 16  ;;  %v4256_v50 = vld [vmem:[%s5349_s10 + $0x24] sm:$0x1]  ;;  %v773_v52 = vshll.u32 %v4254_v41, 16 }
  0x4c   : > { %4898 = vmatpush3.bf16.msra.mxu0 %v5033_v15  ;;  %v596_v63 = vsel %vm5369_vm2, %v591_v57, %v595_v51  ;;  %v609_v15 = vrot.slane %v607_v5, 5  ;;  %v766_v51 = vrot.slane %v764_v42, 4  ;;  %v769_v55 = vrot.slane %v767_v47, 5  ;;  %v4260_v7 = vld [vmem:[%s5349_s10 + $0x34] sm:$0x1] }
  0x4d   : > { %4899 = vmatprep.subr.bf16.mxu0 %v5035_v27  ;;  %v4223_v4 = vcombine.low %v582_v60, %v596_v63  ;;  %v604_v14 = vor.u32 %v603_v10, %v600_v9  ;;  %v741_v39 = vrot.slane %v739_v31, 5  ;;  %v781_v57 = vshll.u32 %v4255_v46, 16 }
  0x4e   : > { %v775_v60 = vrot.slane %v773_v52, 5  ;;  %v787_v61 = vshll.u32 %v4256_v50, 16  ;;  %v770_v1 = vor.u32 %v769_v55, %v766_v51  ;;  %v801_v13 = vshll.u32 %v4258_v62, 16 }
  0x4f   : > { %1650 = vmatmul.mubr.bf16.gmra.mrb[20].mxu0 %v5034_v29  ;;  %v605_v19 = vrot.slane %v604_v14, 4  ;;  %v4252_v29 = vld [vmem:[%s5349_s10 + $0x14] sm:$0x1]  ;;  %v783_v3 = vrot.slane %v781_v57, 5  ;;  %v4261_v14 = vld [vmem:[%s5349_s10 + $0x38] sm:$0xf] }
  0x50   : > { %4900 = vmatpush3.bf16.msra.mxu0 %v5035_v27  ;;  %1657 = vmatprep.mubr.bf16.mxu0 %v4223_v4  ;;  %v624_v27 = vsel %vm5369_vm2, %v619_v21, %v623_v16  ;;  %v759_v40 = vshll.u32 %v4252_v29, 16  ;;  %v4259_v4 = vld [vmem:[%s5349_s10 + $0x30] sm:$0xf]  ;;  %v789_v6 = vrot.slane %v787_v61, 5  ;;  %v771_v11 = vrot.slane %v770_v1, 4 }
  0x51   : > { %1715 = vmatmul.mubr.bf16.gmra.mrb[20].mxu1 %v5037_v30  ;;  %4901 = vmatprep.subr.bf16.mxu0 %v5038_v43  ;;  %v610_v24 = vsel %vm5369_vm2, %v605_v19, %v609_v15  ;;  %v736_v30 = vshrl.u32 %v4249_v25, 16  ;;  %v4262_v15 = vld [vmem:[%s5349_s10 + $0x3c] sm:$0x1]  ;;  %v809_v19 = vshll.u32 %v4259_v4, 16  ;;  %v4264_v25 = vld [vmem:[%s5349_s10 + $0x44] sm:$0x1] }
  0x52   : > { %1722 = vmatprep.mubr.bf16.mxu1 %v5041_v53  ;;  %v4224_v32 = vcombine.low %v610_v24, %v624_v27  ;;  %v761_v49 = vrot.slane %v759_v40, 5  ;;  %v756_v53 = vor.u32 %v755_v45, %v752_v44  ;;  %v776_v21 = vsel %vm5369_vm2, %v771_v11, %v775_v60 }
  0x53   : > { %v738_v38 = vrot.slane %v736_v30, 4  ;;  %v815_v24 = vshll.u32 %v4260_v7, 16  ;;  %v811_v28 = vrot.slane %v809_v19, 5  ;;  %v820_v29 = vshrl.u32 %v4261_v14, 16 }
  0x54   : > { %4902 = vmatpush3.bf16.msra.mxu0 %v5038_v43  ;;  %v747_v43 = vrot.slane %v745_v34, 5  ;;  %v757_v0 = vrot.slane %v756_v53, 4  ;;  %v843_v44 = vshll.u32 %v4264_v25, 16 }
  0x55   : > { %4903 = vmatprep.subr.bf16.mxu0 %v5040_v56  ;;  %v742_v48 = vor.u32 %v741_v39, %v738_v38  ;;  %v817_v31 = vrot.slane %v815_v24, 5  ;;  %v822_v37 = vrot.slane %v820_v29, 4 }
  0x56   : > { %v762_v10 = vsel %vm5369_vm2, %v757_v0, %v761_v49  ;;  %v845_v52 = vrot.slane %v843_v44, 5 }
  0x57   : > { %1658 = vmatmul.mubr.bf16.gmra.mrb[24].mxu0 %v5039_v58  ;;  %v4257_v58 = vld [vmem:[%s5349_s10 + $0x28] sm:$0xf] }
  0x58   : > { %4904 = vmatpush3.bf16.msra.mxu0 %v5040_v56  ;;  %1665 = vmatprep.mubr.bf16.mxu0 %v4224_v32  ;;  %v778_v56 = vshrl.u32 %v4255_v46, 16  ;;  %v792_v63 = vshrl.u32 %v4257_v58, 16  ;;  %v795_v9 = vshll.u32 %v4257_v58, 16  ;;  %v823_v32 = vshll.u32 %v4261_v14, 16 }
  0x59   : > { %1723 = vmatmul.mubr.bf16.gmra.mrb[24].mxu1 %v5042_v59  ;;  %4905 = vmatprep.subr.bf16.mxu0 %v5043_v8  ;;  %v743_v59 = vrot.slane %v742_v48, 4 }
  0x5a   : > { %1730 = vmatprep.mubr.bf16.mxu1 %v5046_v18  ;;  %v780_v2 = vrot.slane %v778_v56, 4  ;;  %v797_v17 = vrot.slane %v795_v9, 5  ;;  %v806_v18 = vshrl.u32 %v4259_v4, 16  ;;  %v825_v38 = vrot.slane %v823_v32, 5 }
  0x5b   : > { %v748_v5 = vsel %vm5369_vm2, %v743_v59, %v747_v43 }
  0x5c   : > { %4906 = vmatpush3.bf16.msra.mxu0 %v5043_v8  ;;  %v794_v8 = vrot.slane %v792_v63, 4  ;;  %v784_v12 = vor.u32 %v783_v3, %v780_v2  ;;  %v4265_v16 = vcombine.low %v748_v5, %v762_v10  ;;  %v808_v27 = vrot.slane %v806_v18, 4 }
  0x5d   : > { %4907 = vmatprep.subr.bf16.mxu0 %v5045_v20  ;;  %v826_v45 = vor.u32 %v825_v38, %v822_v37 }
  0x5e   : > { %v798_v26 = vor.u32 %v797_v17, %v794_v8  ;;  %v812_v36 = vor.u32 %v811_v28, %v808_v27 }
  0x5f   : > { %1666 = vmatmul.mubr.bf16.gmra.mrb[28].mxu0 %v5044_v22  ;;  %v785_v22 = vrot.slane %v784_v12, 4  ;;  %v827_v50 = vrot.slane %v826_v45, 4 }
  0x60   : > { %4908 = vmatpush3.bf16.msra.mxu0 %v5045_v20  ;;  %v4263_v20 = vld [vmem:[%s5349_s10 + $0x40] sm:$0xf]  ;;  %4911 = vmatprep.mubr.bf16.mxu0 %v4265_v16  ;;  %v799_v35 = vrot.slane %v798_v26, 4  ;;  %v813_v43 = vrot.slane %v812_v36, 4 }
  0x61   : > { %1731 = vmatmul.mubr.bf16.gmra.mrb[28].mxu1 %v5047_v23  ;;  %4909 = vmatprep.subr.bf16.mxu0 %v5048_v33  ;;  %v803_v23 = vrot.slane %v801_v13, 5  ;;  %v790_v30 = vsel %vm5369_vm2, %v785_v22, %v789_v6  ;;  %v834_v40 = vshrl.u32 %v4263_v20, 16  ;;  %v837_v41 = vshll.u32 %v4263_v20, 16 }
  0x62   : > { %v4266_v34 = vcombine.low %v776_v21, %v790_v30  ;;  %v818_v48 = vsel %vm5369_vm2, %v813_v43, %v817_v31 }
  0x63   : > { %v804_v42 = vsel %vm5369_vm2, %v799_v35, %v803_v23  ;;  %v836_v46 = vrot.slane %v834_v40, 4  ;;  %v839_v47 = vrot.slane %v837_v41, 5 }
  0x64   : > { %4910 = vmatpush3.bf16.msra.mxu0 %v5048_v33  ;;  %v829_v33 = vshll.u32 %v4262_v15, 16  ;;  %v4267_v49 = vcombine.low %v804_v42, %v818_v48 }
  0x65   : > { %v840_v51 = vor.u32 %v839_v47, %v836_v46 }
  0x66   : > { %v831_v39 = vrot.slane %v829_v33, 5 }
  0x67   : > { %4912 = vmatmul.mubr.bf16.vlgmr.msra.gmra.mrb[32].mxu0 %v4266_v34  ;;  %v841_v55 = vrot.slane %v840_v51, 4 }
  0x68   : > { %4915 = vmatprep.mubr.bf16.mxu0 %v4267_v49  ;;  %v832_v53 = vsel %vm5369_vm2, %v827_v50, %v831_v39  ;;  %v5049_v49 = vld [vmem:[%s6198_s2 + $0xc0] sm:$0xff]  }
  0x69   : > { %v846_v56 = vsel %vm5369_vm2, %v841_v55, %v845_v52  ;;  %v5050_v50 = vld [vmem:[%s6198_s2 + $0x80] sm:$0xff]   ;;  %4763 = vmatprep.subr.bf16.mxu0 %v5049_v49  ;;  %v1988_v49 = vld [vmem:[#allocation3 + $0x14] sm:$0x1] }
  0x6a   : > { %v4268_v57 = vcombine.low %v832_v53, %v846_v56  ;;  %4764 = vmatpush3.bf16.msra.mxu0 %v5050_v50  ;;  %v5051_v53 = vld [vmem:[%s6198_s2 + $0xc8] sm:$0xff]  }
  0x6b   : > { %v5052_v56 = vld [vmem:[%s6198_s2 + $0x88] sm:$0xff]   ;;  %4765 = vmatprep.subr.bf16.mxu0 %v5051_v53  ;;  %v1989_v53 = vsel %vm5642_vm7, 0, %v1988_v49  ;;  %v1971_v49 = vld [vmem:[#allocation3 + $0x38] sm:$0x1] }
  0x6c   : > { %1990 = vst [vmem:[#allocation3 + $0x14] sm:$0x1] %v1989_v53  ;;  %v1972_v53 = vsel %vm5634_vm6, 0, %v1971_v49 }
  0x6d   : > { %1973 = vst [vmem:[#allocation3 + $0x38] sm:$0x1] %v1972_v53 }
  0x6e   : > { %4766 = vmatpush3.bf16.msra.mxu0 %v5052_v56  ;;  %v1965_v56 = vld [vmem:[#allocation3 + $0x28] sm:$0x1] }
  0x6f   : > { %4916 = vmatmul.mubr.bf16.gmra.mrb[36].mxu0 %v4268_v57 }
  0xfa   : > { %v4567_v58 = vpop.f32.mrb[0].mxu0 }
  0xfb   : > { %v4568_v59 = vpop.f32.mrb[1].mxu0 }
  0xfc   : > { %v4569_v60 = vadd.f32 %v4568_v59, %v4567_v58  ;;  %v4570_v61 = vpop.f32.mrb[2].mxu0  ;;  %v4607_v0 = vpop.f32.mrb[0].mxu1 }
  0xfd   : > { %v4571_v62 = vpop.f32.mrb[3].mxu0  ;;  %v4608_v1 = vpop.f32.mrb[1].mxu1 }
  0xfe   : > { %v4572_v63 = vadd.f32 %v4571_v62, %v4570_v61  ;;  %v4609_v2 = vadd.f32 %v4608_v1, %v4607_v0  ;;  %v4610_v3 = vpop.f32.mrb[2].mxu1  ;;  %v5053_v61 = vld [vmem:[%s6198_s2 + $0x40] sm:$0xff]   ;;  %v5055_v1 = vld [vmem:[%s6198_s2 + $0xd0] sm:$0xff]  }
  0xff   : > { %v4611_v5 = vpop.f32.mrb[3].mxu1  ;;  %v5054_v0 = vld [vmem:[%s6198_s2] sm:$0xff]   ;;  %4723 = vmatprep.subr.bf16.mxu1 %v5053_v61  ;;  %4767 = vmatprep.subr.bf16.mxu0 %v5055_v1 }
 0x100   : > { %v5597_v7 = vadd.f32 %v4609_v2, %v4569_v60  ;;  %v4612_v8 = vadd.f32 %v4611_v5, %v4610_v3  ;;  %4724 = vmatpush3.bf16.msra.mxu1 %v5054_v0  ;;  %v1966_v0 = vsel %vm5634_vm6, 0, %v1965_v56 }
 0x101   : > { %1967 = vst [vmem:[#allocation3 + $0x28] sm:$0x1] %v1966_v0 }
 0x102   : > { %v4573_v4 = vpop.f32.mrb[4].mxu0  ;;  %v5599_v12 = vadd.f32 %v4612_v8, %v4572_v63  ;;  %v2000_v8 = vld [vmem:[#allocation3 + $0x34] sm:$0x1] }
 0x103   : > { %v4574_v6 = vpop.f32.mrb[5].mxu0 }
 0x104   : > { %v4575_v9 = vadd.f32 %v4574_v6, %v4573_v4  ;;  %v4576_v10 = vpop.f32.mrb[6].mxu0  ;;  %v4613_v14 = vpop.f32.mrb[4].mxu1  ;;  %v1968_v6 = vld [vmem:[#allocation3 + $0x30] sm:$0x1] }
 0x105   : > { %v4577_v11 = vpop.f32.mrb[7].mxu0  ;;  %v4614_v15 = vpop.f32.mrb[5].mxu1 }
 0x106   : > { %v4578_v13 = vadd.f32 %v4577_v11, %v4576_v10  ;;  %v4615_v16 = vadd.f32 %v4614_v15, %v4613_v14  ;;  %v4616_v17 = vpop.f32.mrb[6].mxu1  ;;  %v1969_v11 = vsel %vm5634_vm6, 0, %v1968_v6  ;;  %v5056_v14 = vld [vmem:[%s6198_s2 + $0x90] sm:$0xff]   ;;  %v5057_v15 = vld [vmem:[%s6198_s2 + $0x48] sm:$0xff]  }
 0x107   : > { %v4617_v19 = vpop.f32.mrb[7].mxu1  ;;  %1970 = vst [vmem:[#allocation3 + $0x30] sm:$0x1] %v1969_v11  ;;  %4768 = vmatpush3.bf16.msra.mxu0 %v5056_v14  ;;  %4725 = vmatprep.subr.bf16.mxu1 %v5057_v15 }
 0x108   : > { %v5601_v21 = vadd.f32 %v4615_v16, %v4575_v9  ;;  %v4618_v22 = vadd.f32 %v4617_v19, %v4616_v17  ;;  %v5058_v17 = vld [vmem:[%s6198_s2 + $0x8] sm:$0xff]  }
 0x109   : > { %v1953_v19 = vld [vmem:[#allocation3 + $0x8] sm:$0x1]  ;;  %4726 = vmatpush3.bf16.msra.mxu1 %v5058_v17  ;;  %v5072_v17 = vld [vmem:[%s6198_s2 + $0xb0] sm:$0xff]  }
 0x10a   : > { %v4579_v18 = vpop.f32.mrb[8].mxu0  ;;  %v5603_v26 = vadd.f32 %v4618_v22, %v4578_v13 }
 0x10b   : > { %v4580_v20 = vpop.f32.mrb[9].mxu0 }
 0x10c   : > { %v4581_v23 = vadd.f32 %v4580_v20, %v4579_v18  ;;  %v4582_v24 = vpop.f32.mrb[10].mxu0  ;;  %v4619_v28 = vpop.f32.mrb[8].mxu1  ;;  %v5059_v18 = vld [vmem:[%s6198_s2 + $0xd8] sm:$0xff]   ;;  %v5209_v20 = vmov 0  }
 0x10d   : > { %v4583_v25 = vpop.f32.mrb[11].mxu0  ;;  %v4620_v29 = vpop.f32.mrb[9].mxu1  ;;  %1942 = vst [vmem:[#allocation3] sm:$0xf] %v5209_v20  ;;  %1943 = vst [vmem:[#allocation3 + $0x4] sm:$0x1] %v5209_v20  ;;  %4769 = vmatprep.subr.bf16.mxu0 %v5059_v18 }
 0x10e   : > { %v4584_v27 = vadd.f32 %v4583_v25, %v4582_v24  ;;  %v4621_v30 = vadd.f32 %v4620_v29, %v4619_v28  ;;  %v4622_v31 = vpop.f32.mrb[10].mxu1  ;;  %1945 = vst [vmem:[#allocation3 + $0x48] sm:$0xf] %v5209_v20  ;;  %1946 = vst [vmem:[#allocation3 + $0x4c] sm:$0x1] %v5209_v20  ;;  %v5060_v25 = vld [vmem:[%s6198_s2 + $0x98] sm:$0xff]  }
 0x10f   : > { %v4623_v33 = vpop.f32.mrb[11].mxu1  ;;  %v1956_v28 = vld [vmem:[#allocation3 + $0x10] sm:$0x1]  ;;  %4770 = vmatpush3.bf16.msra.mxu0 %v5060_v25  ;;  %v5074_v20 = vld [vmem:[%s6198_s2 + $0x28] sm:$0xff]  }
 0x110   : > { %v5605_v35 = vadd.f32 %v4621_v30, %v4581_v23  ;;  %v4624_v36 = vadd.f32 %v4623_v33, %v4622_v31  ;;  %v1985_v31 = vld [vmem:[#allocation3 + $0xc] sm:$0x1] }
 0x112   : > { %v4585_v32 = vpop.f32.mrb[12].mxu0  ;;  %v5607_v40 = vadd.f32 %v4624_v36, %v4584_v27  ;;  %v1954_v27 = vsel %vm5634_vm6, 0, %v1953_v19  ;;  %v5061_v36 = vld [vmem:[%s6198_s2 + $0x50] sm:$0xff]  }
 0x113   : > { %v4586_v34 = vpop.f32.mrb[13].mxu0  ;;  %1955 = vst [vmem:[#allocation3 + $0x8] sm:$0x1] %v1954_v27  ;;  %4727 = vmatprep.subr.bf16.mxu1 %v5061_v36 }
 0x114   : > { %v4587_v37 = vadd.f32 %v4586_v34, %v4585_v32  ;;  %v4588_v38 = vpop.f32.mrb[14].mxu0  ;;  %v4625_v42 = vpop.f32.mrb[12].mxu1  ;;  %v1959_v32 = vld [vmem:[#allocation3 + $0x18] sm:$0x1]  ;;  %v1982_v18 = vld [vmem:[#allocation3 + $0x4] sm:$0x1] }
 0x115   : > { %v4589_v39 = vpop.f32.mrb[15].mxu0  ;;  %v4626_v43 = vpop.f32.mrb[13].mxu1  ;;  %v1977_v53 = vld [vmem:[#allocation3 + $0x48] sm:$0x1] }
 0x116   : > { %v4590_v41 = vadd.f32 %v4589_v39, %v4588_v38  ;;  %v4627_v44 = vadd.f32 %v4626_v43, %v4625_v42  ;;  %v4628_v45 = vpop.f32.mrb[14].mxu1  ;;  %v1960_v38 = vsel %vm5634_vm6, 0, %v1959_v32  ;;  %v1962_v39 = vld [vmem:[#allocation3 + $0x20] sm:$0x1]  ;;  %v5062_v43 = vld [vmem:[%s6198_s2 + $0x10] sm:$0xff]   ;;  %v5076_v32 = vld [vmem:[%s6198_s2 + $0xb8] sm:$0xff]  }
 0x117   : > { %v4629_v46 = vpop.f32.mrb[15].mxu1  ;;  %1961 = vst [vmem:[#allocation3 + $0x18] sm:$0x1] %v1960_v38  ;;  %4728 = vmatpush3.bf16.msra.mxu1 %v5062_v43  ;;  %v1994_v43 = vld [vmem:[#allocation3 + $0x24] sm:$0x1] }
 0x118   : > { %v5609_v47 = vadd.f32 %v4627_v44, %v4587_v37  ;;  %v4630_v48 = vadd.f32 %v4629_v46, %v4628_v45  ;;  %v1986_v37 = vsel %vm5642_vm7, 0, %v1985_v31  ;;  %v5063_v44 = vld [vmem:[%s6198_s2 + $0xe0] sm:$0xff]   ;;  %v1963_v45 = vsel %vm5634_vm6, 0, %v1962_v39 }
 0x119   : > { %1987 = vst [vmem:[#allocation3 + $0xc] sm:$0x1] %v1986_v37  ;;  %1964 = vst [vmem:[#allocation3 + $0x20] sm:$0x1] %v1963_v45  ;;  %4771 = vmatprep.subr.bf16.mxu0 %v5063_v44  ;;  %v5079_v37 = vld [vmem:[%s6198_s2 + $0x30] sm:$0xff]  }
 0x11a   : > { %v5617_v51 = vadd.f32 %v4630_v48, %v4590_v41  ;;  %v4647_v59 = vpop.f32.mrb[16].mxu0  ;;  %v5064_v48 = vld [vmem:[%s6198_s2 + $0xa0] sm:$0xff]  }
 0x11b   : > { %v4648_v62 = vpop.f32.mrb[17].mxu0  ;;  %4772 = vmatpush3.bf16.msra.mxu0 %v5064_v48  ;;  %v1997_v48 = vld [vmem:[#allocation3 + $0x2c] sm:$0x1] }
 0x11c   : > { %v4687_v52 = vpop.f32.mrb[16].mxu1  ;;  %v4649_v2 = vadd.f32 %v4648_v62, %v4647_v59  ;;  %v4650_v3 = vpop.f32.mrb[18].mxu0  ;;  %v5066_v59 = vld [vmem:[%s6198_s2 + $0x18] sm:$0xff]  }
 0x11d   : > { %v4688_v55 = vpop.f32.mrb[17].mxu1  ;;  %v4651_v4 = vpop.f32.mrb[19].mxu0 }
 0x11e   : > { %v4689_v57 = vadd.f32 %v4688_v55, %v4687_v52  ;;  %v4690_v58 = vpop.f32.mrb[18].mxu1  ;;  %v1644_v9 = vadd.f32 %v4649_v2, %v5597_v7  ;;  %v4652_v10 = vadd.f32 %v4651_v4, %v4650_v3  ;;  %v2001_v7 = vsel %vm5642_vm7, 0, %v2000_v8  ;;  %v1991_v55 = vld [vmem:[#allocation3 + $0x1c] sm:$0x1]  ;;  %v5068_v2 = vld [vmem:[%s6198_s2 + $0xa8] sm:$0xff]   ;;  %v5070_v8 = vld [vmem:[%s6198_s2 + $0x20] sm:$0xff]  }
 0x11f   : > { %v4691_v60 = vpop.f32.mrb[19].mxu1  ;;  %2002 = vst [vmem:[#allocation3 + $0x34] sm:$0x1] %v2001_v7 }
 0x120   : > { %v4692_v63 = vadd.f32 %v4691_v60, %v4690_v58  ;;  %v1647_v22 = vadd.f32 %v4652_v10, %v5599_v12  ;;  %v5661_v24 = vadd.f32 %v4689_v57, %v1644_v9  ;;  %v1957_v12 = vsel %vm5634_vm6, 0, %v1956_v28  ;;  %v5065_v58 = vld [vmem:[%s6198_s2 + $0x58] sm:$0xff]   ;;  %v5071_v9 = vld [vmem:[%s6198_s2 + $0xf0] sm:$0xff]  }
 0x121   : > { %1958 = vst [vmem:[#allocation3 + $0x10] sm:$0x1] %v1957_v12  ;;  %v1992_v60 = vsel %vm5642_vm7, 0, %v1991_v55  ;;  %4729 = vmatprep.subr.bf16.mxu1 %v5065_v58  ;;  %v5078_v28 = vld [vmem:[%s6198_s2 + $0x70] sm:$0xff]   ;;  %v1974_v55 = vld [vmem:[#allocation3 + $0x40] sm:$0x1] }
 0x122   : > { %v5670_v34 = vadd.f32 %v4692_v63, %v1647_v22  ;;  %v4653_v41 = vpop.f32.mrb[20].mxu0  ;;  %v5067_v63 = vld [vmem:[%s6198_s2 + $0xe8] sm:$0xff]   ;;  %1993 = vst [vmem:[#allocation3 + $0x1c] sm:$0x1] %v1992_v60  ;;  %4730 = vmatpush3.bf16.msra.mxu1 %v5066_v59  ;;  %v5075_v22 = vld [vmem:[%s6198_s2 + $0xf8] sm:$0xff]   ;;  %v1975_v59 = vsel %vm5634_vm6, 0, %v1974_v55 }
 0x123   : > { %v4654_v46 = vpop.f32.mrb[21].mxu0  ;;  %4773 = vmatprep.subr.bf16.mxu0 %v5067_v63  ;;  %v5084_v58 = vld [vmem:[%s6198_s2 + $0x38] sm:$0xff]   ;;  %1976 = vst [vmem:[#allocation3 + $0x40] sm:$0x1] %v1975_v59  ;;  %v5088_v63 = vld [vmem:[%s6198_s2 + $0x140] sm:$0xff]  }
 0x124   : > { %v4693_v16 = vpop.f32.mrb[20].mxu1  ;;  %v4655_v50 = vadd.f32 %v4654_v46, %v4653_v41  ;;  %v4656_v52 = vpop.f32.mrb[22].mxu0  ;;  %4774 = vmatpush3.bf16.msra.mxu0 %v5068_v2  ;;  %v1995_v46 = vsel %vm5642_vm7, 0, %v1994_v43  ;;  %v2009_v55 = vld [vmem:[#allocation3 + $0x4c] sm:$0x1] }
 0x125   : > { %v4694_v23 = vpop.f32.mrb[21].mxu1  ;;  %v4657_v57 = vpop.f32.mrb[23].mxu0  ;;  %4775 = vmatprep.subr.bf16.mxu0 %v5071_v9  ;;  %1996 = vst [vmem:[#allocation3 + $0x24] sm:$0x1] %v1995_v46 }
 0x126   : > { %v4695_v29 = vadd.f32 %v4694_v23, %v4693_v16  ;;  %v4696_v30 = vpop.f32.mrb[22].mxu1  ;;  %v1652_v61 = vadd.f32 %v4655_v50, %v5601_v21  ;;  %v4658_v62 = vadd.f32 %v4657_v57, %v4656_v52  ;;  %v5069_v21 = vld [vmem:[%s6198_s2 + $0x60] sm:$0xff]   ;;  %v1983_v23 = vsel %vm5642_vm7, 0, %v1982_v18 }
 0x127   : > { %v4697_v33 = vpop.f32.mrb[23].mxu1  ;;  %4731 = vmatprep.subr.bf16.mxu1 %v5069_v21  ;;  %1984 = vst [vmem:[#allocation3 + $0x4] sm:$0x1] %v1983_v23  ;;  %v2003_v21 = vld [vmem:[#allocation3 + $0x3c] sm:$0x1] }
 0x128   : > { %v4698_v42 = vadd.f32 %v4697_v33, %v4696_v30  ;;  %v1655_v3 = vadd.f32 %v4658_v62, %v5603_v26  ;;  %v5713_v6 = vadd.f32 %v4695_v29, %v1652_v61  ;;  %v5073_v26 = vld [vmem:[%s6198_s2 + $0x68] sm:$0xff]   ;;  %4732 = vmatpush3.bf16.msra.mxu1 %v5070_v8  ;;  %v1950_v30 = vld [vmem:[#allocation3] sm:$0x1]  ;;  %4776 = vmatpush3.bf16.msra.mxu0 %v5072_v17 }
 0x129   : > { %4733 = vmatprep.subr.bf16.mxu1 %v5073_v26  ;;  %v1951_v33 = vsel %vm5634_vm6, 0, %v1950_v30  ;;  %4777 = vmatprep.subr.bf16.mxu0 %v5075_v22 }
 0x12a   : > { %v5724_v15 = vadd.f32 %v4698_v42, %v1655_v3  ;;  %v4659_v16 = vpop.f32.mrb[24].mxu0  ;;  %1952 = vst [vmem:[#allocation3] sm:$0x1] %v1951_v33  ;;  %v5083_v42 = vld [vmem:[%s6198_s2 + $0x78] sm:$0xff]   ;;  %v2004_v3 = vsel %vm5642_vm7, 0, %v2003_v21 }
 0x12b   : > { %v4660_v19 = vpop.f32.mrb[25].mxu0  ;;  %2005 = vst [vmem:[#allocation3 + $0x3c] sm:$0x1] %v2004_v3 }
 0x12c   : > { %v4699_v1 = vpop.f32.mrb[24].mxu1  ;;  %v4661_v25 = vadd.f32 %v4660_v19, %v4659_v16  ;;  %v4662_v27 = vpop.f32.mrb[26].mxu0  ;;  %4734 = vmatpush3.bf16.msra.mxu1 %v5074_v20  ;;  %4778 = vmatpush3.bf16.msra.mxu0 %v5076_v32 }
 0x12d   : > { %v4700_v4 = vpop.f32.mrb[25].mxu1  ;;  %v4663_v29 = vpop.f32.mrb[27].mxu0  ;;  %4735 = vmatprep.subr.bf16.mxu1 %v5078_v28 }
 0x12e   : > { %v4701_v10 = vadd.f32 %v4700_v4, %v4699_v1  ;;  %v4702_v11 = vpop.f32.mrb[26].mxu1  ;;  %v1660_v12 = vadd.f32 %v4661_v25, %v5605_v35  ;;  %v4664_v31 = vadd.f32 %v4663_v29, %v4662_v27  ;;  %v5080_v35 = vld [vmem:[%s6198_s2 + $0x1c0] sm:$0xff]  }
 0x12f   : > { %v4703_v14 = vpop.f32.mrb[27].mxu1  ;;  %4843 = vmatprep.subr.bf16.mxu0 %v5080_v35 }
 0x130   : > { %v4704_v7 = vadd.f32 %v4703_v14, %v4702_v11  ;;  %v1663_v38 = vadd.f32 %v4664_v31, %v5607_v40  ;;  %v1725_v41 = vadd.f32 %v4701_v10, %v1660_v12  ;;  %v1998_v40 = vsel %vm5642_vm7, 0, %v1997_v48  ;;  %4736 = vmatpush3.bf16.msra.mxu1 %v5079_v37  ;;  %v2006_v37 = vld [vmem:[#allocation3 + $0x44] sm:$0x1] }
 0x131   : > { %1999 = vst [vmem:[#allocation3 + $0x2c] sm:$0x1] %v1998_v40  ;;  %4737 = vmatprep.subr.bf16.mxu1 %v5083_v42  ;;  %v2007_v42 = vsel %vm5642_vm7, 0, %v2006_v37 }
 0x132   : > { %v1728_v52 = vadd.f32 %v4704_v7, %v1663_v38  ;;  %v4665_v56 = vpop.f32.mrb[28].mxu0  ;;  %2008 = vst [vmem:[#allocation3 + $0x44] sm:$0x1] %v2007_v42 }
 0x133   : > { %v4666_v60 = vpop.f32.mrb[29].mxu0 }
 0x134   : > { %v4705_v36 = vpop.f32.mrb[28].mxu1  ;;  %v4667_v61 = vadd.f32 %v4666_v60, %v4665_v56  ;;  %v4668_v62 = vpop.f32.mrb[30].mxu0  ;;  %4738 = vmatpush3.bf16.msra.mxu1 %v5084_v58  ;;  %v1978_v56 = vsel %vm5634_vm6, 0, %v1977_v53 }
 0x135   : > { %v4706_v39 = vpop.f32.mrb[29].mxu1  ;;  %v4669_v0 = vpop.f32.mrb[31].mxu0  ;;  %4803 = vmatprep.subr.bf16.mxu1 %v5088_v63  ;;  %1979 = vst [vmem:[#allocation3 + $0x48] sm:$0x1] %v1978_v56 }
 0x136   : > { %v4707_v44 = vadd.f32 %v4706_v39, %v4705_v36  ;;  %v4708_v45 = vpop.f32.mrb[30].mxu1  ;;  %v1668_v1 = vadd.f32 %v4667_v61, %v5609_v47  ;;  %v4670_v2 = vadd.f32 %v4669_v0, %v4668_v62 }
 0x137   : > { %v4709_v50 = vpop.f32.mrb[31].mxu1 }
 0x138   : > { %v4710_v57 = vadd.f32 %v4709_v50, %v4708_v45  ;;  %v1671_v4 = vadd.f32 %v4670_v2, %v5617_v51  ;;  %v1733_v8 = vadd.f32 %v4707_v44, %v1668_v1 }
 0x13a   : > { %v1736_v9 = vadd.f32 %v4710_v57, %v1671_v4  ;;  %v4913_v10 = vpop.f32.mrb[32].mxu0  ;;  %v2010_v57 = vsel %vm5642_vm7, 0, %v2009_v55 }
 0x13b   : > { %v5775_v11 = vadd.f32 %v4913_v10, %v5713_v6  ;;  %v1773_v26 = vpop.f32.mrb[33].mxu0  ;;  %2011 = vst [vmem:[#allocation3 + $0x4c] sm:$0x1] %v2010_v57 }
 0x13c   : > { %v5778_v14 = vadd.f32 %v1773_v26, %v5661_v24  ;;  %v4914_v47 = vpop.f32.mrb[34].mxu0 }
 0x13d   : > { %v5781_v16 = vadd.f32 %v4914_v47, %v5724_v15  ;;  %v1776_v7 = vpop.f32.mrb[35].mxu0  ;;  %v1822_v24 = vmul.f32 %v5775_v11, %v5775_v11 }
 0x13e   : > { %v5784_v17 = vadd.f32 %v1776_v7, %v5670_v34  ;;  %v1820_v51 = vmul.f32 %v5778_v14, %v5778_v14 }
 0x13f   : > { %v1823_v20 = vmul.f32 %v5781_v16, %v5781_v16 }
 0x140   : > { %v1806_v18 = vadd.f32 %v5784_v17, %v5778_v14  ;;  %v1821_v6 = vmul.f32 %v5784_v17, %v5784_v17 }
 0x142   : > { %v1807_v19 = vadd.f32 %v1806_v18, %v5775_v11  ;;  %v1828_v15 = vadd.f32 %v1821_v6, %v1820_v51  ;;  %v4917_v22 = vpop.f32.mrb[36].mxu0 }
 0x143   : > { %v5798_v25 = vadd.f32 %v4917_v22, %v1733_v8  ;;  %v1789_v27 = vpop.f32.mrb[37].mxu0 }
 0x144   : > { %v1829_v34 = vadd.f32 %v1828_v15, %v1822_v24  ;;  %v1808_v23 = vadd.f32 %v1807_v19, %v5781_v16  ;;  %v1790_v28 = vadd.f32 %v1789_v27, %v1725_v41  ;;  %v4918_v30 = vpop.f32.mrb[38].mxu0  ;;  %v4341_v19 = vld [vmem:[%s6199_s3] ss:$0 sm:$0xff] }
 0x145   : > { %v1801_v12 = vadd.f32 %v4918_v30, %v1736_v9  ;;  %v1792_v31 = vpop.f32.mrb[39].mxu0  ;;  %v1826_v43 = vmul.f32 %v5798_v25, %v5798_v25 }
 0x146   : > { %v1830_v29 = vadd.f32 %v1829_v34, %v1823_v20  ;;  %v1809_v32 = vadd.f32 %v1808_v23, %v1790_v28  ;;  %v1824_v33 = vmul.f32 %v1790_v28, %v1790_v28  ;;  %v1793_v36 = vadd.f32 %v1792_v31, %v1728_v52 }
 0x147   : > { %v1827_v45 = vmul.f32 %v1801_v12, %v1801_v12 }
 0x148   : > { %v1831_v35 = vadd.f32 %v1830_v29, %v1824_v33  ;;  %v1810_v38 = vadd.f32 %v1809_v32, %v1793_v36  ;;  %v1825_v39 = vmul.f32 %v1793_v36, %v1793_v36 }
 0x14a   : > { %v1811_v41 = vadd.f32 %v1810_v38, %v5798_v25  ;;  %v1832_v44 = vadd.f32 %v1831_v35, %v1825_v39 }
 0x14c   : > { %v1812_v46 = vadd.f32 %v1811_v41, %v1801_v12  ;;  %v1833_v48 = vadd.f32 %v1832_v44, %v1826_v43 }
 0x14e   : > { %v1813_v49 = vrot.slane %v1812_v46, 4  ;;  %v1834_v50 = vadd.f32 %v1833_v48, %v1827_v45 }
 0x150   : > { %v1814_v52 = vadd.f32 %v1813_v49, %v1812_v46  ;;  %v1835_v40 = vrot.slane %v1834_v50, 4 }
 0x152   : > { %v1815_v58 = vrot.slane %v1814_v52, 2  ;;  %v1836_v59 = vadd.f32 %v1835_v40, %v1834_v50 }
 0x154   : > { %v1816_v60 = vadd.f32 %v1815_v58, %v1814_v52  ;;  %v1837_v61 = vrot.slane %v1836_v59, 2  ;;  %v2211_v58 = vld [vmem:[#allocation3] sm:$0xf] }
 0x156   : > { %v1817_v62 = vrot.slane %v1816_v60, 1  ;;  %v1838_v63 = vadd.f32 %v1837_v61, %v1836_v59 }
 0x158   : > { %v1818_v0 = vadd.f32 %v1817_v62, %v1816_v60  ;;  %v1839_v1 = vrot.slane %v1838_v63, 1 }
 0x15a   : > { %v1819_v2 = vmul.f32 0.015625, %v1818_v0  ;;  %v1840_v21 = vadd.f32 %v1839_v1, %v1838_v63  ;;  %v2228_v1 = vshrl.u32 %v2211_v58, 16 }
 0x15c   : > { %v1841_v3 = vmul.f32 0.015625, %v1840_v21  ;;  %v1842_v4 = vmul.f32 %v1819_v2, %v1819_v2  ;;  %v1844_v8 = vsub.f32 %v5778_v14, %v1819_v2  ;;  %v1845_v9 = vsub.f32 %v5784_v17, %v1819_v2 }
 0x15d   : > { %v1846_v13 = vsub.f32 %v5775_v11, %v1819_v2  ;;  %v1847_v10 = vsub.f32 %v5781_v16, %v1819_v2  ;;  %v1848_v26 = vsub.f32 %v1790_v28, %v1819_v2  ;;  %v1849_v47 = vsub.f32 %v1793_v36, %v1819_v2  ;;  %v4342_v11 = vld [vmem:[%s6199_s3 + $0x1] ss:$0 sm:$0xff] }
 0x15e   : > { %v1843_v7 = vsub.f32 %v1841_v3, %v1842_v4  ;;  %v1850_v51 = vsub.f32 %v5798_v25, %v1819_v2  ;;  %v1851_v18 = vsub.f32 %v1801_v12, %v1819_v2  ;;  %v2231_v2 = vshll.u32 %v2211_v58, 16 }
 0x160   : > { %v1852_v6 = vadd.f32 1e-05, %v1843_v7 }
 0x162   : > { %5133 = vrsqrt.f32 %v1852_v6 }
 0x16c   : > { %v5134_v24 = vpop.eup %5133 }
 0x16d   : > { %v1854_v14 = vmul.f32 %v5134_v24, %v1844_v8  ;;  %v1855_v15 = vmul.f32 %v5134_v24, %v1845_v9  ;;  %v1856_v17 = vmul.f32 %v5134_v24, %v1846_v13  ;;  %v1857_v20 = vmul.f32 %v5134_v24, %v1847_v10 }
 0x16e   : > { %v1858_v16 = vmul.f32 %v5134_v24, %v1848_v26  ;;  %v1859_v34 = vmul.f32 %v5134_v24, %v1849_v47  ;;  %v1860_v22 = vmul.f32 %v5134_v24, %v1850_v51  ;;  %v1861_v23 = vmul.f32 %v5134_v24, %v1851_v18  ;;  %v2212_v26 = vld [vmem:[#allocation3 + $0x4] sm:$0x1]  ;;  %v5838_v47 = vld [vmem:[#allocation3 + $0x48] sm:$0xf]  ;;  %v5840_v51 = vld [vmem:[#allocation3] sm:$0xe] }
 0x16f   : > { %v1866_v25 = vmul.f32 %v4341_v19, %v1854_v14  ;;  %v1867_v27 = vmul.f32 %v4341_v19, %v1855_v15  ;;  %v1868_v28 = vmul.f32 %v4341_v19, %v1856_v17  ;;  %v1869_v29 = vmul.f32 %v4341_v19, %v1857_v20  ;;  %v5842_v18 = vld [vmem:[#allocation3 + $0x4] sm:$0x1] }
 0x170   : > { %v1870_v30 = vmul.f32 %v4341_v19, %v1858_v16  ;;  %v1871_v12 = vmul.f32 %v4341_v19, %v1859_v34  ;;  %v1872_v31 = vmul.f32 %v4341_v19, %v1860_v22  ;;  %v1873_v32 = vmul.f32 %v4341_v19, %v1861_v23 }
 0x171   : > { %v1878_v33 = vadd.f32 %v4342_v11, %v1866_v25  ;;  %v1879_v36 = vadd.f32 %v4342_v11, %v1867_v27  ;;  %v5820_v37 = vadd.f32 %v4342_v11, %v1868_v28  ;;  %v5822_v35 = vadd.f32 %v4342_v11, %v1869_v29 }
 0x172   : > { %v5824_v38 = vadd.f32 %v4342_v11, %v1870_v30  ;;  %v5826_v39 = vadd.f32 %v4342_v11, %v1871_v12  ;;  %v5828_v42 = vadd.f32 %v4342_v11, %v1872_v31  ;;  %v5831_v45 = vadd.f32 %v4342_v11, %v1873_v32 }
 0x173   : > { %v4343_v43 = vmul.f32 -1.442695, %v1878_v33  ;;  %v4344_v41 = vmul.f32 -1.442695, %v1879_v36  ;;  %v4345_v44 = vmul.f32 -1.442695, %v5820_v37 }
 0x174   : > { %v4346_v46 = vmul.f32 -1.442695, %v5822_v35  ;;  %v4347_v48 = vmul.f32 -1.442695, %v5824_v38  ;;  %v4348_v49 = vmul.f32 -1.442695, %v5826_v39 }
 0x175   : > { %5135 = vpow2.f32 %v4343_v43  ;;  %v4349_v50 = vmul.f32 -1.442695, %v5828_v42  ;;  %v4350_v52 = vmul.f32 -1.442695, %v5831_v45  ;;  %v2230_v13 = vrot.slane %v2228_v1, 4 }
 0x176   : > { %5137 = vpow2.f32 %v4344_v41  ;;  %v2233_v10 = vrot.slane %v2231_v2, 5  ;;  %v2237_v24 = vshll.u32 %v2212_v26, 16  ;;  %v2866_v20 = vshrl.u32 %v5838_v47, 16  ;;  %v2136_v2 = vld [vmem:[#allocation3 + $0x14] sm:$0x1] }
 0x177   : > { %5139 = vpow2.f32 %v4345_v44  ;;  %v4367_v22 = vrot.slane %v5840_v51, 9  ;;  %v2396_v23 = vrot.slane %v5842_v18, 5  ;;  %v5082_v18 = vld [vmem:[%s6198_s2 + $0x180] sm:$0xff]  }
 0x178   : > { %5141 = vpow2.f32 %v4346_v46  ;;  %v2234_v6 = vor.u32 %v2233_v10, %v2230_v13  ;;  %v5851_v30 = vrot.slane %v2237_v24, 5  ;;  %v2145_v24 = vld [vmem:[#allocation3 + $0x20] sm:$0xf] }
 0x179   : > { %5143 = vpow2.f32 %v4347_v48 }
 0x17a   : > { %5145 = vpow2.f32 %v4348_v49  ;;  %v5849_v29 = vrot.slane %v2234_v6, 4  ;;  %v2139_v6 = vld [vmem:[#allocation3 + $0x18] sm:$0xf] }
 0x17b   : > { %5147 = vpow2.f32 %v4349_v50 }
 0x17c   : > { %5149 = vpow2.f32 %v4350_v52  ;;  %v2127_v52 = vld [vmem:[#allocation3 + $0x8] sm:$0xf] }
 0x17f   : > { %v5136_v40 = vpop.eup %5135 }
 0x180   : > { %v5138_v53 = vpop.eup %5137  ;;  %v1910_v55 = vadd.f32 1.0, %v5136_v40 }
 0x181   : > { %v5140_v56 = vpop.eup %5139  ;;  %v1911_v57 = vadd.f32 1.0, %v5138_v53 }
 0x182   : > { %v5142_v59 = vpop.eup %5141  ;;  %v1912_v60 = vadd.f32 1.0, %v5140_v56  ;;  %5151 = vrcp.f32 %v1910_v55 }
 0x183   : > { %v5144_v61 = vpop.eup %5143  ;;  %v1913_v62 = vadd.f32 1.0, %v5142_v59  ;;  %5153 = vrcp.f32 %v1911_v57  ;;  %v2130_v57 = vld [vmem:[#allocation3 + $0xc] sm:$0x1] }
 0x184   : > { %v5146_v63 = vpop.eup %5145  ;;  %v1914_v0 = vadd.f32 1.0, %v5144_v61  ;;  %5155 = vrcp.f32 %v1912_v60  ;;  %v2133_v61 = vld [vmem:[#allocation3 + $0x10] sm:$0xf] }
 0x185   : > { %v5148_v21 = vpop.eup %5147  ;;  %v1915_v3 = vadd.f32 1.0, %v5146_v63  ;;  %5157 = vrcp.f32 %v1913_v62 }
 0x186   : > { %v5150_v4 = vpop.eup %5149  ;;  %v1916_v8 = vadd.f32 1.0, %v5148_v21  ;;  %5159 = vrcp.f32 %v1914_v0 }
 0x187   : > { %v1917_v9 = vadd.f32 1.0, %v5150_v4  ;;  %5161 = vrcp.f32 %v1915_v3  ;;  %v2157_v3 = vld [vmem:[#allocation3 + $0x30] sm:$0xf]  ;;  %v2160_v4 = vld [vmem:[#allocation3 + $0x34] sm:$0x1] }
 0x188   : > { %5163 = vrcp.f32 %v1916_v8 }
 0x189   : > { %5165 = vrcp.f32 %v1917_v9 }
 0x18c   : > { %v5152_v7 = vpop.eup %5151 }
 0x18d   : > { %v5154_v19 = vpop.eup %5153  ;;  %v1934_v14 = vmul.f32 %v5152_v7, %v1878_v33 }
 0x18e   : > { %v5156_v15 = vpop.eup %5155  ;;  %v1935_v17 = vmul.f32 %v5154_v19, %v1879_v36  ;;  %v2869_v36 = vshll.u32 %v5838_v47, 16 }
 0x18f   : > { %v5158_v11 = vpop.eup %5157  ;;  %v1936_v16 = vmul.f32 %v5156_v15, %v5820_v37  ;;  %v4512_v34 = vpack.c.bf16 %v1934_v14, %v1934_v14 }
 0x190   : > { %v5160_v25 = vpop.eup %5159  ;;  %v1937_v27 = vmul.f32 %v5158_v11, %v5822_v35  ;;  %v4513_v28 = vpack.c.bf16 %v1935_v17, %v1935_v17  ;;  %v5856_v35 = vrot.slane %v2866_v20, 4  ;;  %v2142_v20 = vld [vmem:[#allocation3 + $0x1c] sm:$0x1] }
 0x191   : > { %v5162_v12 = vpop.eup %5161  ;;  %v1938_v31 = vmul.f32 %v5160_v25, %v5824_v38  ;;  %v4514_v32 = vpack.c.bf16 %v1936_v16, %v1936_v16  ;;  %v2045_v33 = vshrl.u32 %v4512_v34, 16  ;;  %v2048_v38 = vshll.u32 %v4512_v34, 16 }
 0x192   : > { %v5164_v37 = vpop.eup %5163  ;;  %v1939_v43 = vmul.f32 %v5162_v12, %v5826_v39  ;;  %v4515_v41 = vpack.c.bf16 %v1937_v27, %v1937_v27  ;;  %v2053_v44 = vshrl.u32 %v4513_v28, 16  ;;  %v2056_v56 = vshll.u32 %v4513_v28, 16  ;;  %v2148_v27 = vld [vmem:[#allocation3 + $0x24] sm:$0x1] }
 0x193   : > { %v5166_v46 = vpop.eup %5165  ;;  %v1940_v48 = vmul.f32 %v5164_v37, %v5828_v42  ;;  %v5859_v49 = vpack.c.bf16 %v1938_v31, %v1938_v31  ;;  %v2047_v50 = vrot.slane %v2045_v33, 7  ;;  %v2061_v53 = vshrl.u32 %v4514_v32, 16  ;;  %v2154_v37 = vld [vmem:[#allocation3 + $0x2c] sm:$0x1] }
 0x194   : > { %v4517_v40 = vpack.c.bf16 %v1939_v43, %v1939_v43  ;;  %v2055_v39 = vrot.slane %v2053_v44, 7  ;;  %v2069_v59 = vshrl.u32 %v4515_v41, 16  ;;  %v1941_v62 = vmul.f32 %v5166_v46, %v5831_v45 }
 0x195   : > { %v5867_v58 = vpack.c.bf16 %v1940_v48, %v1940_v48  ;;  %v2050_v42 = vor.u32 %v2048_v38, %v2047_v50  ;;  %v2051_v60 = vrot.slane %v2047_v50, 4  ;;  %v2077_v63 = vshrl.u32 %v5859_v49, 16  ;;  %v2151_v48 = vld [vmem:[#allocation3 + $0x28] sm:$0xf] }
 0x196   : > { %v2085_v0 = vshrl.u32 %v4517_v40, 16  ;;  %v2058_v1 = vor.u32 %v2056_v56, %v2055_v39  ;;  %v2088_v21 = vshll.u32 %v4517_v40, 16  ;;  %v2059_v8 = vrot.slane %v2055_v39, 4  ;;  %v2163_v56 = vld [vmem:[#allocation3 + $0x38] sm:$0xf] }
 0x197   : > { %v2128_v9 = vsel %vm5863_vm11, %v2050_v42, %v2127_v52  ;;  %v2131_v13 = vsel %vm5634_vm6, %v2051_v60, %v2130_v57  ;;  %v2093_v26 = vshrl.u32 %v5867_v58, 16  ;;  %v2063_v7 = vrot.slane %v2061_v53, 7 }
 0x198   : > { %v2087_v10 = vrot.slane %v2085_v0, 7  ;;  %2129 = vst [vmem:[#allocation3 + $0x8] sm:$0xf] %v2128_v9  ;;  %v2134_v45 = vsel %vm5863_vm11, %v2058_v1, %v2133_v61  ;;  %2132 = vst [vmem:[#allocation3 + $0xc] sm:$0x1] %v2131_v13  ;;  %v2064_v19 = vshll.u32 %v4514_v32, 16  ;;  %v2137_v17 = vsel %vm5634_vm6, %v2059_v8, %v2136_v2 }
 0x199   : > { %2135 = vst [vmem:[#allocation3 + $0x10] sm:$0xf] %v2134_v45  ;;  %v2071_v14 = vrot.slane %v2069_v59, 7  ;;  %v2072_v15 = vshll.u32 %v4515_v41, 16  ;;  %v2067_v34 = vrot.slane %v2063_v7, 4  ;;  %v2079_v25 = vrot.slane %v2077_v63, 7 }
 0x19a   : > { %v2090_v11 = vor.u32 %v2088_v21, %v2087_v10  ;;  %v2091_v16 = vrot.slane %v2087_v10, 4  ;;  %2138 = vst [vmem:[#allocation3 + $0x14] sm:$0x1] %v2137_v17  ;;  %v2066_v28 = vor.u32 %v2064_v19, %v2063_v7  ;;  %v2080_v33 = vshll.u32 %v5859_v49, 16  ;;  %v5933_v19 = vld [vmem:[#allocation3 + $0x4c] sm:$0x1] }
 0x19b   : > { %v2074_v12 = vor.u32 %v2072_v15, %v2071_v14  ;;  %v2075_v31 = vrot.slane %v2071_v14, 4  ;;  %v2143_v44 = vsel %vm5634_vm6, %v2067_v34, %v2142_v20  ;;  %v2083_v46 = vrot.slane %v2079_v25, 4 }
 0x19c   : > { %v2158_v32 = vsel %vm5863_vm11, %v2090_v11, %v2157_v3  ;;  %v2161_v43 = vsel %vm5634_vm6, %v2091_v16, %v2160_v4  ;;  %v2140_v49 = vsel %vm5863_vm11, %v2066_v28, %v2139_v6  ;;  %2144 = vst [vmem:[#allocation3 + $0x1c] sm:$0x1] %v2143_v44  ;;  %v2082_v38 = vor.u32 %v2080_v33, %v2079_v25  ;;  %v5090_v25 = vld [vmem:[%s6198_s2 + $0x1d0] sm:$0xff]  }
 0x19d   : > { %2159 = vst [vmem:[#allocation3 + $0x30] sm:$0xf] %v2158_v32  ;;  %2162 = vst [vmem:[#allocation3 + $0x34] sm:$0x1] %v2161_v43  ;;  %v2146_v50 = vsel %vm5863_vm11, %v2074_v12, %v2145_v24  ;;  %v2149_v52 = vsel %vm5634_vm6, %v2075_v31, %v2148_v27  ;;  %v2155_v40 = vsel %vm5634_vm6, %v2083_v46, %v2154_v37  ;;  %v5901_v53 = vrot.slane %v2093_v26, 7  ;;  %v5086_v26 = vld [vmem:[%s6198_s2 + $0x188] sm:$0xff]  }
 0x19e   : > { %2141 = vst [vmem:[#allocation3 + $0x18] sm:$0xf] %v2140_v49  ;;  %2147 = vst [vmem:[#allocation3 + $0x20] sm:$0xf] %v2146_v50  ;;  %v2096_v39 = vshll.u32 %v5867_v58, 16  ;;  %v5906_v57 = vrot.slane %v2869_v36, 5  ;;  %v2397_v60 = vsel %vm5887_vm12, %v4367_v22, %v2396_v23  ;;  %v2152_v61 = vsel %vm5863_vm11, %v2082_v38, %v2151_v48 }
 0x19f   : > { %2150 = vst [vmem:[#allocation3 + $0x24] sm:$0x1] %v2149_v52  ;;  %v2361_v59 = vld [vmem:[#allocation3 + $0x8] sm:$0xe]  ;;  %v2362_v42 = vld [vmem:[#allocation3 + $0xc] sm:$0x1]  ;;  %v5916_v63 = vpack.c.bf16 %v1941_v62, %v1941_v62  ;;  %v2240_v15 = vsel %vm5369_vm2, %v5849_v29, %v5851_v30 }
 0x1a0   : > { %2156 = vst [vmem:[#allocation3 + $0x2c] sm:$0x1] %v2155_v40  ;;  %v5077_v58 = vld [vmem:[#allocation3 + $0x8] ss:$8 sps:$4 sm:$0xff]   ;;  %v4368_v0 = vrot.slane %v2361_v59, 9  ;;  %v2400_v47 = vrot.slane %v2362_v42, 5  ;;  %v2098_v36 = vor.u32 %v2096_v39, %v5901_v53 }
 0x1a1   : > { %2153 = vst [vmem:[#allocation3 + $0x28] sm:$0xf] %v2152_v61  ;;  %v2213_v1 = vld [vmem:[#allocation3 + $0x8] sm:$0xf]  ;;  %v2214_v2 = vld [vmem:[#allocation3 + $0xc] sm:$0x1]  ;;  %3692 = vmatprep.mubr.bf16.mxu0 %v5077_v58 }
 0x1a2   : > { %v2401_v51 = vsel %vm5887_vm12, %v4368_v0, %v2400_v47  ;;  %v5085_v22 = vld [vmem:[%s6198_s2 + $0x1c8] sm:$0xff]   ;;  %v2242_v23 = vshrl.u32 %v2213_v1, 16  ;;  %v2245_v62 = vshll.u32 %v2213_v1, 16  ;;  %v2251_v21 = vshll.u32 %v2214_v2, 16  ;;  %v2215_v4 = vld [vmem:[#allocation3 + $0x10] sm:$0xf] }
 0x1a3   : > { %v4375_v3 = vcombine.low %v2397_v60, %v2401_v51  ;;  %v2216_v8 = vld [vmem:[#allocation3 + $0x14] sm:$0x1]  ;;  %v2363_v9 = vld [vmem:[#allocation3 + $0x10] sm:$0xe]  ;;  %v2164_v13 = vsel %vm5863_vm11, %v2098_v36, %v2163_v56  ;;  %v2101_v10 = vshrl.u32 %v5916_v63, 16  ;;  %v2256_v24 = vshrl.u32 %v2215_v4, 16 }
 0x1a4   : > { %v2244_v45 = vrot.slane %v2242_v23, 4  ;;  %v2247_v7 = vrot.slane %v2245_v62, 5  ;;  %v2218_v6 = vld [vmem:[#allocation3 + $0x1c] sm:$0x1]  ;;  %2165 = vst [vmem:[#allocation3 + $0x38] sm:$0xf] %v2164_v13 }
 0x1a5   : > { %3693 = vmatmul.mubr.bf16.vlgmr.msra.gmra.mrb[40].mxu0 %v4375_v3  ;;  %v5081_v14 = vld [vmem:[#allocation3 + $0x18] ss:$8 sps:$4 sm:$0xff]   ;;  %v2253_v20 = vrot.slane %v2251_v21, 5  ;;  %v2258_v16 = vrot.slane %v2256_v24, 4  ;;  %v2259_v34 = vshll.u32 %v2215_v4, 16  ;;  %v2265_v27 = vshll.u32 %v2216_v8, 16 }
 0x1a6   : > { %4844 = vmatpush3.bf16.msra.mxu0 %v5082_v18  ;;  %v2248_v17 = vor.u32 %v2247_v7, %v2244_v45  ;;  %v2217_v11 = vld [vmem:[#allocation3 + $0x18] sm:$0xf]  ;;  %3700 = vmatprep.mubr.bf16.mxu0 %v5081_v14  ;;  %v2364_v31 = vld [vmem:[#allocation3 + $0x14] sm:$0x1]  ;;  %v4369_v33 = vrot.slane %v2363_v9, 9  ;;  %v2279_v29 = vshll.u32 %v2218_v6, 16 }
 0x1a7   : > { %4845 = vmatprep.subr.bf16.mxu0 %v5085_v22  ;;  %v2270_v28 = vshrl.u32 %v2217_v11, 16  ;;  %v2273_v12 = vshll.u32 %v2217_v11, 16  ;;  %v2261_v32 = vrot.slane %v2259_v34, 5  ;;  %v2365_v30 = vld [vmem:[#allocation3 + $0x18] sm:$0xe]  ;;  %v2404_v43 = vrot.slane %v2364_v31, 5 }
 0x1a8   : > { %v2249_v37 = vrot.slane %v2248_v17, 4  ;;  %v5092_v44 = vld [vmem:[%s6198_s2 + $0x190] sm:$0xff]   ;;  %v2366_v49 = vld [vmem:[#allocation3 + $0x1c] sm:$0x1]  ;;  %v4370_v50 = vrot.slane %v2365_v30, 9  ;;  %v5089_v38 = vld [vmem:[%s6198_s2 + $0x100] sm:$0xff]  }
 0x1a9   : > { %v2272_v46 = vrot.slane %v2270_v28, 4  ;;  %v2275_v48 = vrot.slane %v2273_v12, 5  ;;  %v2875_v52 = vshll.u32 %v5933_v19, 16  ;;  %v5087_v39 = vld [vmem:[#allocation3] ss:$8 sps:$4 sm:$0xff]   ;;  %v2262_v56 = vor.u32 %v2261_v32, %v2258_v16  ;;  %v5095_v47 = vld [vmem:[%s6198_s2 + $0x1d8] sm:$0xff]  }
 0x1aa   : > { %4846 = vmatpush3.bf16.msra.mxu0 %v5086_v26  ;;  %v2254_v40 = vsel %vm5369_vm2, %v2249_v37, %v2253_v20  ;;  %v2405_v59 = vsel %vm5887_vm12, %v4369_v33, %v2404_v43  ;;  %v2408_v42 = vrot.slane %v2366_v49, 5  ;;  %v5093_v60 = vld [vmem:[%s6198_s2 + $0x148] sm:$0xff]   ;;  %v2267_v58 = vrot.slane %v2265_v27, 5  ;;  %v5096_v18 = vld [vmem:[%s6198_s2 + $0x198] sm:$0xff]   ;;  %v2219_v22 = vld [vmem:[#allocation3 + $0x20] sm:$0xf] }
 0x1ab   : > { %v4363_v61 = vcombine.low %v2240_v15, %v2254_v40  ;;  %v2276_v0 = vor.u32 %v2275_v48, %v2272_v46  ;;  %4847 = vmatprep.subr.bf16.mxu0 %v5090_v25  ;;  %v5959_v36 = vrot.slane %v2101_v10, 7  ;;  %v2263_v1 = vrot.slane %v2262_v56, 4  ;;  %v2166_v62 = vld [vmem:[#allocation3 + $0x3c] sm:$0x1]  ;;  %v5094_v4 = vld [vmem:[%s6198_s2 + $0x108] sm:$0xff]   ;;  %v5100_v20 = vld [vmem:[%s6198_s2 + $0x1e0] sm:$0xff]  }
 0x1ac   : > { %v2281_v2 = vrot.slane %v2279_v29, 5  ;;  %v2409_v51 = vsel %vm5887_vm12, %v4370_v50, %v2408_v42  ;;  %v2099_v23 = vrot.slane %v5901_v53, 4  ;;  %v2220_v8 = vld [vmem:[#allocation3 + $0x24] sm:$0x1]  ;;  %v2221_v9 = vld [vmem:[#allocation3 + $0x28] sm:$0xf] }
 0x1ad   : > { %3627 = vmatprep.mubr.bf16.mxu1 %v4363_v61  ;;  %v2277_v21 = vrot.slane %v2276_v0, 4  ;;  %v4376_v3 = vcombine.low %v2405_v59, %v2409_v51  ;;  %v2284_v13 = vshrl.u32 %v2219_v22, 16  ;;  %v2268_v10 = vsel %vm5369_vm2, %v2263_v1, %v2267_v58  ;;  %v5091_v26 = vld [vmem:[#allocation3 + $0x28] ss:$8 sps:$4 sm:$0xff]   ;;  %v2222_v45 = vld [vmem:[#allocation3 + $0x2c] sm:$0x1] }
 0x1ae   : > { %3628 = vmatmul.mubr.bf16.vlgmr.msra.gmra.mrb[32].mxu1 %v5087_v39  ;;  %4848 = vmatpush3.bf16.msra.mxu0 %v5092_v44  ;;  %v5098_v53 = vld [vmem:[%s6198_s2 + $0x150] sm:$0xff]   ;;  %v2287_v7 = vshll.u32 %v2219_v22, 16  ;;  %v2298_v6 = vshrl.u32 %v2221_v9, 16  ;;  %v2293_v14 = vshll.u32 %v2220_v8, 16  ;;  %v2301_v15 = vshll.u32 %v2221_v9, 16  ;;  %v5102_v28 = vld [vmem:[%s6198_s2 + $0x1a0] sm:$0xff]  }
 0x1af   : > { %v2282_v24 = vsel %vm5369_vm2, %v2277_v21, %v2281_v2  ;;  %3701 = vmatmul.mubr.bf16.gmra.mrb[44].mxu0 %v4376_v3  ;;  %4804 = vmatpush3.bf16.msra.mxu1 %v5089_v38  ;;  %v2286_v19 = vrot.slane %v2284_v13, 4  ;;  %v2367_v17 = vld [vmem:[#allocation3 + $0x20] sm:$0xe]  ;;  %v2307_v25 = vshll.u32 %v2222_v45, 16  ;;  %v2368_v27 = vld [vmem:[#allocation3 + $0x24] sm:$0x1]  ;;  %v2167_v29 = vsel %vm5634_vm6, %v2099_v23, %v2166_v62 }
 0x1b0   : > { %v4364_v11 = vcombine.low %v2268_v10, %v2282_v24  ;;  %3708 = vmatprep.mubr.bf16.mxu0 %v5091_v26  ;;  %4805 = vmatprep.subr.bf16.mxu1 %v5093_v60  ;;  %v2289_v16 = vrot.slane %v2287_v7, 5  ;;  %v2300_v34 = vrot.slane %v2298_v6, 4  ;;  %v2172_v12 = vld [vmem:[#allocation3 + $0x44] sm:$0x1]  ;;  %v2303_v31 = vrot.slane %v2301_v15, 5  ;;  %v5099_v32 = vld [vmem:[%s6198_s2 + $0x110] sm:$0xff]  }
 0x1b1   : > { %4849 = vmatprep.subr.bf16.mxu0 %v5095_v47  ;;  %v2369_v33 = vld [vmem:[#allocation3 + $0x28] sm:$0xe]  ;;  %v2370_v37 = vld [vmem:[#allocation3 + $0x2c] sm:$0x1]  ;;  %v5988_v30 = vrot.slane %v2875_v52, 5  ;;  %v4371_v46 = vrot.slane %v2367_v17, 9 }
 0x1b2   : > { %3635 = vmatprep.mubr.bf16.mxu1 %v4364_v11  ;;  %4850 = vmatpush3.bf16.msra.mxu0 %v5096_v18  ;;  %v5097_v43 = vld [vmem:[#allocation3 + $0x10] ss:$8 sps:$4 sm:$0xff]   ;;  %v2290_v44 = vor.u32 %v2289_v16, %v2286_v19  ;;  %v2412_v48 = vrot.slane %v2368_v27, 5  ;;  %v4372_v49 = vrot.slane %v2369_v33, 9  ;;  %v2169_v50 = vld [vmem:[#allocation3 + $0x40] sm:$0xf]  ;;  %v2304_v40 = vor.u32 %v2303_v31, %v2300_v34 }
 0x1b3   : > { %v5103_v38 = vld [vmem:[%s6198_s2 + $0x158] sm:$0xff]   ;;  %2168 = vst [vmem:[#allocation3 + $0x3c] sm:$0x1] %v2167_v29  ;;  %4806 = vmatpush3.bf16.msra.mxu1 %v5094_v4  ;;  %v2416_v39 = vrot.slane %v2370_v37, 5  ;;  %4851 = vmatprep.subr.bf16.mxu0 %v5100_v20  ;;  %v2104_v52 = vshll.u32 %v5916_v63, 16  ;;  %v2107_v56 = vrot.slane %v5959_v36, 4  ;;  %v2872_v34 = vor.u32 %v5906_v57, %v5856_v35 }
 0x1b4   : > { %v5105_v59 = vld [vmem:[%s6198_s2 + $0x1e8] sm:$0xff]   ;;  %4807 = vmatprep.subr.bf16.mxu1 %v5098_v53  ;;  %v2291_v42 = vrot.slane %v2290_v44, 4  ;;  %v2295_v60 = vrot.slane %v2293_v14, 5  ;;  %v2309_v61 = vrot.slane %v2307_v25, 5  ;;  %v2413_v58 = vsel %vm5887_vm12, %v4371_v46, %v2412_v48  ;;  %v5104_v2 = vld [vmem:[%s6198_s2 + $0x118] sm:$0xff]   ;;  %v5110_v22 = vld [vmem:[%s6198_s2 + $0x1f0] sm:$0xff]  }
 0x1b5   : > { %v5106_v0 = vld [vmem:[%s6198_s2 + $0x1a8] sm:$0xff]   ;;  %v2305_v47 = vrot.slane %v2304_v40, 4  ;;  %v2417_v63 = vsel %vm5887_vm12, %v4372_v49, %v2416_v39  ;;  %v2106_v1 = vor.u32 %v2104_v52, %v5959_v36  ;;  %v2223_v51 = vld [vmem:[#allocation3 + $0x30] sm:$0xf]  ;;  %v2224_v18 = vld [vmem:[#allocation3 + $0x34] sm:$0x1]  ;;  %v2173_v23 = vsel %vm5634_vm6, %v2107_v56, %v2172_v12 }
 0x1b6   : > { %3636 = vmatmul.mubr.bf16.gmra.mrb[36].mxu1 %v5097_v43  ;;  %v2296_v62 = vsel %vm5369_vm2, %v2291_v42, %v2295_v60  ;;  %v4377_v21 = vcombine.low %v2413_v58, %v2417_v63  ;;  %4852 = vmatpush3.bf16.msra.mxu0 %v5102_v28  ;;  %v5108_v36 = vld [vmem:[%s6198_s2 + $0x160] sm:$0xff]   ;;  %v2225_v3 = vld [vmem:[#allocation3 + $0x38] sm:$0xf]  ;;  %v2312_v4 = vshrl.u32 %v2223_v51, 16  ;;  %v2315_v8 = vshll.u32 %v2223_v51, 16  ;;  %v5111_v14 = vld [vmem:[%s6198_s2 + $0x1b0] sm:$0xff]  }
 0x1b7   : > { %v2371_v9 = vld [vmem:[#allocation3 + $0x30] sm:$0xe]  ;;  %2174 = vst [vmem:[#allocation3 + $0x44] sm:$0x1] %v2173_v23  ;;  %v2310_v13 = vsel %vm5369_vm2, %v2305_v47, %v2309_v61  ;;  %4808 = vmatpush3.bf16.msra.mxu1 %v5099_v32  ;;  %v2170_v5 = vsel %vm5863_vm11, %v2106_v1, %v2169_v50  ;;  %4853 = vmatprep.subr.bf16.mxu0 %v5105_v59  ;;  %v2321_v10 = vshll.u32 %v2224_v18, 16  ;;  %v2326_v26 = vshrl.u32 %v2225_v3, 16 }
 0x1b8   : > { %v2372_v53 = vld [vmem:[#allocation3 + $0x34] sm:$0x1]  ;;  %v2373_v45 = vld [vmem:[#allocation3 + $0x38] sm:$0xe]  ;;  %v4365_v7 = vcombine.low %v2296_v62, %v2310_v13  ;;  %3709 = vmatmul.mubr.bf16.gmra.mrb[48].mxu0 %v4377_v21  ;;  %2171 = vst [vmem:[#allocation3 + $0x40] sm:$0xf] %v2170_v5  ;;  %4809 = vmatprep.subr.bf16.mxu1 %v5103_v38 }
 0x1b9   : > { %v2314_v6 = vrot.slane %v2312_v4, 4  ;;  %v2317_v24 = vrot.slane %v2315_v8, 5  ;;  %v2329_v19 = vshll.u32 %v2225_v3, 16  ;;  %v2751_v15 = vld [vmem:[#allocation3 + $0x10] sm:$0xf]  ;;  %v2323_v55 = vrot.slane %v2321_v10, 5 }
 0x1ba   : > { %v2226_v17 = vld [vmem:[#allocation3 + $0x3c] sm:$0x1]  ;;  %v2328_v20 = vrot.slane %v2326_v26, 4  ;;  %v5109_v16 = vld [vmem:[%s6198_s2 + $0x120] sm:$0xff]   ;;  %3643 = vmatprep.mubr.bf16.mxu1 %v4365_v7  ;;  %4854 = vmatpush3.bf16.msra.mxu0 %v5106_v0  ;;  %v4373_v31 = vrot.slane %v2371_v9, 9  ;;  %v5112_v33 = vld [vmem:[%s6198_s2 + $0x168] sm:$0xff]  }
 0x1bb   : > { %v2374_v11 = vld [vmem:[#allocation3 + $0x3c] sm:$0x1]  ;;  %v5107_v25 = vld [vmem:[#allocation3 + $0x20] ss:$8 sps:$4 sm:$0xff]   ;;  %v2318_v27 = vor.u32 %v2317_v24, %v2314_v6  ;;  %v2331_v28 = vrot.slane %v2329_v19, 5  ;;  %v2335_v12 = vshll.u32 %v2226_v17, 16  ;;  %4810 = vmatpush3.bf16.msra.mxu1 %v5104_v2  ;;  %4855 = vmatprep.subr.bf16.mxu0 %v5110_v22 }
 0x1bc   : > { %v5114_v37 = vld [vmem:[%s6198_s2 + $0x1f8] sm:$0xff]   ;;  %v2420_v32 = vrot.slane %v2372_v53, 5  ;;  %v4374_v29 = vrot.slane %v2373_v45, 9  ;;  %v2424_v43 = vrot.slane %v2374_v11, 5  ;;  %v2752_v35 = vld [vmem:[#allocation3 + $0x14] sm:$0x1]  ;;  %4811 = vmatprep.subr.bf16.mxu1 %v5108_v36 }
 0x1bd   : > { %v2768_v57 = vshrl.u32 %v2751_v15, 16  ;;  %v2319_v44 = vrot.slane %v2318_v27, 4  ;;  %v2332_v46 = vor.u32 %v2331_v28, %v2328_v20  ;;  %v2753_v48 = vld [vmem:[#allocation3 + $0x18] sm:$0xf]  ;;  %v2754_v49 = vld [vmem:[#allocation3 + $0x1c] sm:$0x1] }
 0x1be   : > { %v2771_v50 = vshll.u32 %v2751_v15, 16  ;;  %v2337_v38 = vrot.slane %v2335_v12, 5  ;;  %v2421_v40 = vsel %vm5887_vm12, %v4373_v31, %v2420_v32  ;;  %v2425_v39 = vsel %vm5887_vm12, %v4374_v29, %v2424_v43  ;;  %v5113_v56 = vld [vmem:[%s6198_s2 + $0x128] sm:$0xff]   ;;  %3644 = vmatmul.mubr.bf16.gmra.mrb[40].mxu1 %v5107_v25  ;;  %4856 = vmatpush3.bf16.msra.mxu0 %v5111_v14  ;;  %v5115_v58 = vld [vmem:[%s6198_s2 + $0x1b8] sm:$0xff]   ;;  %v5117_v0 = vld [vmem:[%s6198_s2 + $0x170] sm:$0xff]  }
 0x1bf   : > { %v2770_v52 = vrot.slane %v2768_v57, 4  ;;  %v2324_v59 = vsel %vm5369_vm2, %v2319_v44, %v2323_v55  ;;  %v2333_v42 = vrot.slane %v2332_v46, 4  ;;  %v2777_v61 = vshll.u32 %v2752_v35, 16  ;;  %v2630_v47 = vld [vmem:[#allocation3 + $0x8] sm:$0xe]  ;;  %4812 = vmatpush3.bf16.msra.mxu1 %v5109_v16  ;;  %4857 = vmatprep.subr.bf16.mxu0 %v5114_v37  ;;  %v5118_v8 = vld [vmem:[%s6198_s2 + $0x130] sm:$0xff]  }
 0x1c0   : > { %v2773_v60 = vrot.slane %v2771_v50, 5  ;;  %v5101_v63 = vld [vmem:[#allocation3 + $0x38] ss:$8 sps:$4 sm:$0xff]   ;;  %v4378_v1 = vcombine.low %v2421_v40, %v2425_v39  ;;  %v2782_v2 = vshrl.u32 %v2753_v48, 16  ;;  %v6052_v51 = vrot.slane %v2872_v34, 4  ;;  %4813 = vmatprep.subr.bf16.mxu1 %v5112_v33 }
 0x1c1   : > { %v2338_v18 = vsel %vm5369_vm2, %v2333_v42, %v2337_v38  ;;  %v2785_v23 = vshll.u32 %v2753_v48, 16  ;;  %v2791_v62 = vshll.u32 %v2754_v49, 16  ;;  %v2631_v21 = vld [vmem:[#allocation3 + $0xc] sm:$0x1]  ;;  %v2632_v36 = vld [vmem:[#allocation3 + $0x10] sm:$0xe]  ;;  %3716 = vmatprep.mubr.bf16.mxu0 %v5101_v63 }
 0x1c2   : > { %v2774_v22 = vor.u32 %v2773_v60, %v2770_v52  ;;  %v4366_v3 = vcombine.low %v2324_v59, %v2338_v18  ;;  %v2784_v4 = vrot.slane %v2782_v2, 4  ;;  %v2633_v9 = vld [vmem:[#allocation3 + $0x14] sm:$0x1]  ;;  %v4387_v13 = vrot.slane %v2630_v47, 9  ;;  %3717 = vmatmul.mubr.bf16.gmra.mrb[52].mxu0 %v4378_v1  ;;  %v5120_v7 = vld [vmem:[%s6198_s2 + $0x178] sm:$0xff]   ;;  %v6074_v43 = vld [vmem:[%s6198_s2 + $0x200] sm:$0xff]  }
 0x1c3   : > { %v2664_v5 = vrot.slane %v2631_v21, 5  ;;  %v2779_v26 = vrot.slane %v2777_v61, 5  ;;  %v2787_v53 = vrot.slane %v2785_v23, 5  ;;  %v4388_v45 = vrot.slane %v2632_v36, 9  ;;  %4814 = vmatpush3.bf16.msra.mxu1 %v5113_v56  ;;  %v5116_v24 = vld [vmem:[#allocation3 + $0x30] ss:$8 sps:$4 sm:$0xff]   ;;  %4858 = vmatpush3.bf16.msra.mxu0 %v5115_v58 }
 0x1c4   : > { %v2775_v10 = vrot.slane %v2774_v22, 4  ;;  %3651 = vmatprep.mubr.bf16.mxu1 %v4366_v3  ;;  %v2793_v6 = vrot.slane %v2791_v62, 5  ;;  %v2668_v14 = vrot.slane %v2633_v9, 5  ;;  %4815 = vmatprep.subr.bf16.mxu1 %v5117_v0  ;;  %v2755_v55 = vld [vmem:[#allocation3 + $0x20] sm:$0xf]  ;;  %v5121_v12 = vld [vmem:[%s6198_s2 + $0x138] sm:$0xff]  }
 0x1c5   : > { %v2665_v19 = vsel %vm5887_vm12, %v4387_v13, %v2664_v5  ;;  %v2788_v17 = vor.u32 %v2787_v53, %v2784_v4  ;;  %v2756_v20 = vld [vmem:[#allocation3 + $0x24] sm:$0x1]  ;;  %v2757_v11 = vld [vmem:[#allocation3 + $0x28] sm:$0xf]  ;;  %v2758_v34 = vld [vmem:[#allocation3 + $0x2c] sm:$0x1] }
 0x1c6   : > { %v2780_v15 = vsel %vm5369_vm2, %v2775_v10, %v2779_v26  ;;  %v2669_v16 = vsel %vm5887_vm12, %v4388_v45, %v2668_v14  ;;  %v2796_v25 = vshrl.u32 %v2755_v55, 16  ;;  %v2799_v27 = vshll.u32 %v2755_v55, 16  ;;  %3652 = vmatmul.mubr.bf16.gmra.mrb[44].mxu1 %v5116_v24  ;;  %v2482_v29 = vld [vmem:[#allocation3 + $0x8] sm:$0xf]  ;;  %v2483_v48 = vld [vmem:[#allocation3 + $0xc] sm:$0x1] }
 0x1c7   : > { %v2805_v28 = vshll.u32 %v2756_v20, 16  ;;  %v2789_v31 = vrot.slane %v2788_v17, 4  ;;  %v4395_v33 = vcombine.low %v2665_v19, %v2669_v16  ;;  %v2810_v37 = vshrl.u32 %v2757_v11, 16  ;;  %4816 = vmatpush3.bf16.msra.mxu1 %v5118_v8  ;;  %v5119_v50 = vld [vmem:[#allocation3 + $0x10] ss:$8 sps:$4 sm:$0xff]  }
 0x1c8   : > { %v2813_v32 = vshll.u32 %v2757_v11, 16  ;;  %v2798_v35 = vrot.slane %v2796_v25, 4  ;;  %v2801_v57 = vrot.slane %v2799_v27, 5  ;;  %v2819_v46 = vshll.u32 %v2758_v34, 16  ;;  %4817 = vmatprep.subr.bf16.mxu1 %v5120_v7  ;;  %v2484_v39 = vld [vmem:[#allocation3 + $0x10] sm:$0xf] }
 0x1c9   : > { %v2807_v44 = vrot.slane %v2805_v28, 5  ;;  %v2794_v49 = vsel %vm5369_vm2, %v2789_v31, %v2793_v6  ;;  %3757 = vmatprep.mubr.bf16.mxu1 %v4395_v33  ;;  %v2812_v38 = vrot.slane %v2810_v37, 4  ;;  %v2485_v52 = vld [vmem:[#allocation3 + $0x14] sm:$0x1]  ;;  %v2499_v60 = vshrl.u32 %v2482_v29, 16 }
 0x1ca   : > { %v2815_v40 = vrot.slane %v2813_v32, 5  ;;  %v4403_v56 = vcombine.low %v2780_v15, %v2794_v49  ;;  %v2802_v59 = vor.u32 %v2801_v57, %v2798_v35  ;;  %v2821_v42 = vrot.slane %v2819_v46, 5  ;;  %v2634_v61 = vld [vmem:[#allocation3 + $0x18] sm:$0xe]  ;;  %v2635_v58 = vld [vmem:[#allocation3 + $0x1c] sm:$0x1] }
 0x1cb   : > { %v2502_v47 = vshll.u32 %v2482_v29, 16  ;;  %v2508_v63 = vshll.u32 %v2483_v48, 16  ;;  %v2513_v1 = vshrl.u32 %v2484_v39, 16  ;;  %v2636_v2 = vld [vmem:[#allocation3 + $0x20] sm:$0xe]  ;;  %4818 = vmatpush3.bf16.msra.mxu1 %v5121_v12  ;;  %v2501_v22 = vrot.slane %v2499_v60, 4 }
 0x1cc   : > { %v2816_v0 = vor.u32 %v2815_v40, %v2812_v38  ;;  %3822 = vmatprep.mubr.bf16.mxu0 %v4403_v56  ;;  %v2803_v18 = vrot.slane %v2802_v59, 4  ;;  %v2516_v23 = vshll.u32 %v2484_v39, 16  ;;  %v2522_v62 = vshll.u32 %v2485_v52, 16  ;;  %v2637_v21 = vld [vmem:[#allocation3 + $0x24] sm:$0x1]  ;;  %4919 = vmatprep.subr.bf16.mxu1 %v6074_v43  ;;  %v5124_v40 = vld [vmem:[%s6198_s2 + $0x208] sm:$0xff]  }
 0x1cd   : > { %3823 = vmatmul.mubr.bf16.vlgmr.msra.gmra.mrb[56].mxu0 %v5119_v50  ;;  %v2504_v3 = vrot.slane %v2502_v47, 5  ;;  %v2510_v4 = vrot.slane %v2508_v63, 5  ;;  %v2515_v8 = vrot.slane %v2513_v1, 4  ;;  %v4389_v10 = vrot.slane %v2634_v61, 9  ;;  %v2759_v6 = vld [vmem:[#allocation3 + $0x30] sm:$0xf] }
 0x1ce   : > { %v2817_v36 = vrot.slane %v2816_v0, 4  ;;  %v2808_v9 = vsel %vm5369_vm2, %v2803_v18, %v2807_v44  ;;  %v2518_v13 = vrot.slane %v2516_v23, 5  ;;  %v2524_v5 = vrot.slane %v2522_v62, 5  ;;  %v2760_v15 = vld [vmem:[#allocation3 + $0x34] sm:$0x1] }
 0x1cf   : > { %v2505_v53 = vor.u32 %v2504_v3, %v2501_v22  ;;  %v2672_v45 = vrot.slane %v2635_v58, 5  ;;  %v4390_v7 = vrot.slane %v2636_v2, 9  ;;  %v2676_v14 = vrot.slane %v2637_v21, 5  ;;  %v2761_v17 = vld [vmem:[#allocation3 + $0x38] sm:$0xf] }
 0x1d0   : > { %v2822_v26 = vsel %vm5369_vm2, %v2817_v36, %v2821_v42  ;;  %v2519_v19 = vor.u32 %v2518_v13, %v2515_v8  ;;  %v2824_v55 = vshrl.u32 %v2759_v6, 16  ;;  %v5123_v16 = vld [vmem:[#allocation3 + $0x20] ss:$8 sps:$4 sm:$0xff]   ;;  %v2762_v34 = vld [vmem:[#allocation3 + $0x3c] sm:$0x1]  ;;  %v2827_v25 = vshll.u32 %v2759_v6, 16 }
 0x1d1   : > { %v4404_v24 = vcombine.low %v2808_v9, %v2822_v26  ;;  %v2506_v20 = vrot.slane %v2505_v53, 4  ;;  %v2673_v11 = vsel %vm5887_vm12, %v4389_v10, %v2672_v45  ;;  %v2833_v27 = vshll.u32 %v2760_v15, 16  ;;  %v2486_v37 = vld [vmem:[#allocation3 + $0x18] sm:$0xf]  ;;  %v2487_v44 = vld [vmem:[#allocation3 + $0x1c] sm:$0x1] }
 0x1d2   : > { %v2520_v28 = vrot.slane %v2519_v19, 4  ;;  %v2677_v12 = vsel %vm5887_vm12, %v4390_v7, %v2676_v14  ;;  %v2826_v31 = vrot.slane %v2824_v55, 4  ;;  %v2838_v33 = vshrl.u32 %v2761_v17, 16  ;;  %v2488_v46 = vld [vmem:[#allocation3 + $0x20] sm:$0xf] }
 0x1d3   : > { %3830 = vmatprep.mubr.bf16.mxu0 %v4404_v24  ;;  %v2511_v32 = vsel %vm5369_vm2, %v2506_v20, %v2510_v4  ;;  %v4396_v29 = vcombine.low %v2673_v11, %v2677_v12  ;;  %v2829_v35 = vrot.slane %v2827_v25, 5  ;;  %v2835_v57 = vrot.slane %v2833_v27, 5  ;;  %v2489_v39 = vld [vmem:[#allocation3 + $0x24] sm:$0x1]  ;;  %v2638_v60 = vld [vmem:[#allocation3 + $0x28] sm:$0xe] }
 0x1d4   : > { %v2525_v48 = vsel %vm5369_vm2, %v2520_v28, %v2524_v5  ;;  %v2840_v49 = vrot.slane %v2838_v33, 4  ;;  %v2841_v50 = vshll.u32 %v2761_v17, 16  ;;  %v2847_v38 = vshll.u32 %v2762_v34, 16  ;;  %v2639_v61 = vld [vmem:[#allocation3 + $0x2c] sm:$0x1]  ;;  %v5125_v5 = vld [vmem:[%s6198_s2 + $0x210] sm:$0xff]  }
 0x1d5   : > { %v4383_v52 = vcombine.low %v2511_v32, %v2525_v48  ;;  %3831 = vmatmul.mubr.bf16.gmra.mrb[60].mxu0 %v5123_v16  ;;  %v2830_v56 = vor.u32 %v2829_v35, %v2826_v31  ;;  %v2527_v59 = vshrl.u32 %v2486_v37, 16  ;;  %v2530_v42 = vshll.u32 %v2486_v37, 16  ;;  %v2640_v1 = vld [vmem:[#allocation3 + $0x30] sm:$0xe]  ;;  %v2641_v62 = vld [vmem:[#allocation3 + $0x34] sm:$0x1] }
 0x1d6   : > { %v2843_v58 = vrot.slane %v2841_v50, 5  ;;  %v2849_v0 = vrot.slane %v2847_v38, 5  ;;  %v2536_v47 = vshll.u32 %v2487_v44, 16  ;;  %v2541_v63 = vshrl.u32 %v2488_v46, 16  ;;  %v2764_v14 = vld [vmem:[#allocation3 + $0x44] sm:$0x1] }
 0x1d7   : > { %3758 = vmatmul.mubr.bf16.vlgmr.msra.gmra.mrb[48].mxu1 %v4383_v52  ;;  %v2831_v2 = vrot.slane %v2830_v56, 4  ;;  %v2529_v18 = vrot.slane %v2527_v59, 4  ;;  %v2532_v22 = vrot.slane %v2530_v42, 5  ;;  %v2544_v23 = vshll.u32 %v2488_v46, 16  ;;  %v2490_v16 = vld [vmem:[#allocation3 + $0x28] sm:$0xf] }
 0x1d8   : > { %3765 = vmatprep.mubr.bf16.mxu1 %v4396_v29  ;;  %4920 = vmatpush3.bf16.msra.mxu1 %v6074_v43  ;;  %v2844_v21 = vor.u32 %v2843_v58, %v2840_v49  ;;  %v2538_v36 = vrot.slane %v2536_v47, 5  ;;  %v2543_v3 = vrot.slane %v2541_v63, 4  ;;  %v2550_v4 = vshll.u32 %v2489_v39, 16  ;;  %v2763_v43 = vld [vmem:[#allocation3 + $0x40] sm:$0xf]  ;;  %v5127_v33 = vld [vmem:[%s6198_s2 + $0x218] sm:$0xff]  }
 0x1d9   : > { %v2836_v8 = vsel %vm5369_vm2, %v2831_v2, %v2835_v57  ;;  %4921 = vmatprep.subr.bf16.mxu1 %v5124_v40  ;;  %v2533_v9 = vor.u32 %v2532_v22, %v2529_v18  ;;  %v2546_v13 = vrot.slane %v2544_v23, 5  ;;  %v4391_v10 = vrot.slane %v2638_v60, 9  ;;  %v2491_v34 = vld [vmem:[#allocation3 + $0x2c] sm:$0x1]  ;;  %v5126_v31 = vld [vmem:[#allocation3 + $0x30] ss:$8 sps:$4 sm:$0xff]  }
 0x1da   : > { %v2845_v26 = vrot.slane %v2844_v21, 4  ;;  %v2552_v53 = vrot.slane %v2550_v4, 5  ;;  %v2680_v45 = vrot.slane %v2639_v61, 5  ;;  %v4392_v7 = vrot.slane %v2640_v1, 9  ;;  %v2492_v37 = vld [vmem:[#allocation3 + $0x30] sm:$0xf] }
 0x1db   : > { %v2534_v6 = vrot.slane %v2533_v9, 4  ;;  %v2547_v24 = vor.u32 %v2546_v13, %v2543_v3  ;;  %v2684_v19 = vrot.slane %v2641_v62, 5  ;;  %v2852_v15 = vshrl.u32 %v2763_v43, 16  ;;  %v2493_v44 = vld [vmem:[#allocation3 + $0x34] sm:$0x1] }
 0x1dc   : > { %v2850_v17 = vsel %vm5369_vm2, %v2845_v26, %v2849_v0  ;;  %4922 = vmatpush3.bf16.msra.mxu1 %v5124_v40  ;;  %v2681_v55 = vsel %vm5887_vm12, %v4391_v10, %v2680_v45  ;;  %v2855_v20 = vshll.u32 %v2763_v43, 16  ;;  %v2861_v11 = vshll.u32 %v2764_v14, 16  ;;  %v2642_v46 = vld [vmem:[#allocation3 + $0x38] sm:$0xe]  ;;  %v5128_v40 = vld [vmem:[%s6198_s2 + $0x220] sm:$0xff]  }
 0x1dd   : > { %v4405_v25 = vcombine.low %v2836_v8, %v2850_v17  ;;  %v2539_v27 = vsel %vm5369_vm2, %v2534_v6, %v2538_v36  ;;  %v2548_v28 = vrot.slane %v2547_v24, 4  ;;  %4923 = vmatprep.subr.bf16.mxu1 %v5125_v5  ;;  %v2685_v12 = vsel %vm5887_vm12, %v4392_v7, %v2684_v19  ;;  %v2643_v39 = vld [vmem:[#allocation3 + $0x3c] sm:$0x1]  ;;  %v2645_v42 = vld [vmem:[#allocation3 + $0x44] sm:$0x1]  ;;  %v5130_v8 = vld [vmem:[%s6198_s2 + $0x228] sm:$0xff]  }
 0x1de   : > { %v4397_v32 = vcombine.low %v2681_v55, %v2685_v12  ;;  %v2854_v29 = vrot.slane %v2852_v15, 4  ;;  %v2857_v35 = vrot.slane %v2855_v20, 5  ;;  %v2878_v57 = vsel %vm5369_vm2, %v6052_v51, %v5988_v30  ;;  %v2644_v51 = vld [vmem:[#allocation3 + $0x40] sm:$0xe]  ;;  %v2494_v21 = vld [vmem:[#allocation3 + $0x38] sm:$0xf] }
 0x1df   : > { %3838 = vmatprep.mubr.bf16.mxu0 %v4405_v25  ;;  %v2553_v48 = vsel %vm5369_vm2, %v2548_v28, %v2552_v53  ;;  %v2555_v49 = vshrl.u32 %v2490_v16, 16  ;;  %v2558_v50 = vshll.u32 %v2490_v16, 16  ;;  %v2564_v38 = vshll.u32 %v2491_v34, 16  ;;  %v2496_v9 = vld [vmem:[#allocation3 + $0x40] sm:$0xf] }
 0x1e0   : > { %v4384_v52 = vcombine.low %v2539_v27, %v2553_v48  ;;  %3839 = vmatmul.mubr.bf16.gmra.mrb[64].mxu0 %v5126_v31  ;;  %4924 = vmatpush3.bf16.msra.mxu1 %v5125_v5  ;;  %v2858_v56 = vor.u32 %v2857_v35, %v2854_v29  ;;  %v2569_v59 = vshrl.u32 %v2492_v37, 16  ;;  %v2572_v30 = vshll.u32 %v2492_v37, 16  ;;  %v5129_v26 = vld [vmem:[#allocation3 + $0x40] ss:$8 sps:$4 sm:$0xff]   ;;  %v2495_v53 = vld [vmem:[#allocation3 + $0x3c] sm:$0x1] }
 0x1e1   : > { %v2863_v60 = vrot.slane %v2861_v11, 5  ;;  %4925 = vmatprep.subr.bf16.mxu1 %v5127_v33  ;;  %v2557_v61 = vrot.slane %v2555_v49, 4  ;;  %v2560_v58 = vrot.slane %v2558_v50, 5  ;;  %v2578_v0 = vshll.u32 %v2493_v44, 16  ;;  %v2497_v24 = vld [vmem:[#allocation3 + $0x44] sm:$0x1] }
 0x1e2   : > { %3766 = vmatmul.mubr.bf16.gmra.mrb[52].mxu1 %v4384_v52  ;;  %v2859_v47 = vrot.slane %v2858_v56, 4  ;;  %v2571_v63 = vrot.slane %v2569_v59, 4  ;;  %v2574_v1 = vrot.slane %v2572_v30, 5  ;;  %v4393_v2 = vrot.slane %v2642_v46, 9  ;;  %v2899_v20 = vld [vmem:[#allocation3 + $0x10] sm:$0xe] }
 0x1e3   : > { %3773 = vmatprep.mubr.bf16.mxu1 %v4397_v32  ;;  %v2561_v18 = vor.u32 %v2560_v58, %v2557_v61  ;;  %v2566_v22 = vrot.slane %v2564_v38, 5  ;;  %v2688_v23 = vrot.slane %v2643_v39, 5  ;;  %v4394_v62 = vrot.slane %v2644_v51, 9  ;;  %v2900_v11 = vld [vmem:[#allocation3 + $0x14] sm:$0x1] }
 0x1e4   : > { %v2864_v36 = vsel %vm5369_vm2, %v2859_v47, %v2863_v60  ;;  %4926 = vmatpush3.bf16.msra.mxu1 %v5127_v33  ;;  %v2575_v3 = vor.u32 %v2574_v1, %v2571_v63  ;;  %v2692_v4 = vrot.slane %v2645_v42, 5  ;;  %v2583_v13 = vshrl.u32 %v2494_v21, 16  ;;  %v2901_v27 = vld [vmem:[#allocation3 + $0x18] sm:$0xe]  ;;  %v2902_v28 = vld [vmem:[#allocation3 + $0x1c] sm:$0x1] }
 0x1e5   : > { %v4406_v5 = vcombine.low %v2864_v36, %v2878_v57  ;;  %v2562_v10 = vrot.slane %v2561_v18, 4  ;;  %4927 = vmatprep.subr.bf16.mxu1 %v5128_v40  ;;  %v2586_v45 = vshll.u32 %v2494_v21, 16  ;;  %v2580_v43 = vrot.slane %v2578_v0, 5  ;;  %v5131_v37 = vld [vmem:[%s6198_s2 + $0x230] sm:$0xff]   ;;  %v2903_v59 = vld [vmem:[#allocation3 + $0x20] sm:$0xe] }
 0x1e6   : > { %v2576_v7 = vrot.slane %v2575_v3, 4  ;;  %v2689_v6 = vsel %vm5887_vm12, %v4393_v2, %v2688_v23  ;;  %v2585_v19 = vrot.slane %v2583_v13, 4  ;;  %v2693_v15 = vsel %vm5887_vm12, %v4394_v62, %v2692_v4  ;;  %v2904_v30 = vld [vmem:[#allocation3 + $0x24] sm:$0x1]  ;;  %v2905_v60 = vld [vmem:[#allocation3 + $0x28] sm:$0xe] }
 0x1e7   : > { %3846 = vmatprep.mubr.bf16.mxu0 %v4406_v5  ;;  %v2567_v14 = vsel %vm5369_vm2, %v2562_v10, %v2566_v22  ;;  %v2588_v17 = vrot.slane %v2586_v45, 5  ;;  %v2597_v55 = vshrl.u32 %v2496_v9, 16  ;;  %v2592_v34 = vshll.u32 %v2495_v53, 16  ;;  %v2906_v61 = vld [vmem:[#allocation3 + $0x2c] sm:$0x1] }
 0x1e8   : > { %v2581_v16 = vsel %vm5369_vm2, %v2576_v7, %v2580_v43  ;;  %3847 = vmatmul.mubr.bf16.gmra.mrb[68].mxu0 %v5129_v26  ;;  %4928 = vmatpush3.bf16.msra.mxu1 %v5128_v40  ;;  %v2600_v25 = vshll.u32 %v2496_v9, 16  ;;  %v4398_v32 = vcombine.low %v2689_v6, %v2693_v15  ;;  %v2606_v35 = vshll.u32 %v2497_v24, 16  ;;  %v5132_v40 = vld [vmem:[%s6198_s2 + $0x238] sm:$0xff]   ;;  %v2907_v58 = vld [vmem:[#allocation3 + $0x30] sm:$0xe] }
 0x1e9   : > { %v4385_v12 = vcombine.low %v2567_v14, %v2581_v16  ;;  %4929 = vmatprep.subr.bf16.mxu1 %v5130_v8  ;;  %v2589_v31 = vor.u32 %v2588_v17, %v2585_v19  ;;  %v2599_v33 = vrot.slane %v2597_v55, 4  ;;  %v4407_v57 = vrot.slane %v2899_v20, 9  ;;  %v2908_v47 = vld [vmem:[#allocation3 + $0x34] sm:$0x1]  ;;  %v2909_v63 = vld [vmem:[#allocation3 + $0x38] sm:$0xe] }
 0x1ea   : > { %v2602_v29 = vrot.slane %v2600_v25, 5  ;;  %v2933_v46 = vrot.slane %v2900_v11, 5  ;;  %v4408_v48 = vrot.slane %v2901_v27, 9  ;;  %v2937_v49 = vrot.slane %v2902_v28, 5  ;;  %v2910_v1 = vld [vmem:[#allocation3 + $0x3c] sm:$0x1] }
 0x1eb   : > { %3774 = vmatmul.mubr.bf16.gmra.mrb[56].mxu1 %v4385_v12  ;;  %v2590_v44 = vrot.slane %v2589_v31, 4  ;;  %v2594_v50 = vrot.slane %v2592_v34, 5  ;;  %v2608_v56 = vrot.slane %v2606_v35, 5  ;;  %v4409_v18 = vrot.slane %v2903_v59, 9  ;;  %v2913_v13 = vld [vmem:[#allocation3 + $0x48] sm:$0xe] }
 0x1ec   : > { %3781 = vmatprep.mubr.bf16.mxu1 %v4398_v32  ;;  %4930 = vmatpush3.bf16.msra.mxu1 %v5130_v8  ;;  %v2603_v38 = vor.u32 %v2602_v29, %v2599_v33  ;;  %v2934_v51 = vsel %vm5887_vm12, %v4407_v57, %v2933_v46  ;;  %v2938_v42 = vsel %vm5887_vm12, %v4408_v48, %v2937_v49  ;;  %v2941_v23 = vrot.slane %v2904_v30, 5  ;;  %v2911_v26 = vld [vmem:[#allocation3 + $0x40] sm:$0xe]  ;;  %v2912_v53 = vld [vmem:[#allocation3 + $0x44] sm:$0x1] }
 0x1ed   : > { %4931 = vmatprep.subr.bf16.mxu1 %v5131_v37  ;;  %v2595_v39 = vsel %vm5369_vm2, %v2590_v44, %v2594_v50  ;;  %v4415_v22 = vcombine.low %v2934_v51, %v2938_v42  ;;  %v4410_v62 = vrot.slane %v2905_v60, 9  ;;  %v2945_v21 = vrot.slane %v2906_v61, 5  ;;  %v2914_v45 = vld [vmem:[#allocation3 + $0x4c] sm:$0x1] }
 0x1ee   : > { %v2604_v52 = vrot.slane %v2603_v38, 4  ;;  %v4411_v36 = vrot.slane %v2907_v58, 9  ;;  %v2949_v3 = vrot.slane %v2908_v47, 5  ;;  %v4412_v4 = vrot.slane %v2909_v63, 9 }
 0x1ef   : > { %v2953_v8 = vrot.slane %v2910_v1, 5  ;;  %v2942_v54 = vsel %vm5887_vm12, %v4409_v18, %v2941_v23  ;;  %v2946_v9 = vsel %vm5887_vm12, %v4410_v62, %v2945_v21  ;;  %v4414_v43 = vrot.slane %v2913_v13, 9 }
 0x1f0   : > { %v2609_v0 = vsel %vm5369_vm2, %v2604_v52, %v2608_v56  ;;  %4932 = vmatpush3.bf16.msra.mxu1 %v5131_v37  ;;  %v2950_v5 = vsel %vm5887_vm12, %v4411_v36, %v2949_v3  ;;  %v4416_v7 = vcombine.low %v2942_v54, %v2946_v9  ;;  %v4413_v24 = vrot.slane %v2911_v26, 9 }
 0x1f1   : > { %v4386_v2 = vcombine.low %v2595_v39, %v2609_v0  ;;  %4933 = vmatprep.subr.bf16.mxu1 %v5132_v40  ;;  %v2954_v10 = vsel %vm5887_vm12, %v4412_v4, %v2953_v8  ;;  %v2957_v19 = vrot.slane %v2912_v53, 5  ;;  %v2961_v14 = vrot.slane %v2914_v45, 5 }
 0x1f2   : > { %v4417_v6 = vcombine.low %v2950_v5, %v2954_v10 }
 0x1f3   : > { %3782 = vmatmul.mubr.bf16.gmra.mrb[60].mxu1 %v4386_v2  ;;  %v2958_v15 = vsel %vm5887_vm12, %v4413_v24, %v2957_v19  ;;  %v2962_v17 = vsel %vm5887_vm12, %v4414_v43, %v2961_v14 }
 0x1f4   : > { %4935 = vmatprep.mubr.bf16.mxu1 %v4415_v22  ;;  %4934 = vmatpush3.bf16.msra.mxu1 %v5132_v40  ;;  %v4418_v55 = vcombine.low %v2958_v15, %v2962_v17 }
 0x1fb   : > { %4936 = vmatmul.mubr.bf16.vlgmr.msra.gmra.mrb[64].mxu1 %v4416_v7 }
 0x1fc   : > { %4939 = vmatprep.mubr.bf16.mxu1 %v4417_v6 }
 0x203   : > { %4940 = vmatmul.mubr.bf16.gmra.mrb[68].mxu1 %v4418_v55 }
 0x278   : > { %v4779_v20 = vpop.f32.mrb[40].mxu0 }
 0x279   : > { %v4780_v11 = vpop.f32.mrb[41].mxu0 }
 0x27a   : > { %v4781_v16 = vadd.f32 %v4780_v11, %v4779_v20  ;;  %v4782_v34 = vpop.f32.mrb[42].mxu0 }
 0x27b   : > { %v4783_v25 = vpop.f32.mrb[43].mxu0 }
 0x27c   : > { %v4784_v27 = vadd.f32 %v4783_v25, %v4782_v34 }
 0x281   : > { %v4739_v28 = vpop.f32.mrb[32].mxu1 }
 0x282   : > { %v4740_v12 = vpop.f32.mrb[33].mxu1  ;;  %v4785_v31 = vpop.f32.mrb[44].mxu0 }
 0x283   : > { %v4741_v33 = vadd.f32 %v4740_v12, %v4739_v28  ;;  %v4742_v37 = vpop.f32.mrb[34].mxu1  ;;  %v4786_v32 = vpop.f32.mrb[45].mxu0 }
 0x284   : > { %v4787_v29 = vadd.f32 %v4786_v32, %v4785_v31  ;;  %v4743_v35 = vpop.f32.mrb[35].mxu1  ;;  %v4788_v57 = vpop.f32.mrb[46].mxu0 }
 0x285   : > { %v3695_v44 = vadd.f32 %v4781_v16, %v4741_v33  ;;  %v4744_v41 = vadd.f32 %v4743_v35, %v4742_v37  ;;  %v4789_v46 = vpop.f32.mrb[47].mxu0 }
 0x286   : > { %v4790_v48 = vadd.f32 %v4789_v46, %v4788_v57 }
 0x287   : > { %v3698_v49 = vadd.f32 %v4784_v27, %v4744_v41 }
 0x289   : > { %v4745_v50 = vpop.f32.mrb[36].mxu1 }
 0x28a   : > { %v4746_v38 = vpop.f32.mrb[37].mxu1 }
 0x28b   : > { %v4747_v40 = vadd.f32 %v4746_v38, %v4745_v50  ;;  %v4791_v39 = vpop.f32.mrb[48].mxu0  ;;  %v4748_v52 = vpop.f32.mrb[38].mxu1 }
 0x28c   : > { %v4792_v56 = vpop.f32.mrb[49].mxu0  ;;  %v4749_v59 = vpop.f32.mrb[39].mxu1 }
 0x28d   : > { %v3703_v30 = vadd.f32 %v4787_v29, %v4747_v40  ;;  %v4793_v51 = vadd.f32 %v4792_v56, %v4791_v39  ;;  %v4750_v42 = vadd.f32 %v4749_v59, %v4748_v52  ;;  %v4794_v60 = vpop.f32.mrb[50].mxu0 }
 0x28e   : > { %v4795_v61 = vpop.f32.mrb[51].mxu0 }
 0x28f   : > { %v3706_v58 = vadd.f32 %v4790_v48, %v4750_v42  ;;  %v4796_v0 = vadd.f32 %v4795_v61, %v4794_v60 }
 0x291   : > { %v4751_v47 = vpop.f32.mrb[40].mxu1 }
 0x292   : > { %v4752_v63 = vpop.f32.mrb[41].mxu1 }
 0x293   : > { %v4753_v1 = vadd.f32 %v4752_v63, %v4751_v47  ;;  %v4754_v2 = vpop.f32.mrb[42].mxu1 }
 0x294   : > { %v4755_v18 = vpop.f32.mrb[43].mxu1 }
 0x295   : > { %v6159_v22 = vadd.f32 %v4793_v51, %v4753_v1  ;;  %v4797_v23 = vpop.f32.mrb[52].mxu0  ;;  %v4756_v62 = vadd.f32 %v4755_v18, %v4754_v2 }
 0x296   : > { %v4798_v21 = vpop.f32.mrb[53].mxu0 }
 0x297   : > { %v4799_v36 = vadd.f32 %v4798_v21, %v4797_v23  ;;  %v6161_v3 = vadd.f32 %v4796_v0, %v4756_v62  ;;  %v4800_v4 = vpop.f32.mrb[54].mxu0 }
 0x298   : > { %v4801_v8 = vpop.f32.mrb[55].mxu0 }
 0x299   : > { %v4802_v54 = vadd.f32 %v4801_v8, %v4800_v4  ;;  %v4757_v9 = vpop.f32.mrb[44].mxu1 }
 0x29a   : > { %v4758_v13 = vpop.f32.mrb[45].mxu1 }
 0x29b   : > { %v4759_v5 = vadd.f32 %v4758_v13, %v4757_v9  ;;  %v4760_v10 = vpop.f32.mrb[46].mxu1 }
 0x29c   : > { %v4761_v26 = vpop.f32.mrb[47].mxu1 }
 0x29d   : > { %v3719_v53 = vadd.f32 %v4799_v36, %v4759_v5  ;;  %v4762_v45 = vadd.f32 %v4761_v26, %v4760_v10 }
 0x29f   : > { %v3722_v43 = vadd.f32 %v4802_v54, %v4762_v45 }
 0x2a0   : > { %v4859_v7 = vpop.f32.mrb[56].mxu0 }
 0x2a1   : > { %v4860_v6 = vpop.f32.mrb[57].mxu0 }
 0x2a2   : > { %v4861_v24 = vadd.f32 %v4860_v6, %v4859_v7  ;;  %v4862_v19 = vpop.f32.mrb[58].mxu0 }
 0x2a3   : > { %v4863_v14 = vpop.f32.mrb[59].mxu0 }
 0x2a4   : > { %v4864_v15 = vadd.f32 %v4863_v14, %v4862_v19 }
 0x2a8   : > { %v4865_v17 = vpop.f32.mrb[60].mxu0 }
 0x2a9   : > { %v4866_v55 = vpop.f32.mrb[61].mxu0 }
 0x2aa   : > { %v4819_v20 = vpop.f32.mrb[48].mxu1  ;;  %v4867_v11 = vadd.f32 %v4866_v55, %v4865_v17  ;;  %v4868_v16 = vpop.f32.mrb[62].mxu0 }
 0x2ab   : > { %v4820_v34 = vpop.f32.mrb[49].mxu1  ;;  %v4869_v25 = vpop.f32.mrb[63].mxu0 }
 0x2ac   : > { %v4821_v27 = vadd.f32 %v4820_v34, %v4819_v20  ;;  %v4822_v28 = vpop.f32.mrb[50].mxu1  ;;  %v4870_v12 = vadd.f32 %v4869_v25, %v4868_v16 }
 0x2ad   : > { %v4823_v31 = vpop.f32.mrb[51].mxu1 }
 0x2ae   : > { %v3760_v33 = vadd.f32 %v4821_v27, %v3695_v44  ;;  %v4824_v37 = vadd.f32 %v4823_v31, %v4822_v28 }
 0x2b0   : > { %v3763_v32 = vadd.f32 %v4824_v37, %v3698_v49  ;;  %v3825_v29 = vadd.f32 %v4861_v24, %v3760_v33 }
 0x2b2   : > { %v3828_v35 = vadd.f32 %v4864_v15, %v3763_v32 }
 0x2b3   : > { %v4871_v57 = vpop.f32.mrb[64].mxu0 }
 0x2b4   : > { %v4872_v41 = vpop.f32.mrb[65].mxu0 }
 0x2b5   : > { %v4825_v46 = vpop.f32.mrb[52].mxu1  ;;  %v4873_v48 = vadd.f32 %v4872_v41, %v4871_v57  ;;  %v4874_v50 = vpop.f32.mrb[66].mxu0 }
 0x2b6   : > { %v4826_v38 = vpop.f32.mrb[53].mxu1  ;;  %v4875_v40 = vpop.f32.mrb[67].mxu0 }
 0x2b7   : > { %v4827_v39 = vadd.f32 %v4826_v38, %v4825_v46  ;;  %v4828_v52 = vpop.f32.mrb[54].mxu1  ;;  %v4876_v56 = vadd.f32 %v4875_v40, %v4874_v50 }
 0x2b8   : > { %v4829_v59 = vpop.f32.mrb[55].mxu1 }
 0x2b9   : > { %v3768_v51 = vadd.f32 %v4827_v39, %v3703_v30  ;;  %v4830_v42 = vadd.f32 %v4829_v59, %v4828_v52 }
 0x2bb   : > { %v3771_v60 = vadd.f32 %v4830_v42, %v3706_v58  ;;  %v4877_v61 = vpop.f32.mrb[68].mxu0  ;;  %v3833_v44 = vadd.f32 %v4867_v11, %v3768_v51 }
 0x2bc   : > { %v4878_v0 = vpop.f32.mrb[69].mxu0 }
 0x2bd   : > { %v4879_v49 = vadd.f32 %v4878_v0, %v4877_v61  ;;  %v4880_v47 = vpop.f32.mrb[70].mxu0  ;;  %v3836_v63 = vadd.f32 %v4870_v12, %v3771_v60 }
 0x2be   : > { %v4831_v1 = vpop.f32.mrb[56].mxu1  ;;  %v4881_v2 = vpop.f32.mrb[71].mxu0 }
 0x2bf   : > { %v4832_v18 = vpop.f32.mrb[57].mxu1  ;;  %v4882_v23 = vadd.f32 %v4881_v2, %v4880_v47 }
 0x2c0   : > { %v4833_v62 = vadd.f32 %v4832_v18, %v4831_v1  ;;  %v4834_v21 = vpop.f32.mrb[58].mxu1 }
 0x2c1   : > { %v4835_v36 = vpop.f32.mrb[59].mxu1 }
 0x2c2   : > { %v3776_v4 = vadd.f32 %v4833_v62, %v6159_v22  ;;  %v4836_v8 = vadd.f32 %v4835_v36, %v4834_v21 }
 0x2c4   : > { %v3779_v30 = vadd.f32 %v4836_v8, %v6161_v3  ;;  %v3841_v54 = vadd.f32 %v4873_v48, %v3776_v4 }
 0x2c6   : > { %v4837_v58 = vpop.f32.mrb[60].mxu1  ;;  %v3844_v9 = vadd.f32 %v4876_v56, %v3779_v30 }
 0x2c7   : > { %v4838_v13 = vpop.f32.mrb[61].mxu1 }
 0x2c8   : > { %v4839_v5 = vadd.f32 %v4838_v13, %v4837_v58  ;;  %v4840_v10 = vpop.f32.mrb[62].mxu1 }
 0x2c9   : > { %v4841_v26 = vpop.f32.mrb[63].mxu1 }
 0x2ca   : > { %v3784_v45 = vadd.f32 %v4839_v5, %v3719_v53  ;;  %v4842_v7 = vadd.f32 %v4841_v26, %v4840_v10 }
 0x2cc   : > { %v3787_v6 = vadd.f32 %v4842_v7, %v3722_v43  ;;  %v3849_v24 = vadd.f32 %v4879_v49, %v3784_v45 }
 0x2ce   : > { %v4937_v19 = vpop.f32.mrb[64].mxu1  ;;  %v3852_v14 = vadd.f32 %v4882_v23, %v3787_v6 }
 0x2cf   : > { %v6165_v15 = vadd.f32 %v4937_v19, %v3833_v44  ;;  %v3889_v17 = vpop.f32.mrb[65].mxu1 }
 0x2d0   : > { %v6167_v22 = vadd.f32 %v3889_v17, %v3825_v29  ;;  %v4938_v55 = vpop.f32.mrb[66].mxu1 }
 0x2d1   : > { %v6169_v3 = vadd.f32 %v4938_v55, %v3836_v63  ;;  %v3892_v20 = vpop.f32.mrb[67].mxu1  ;;  %v3938_v43 = vmul.f32 %v6165_v15, %v6165_v15 }
 0x2d2   : > { %v3893_v11 = vadd.f32 %v3892_v20, %v3828_v35  ;;  %v3936_v16 = vmul.f32 %v6167_v22, %v6167_v22 }
 0x2d3   : > { %v3939_v33 = vmul.f32 %v6169_v3, %v6169_v3 }
 0x2d4   : > { %v3922_v53 = vadd.f32 %v3893_v11, %v6167_v22  ;;  %v3937_v34 = vmul.f32 %v3893_v11, %v3893_v11 }
 0x2d6   : > { %v3923_v25 = vadd.f32 %v3922_v53, %v6165_v15  ;;  %v3944_v27 = vadd.f32 %v3937_v34, %v3936_v16  ;;  %v4941_v28 = vpop.f32.mrb[68].mxu1 }
 0x2d7   : > { %v3914_v12 = vadd.f32 %v4941_v28, %v3849_v24  ;;  %v3905_v31 = vpop.f32.mrb[69].mxu1 }
 0x2d8   : > { %v3945_v37 = vadd.f32 %v3944_v27, %v3938_v43  ;;  %v3906_v32 = vadd.f32 %v3905_v31, %v3841_v54  ;;  %v3924_v29 = vadd.f32 %v3923_v25, %v6169_v3  ;;  %v4942_v35 = vpop.f32.mrb[70].mxu1 }
 0x2d9   : > { %v3917_v57 = vadd.f32 %v4942_v35, %v3852_v14  ;;  %v3908_v41 = vpop.f32.mrb[71].mxu1  ;;  %v3942_v56 = vmul.f32 %v3914_v12, %v3914_v12  ;;  %v4491_v14 = vld [vmem:[%s6199_s3 + $0x2] ss:$0 sm:$0xff] }
 0x2da   : > { %v3925_v46 = vadd.f32 %v3924_v29, %v3906_v32  ;;  %v3940_v48 = vmul.f32 %v3906_v32, %v3906_v32  ;;  %v3946_v50 = vadd.f32 %v3945_v37, %v3939_v33  ;;  %v3909_v38 = vadd.f32 %v3908_v41, %v3844_v9 }
 0x2db   : > { %v3943_v42 = vmul.f32 %v3917_v57, %v3917_v57 }
 0x2dc   : > { %v3947_v40 = vadd.f32 %v3946_v50, %v3940_v48  ;;  %v3926_v39 = vadd.f32 %v3925_v46, %v3909_v38  ;;  %v3941_v52 = vmul.f32 %v3909_v38, %v3909_v38 }
 0x2de   : > { %v3927_v59 = vadd.f32 %v3926_v39, %v3914_v12  ;;  %v3948_v51 = vadd.f32 %v3947_v40, %v3941_v52 }
 0x2e0   : > { %v3928_v60 = vadd.f32 %v3927_v59, %v3917_v57  ;;  %v3949_v61 = vadd.f32 %v3948_v51, %v3942_v56 }
 0x2e2   : > { %v3929_v44 = vrot.slane %v3928_v60, 4  ;;  %v3950_v0 = vadd.f32 %v3949_v61, %v3943_v42 }
 0x2e4   : > { %v3930_v49 = vadd.f32 %v3929_v44, %v3928_v60  ;;  %v3951_v47 = vrot.slane %v3950_v0, 4 }
 0x2e6   : > { %v3931_v63 = vrot.slane %v3930_v49, 2  ;;  %v3952_v1 = vadd.f32 %v3951_v47, %v3950_v0 }
 0x2e8   : > { %v3932_v2 = vadd.f32 %v3931_v63, %v3930_v49  ;;  %v3953_v18 = vrot.slane %v3952_v1, 2 }
 0x2ea   : > { %v3933_v23 = vrot.slane %v3932_v2, 1  ;;  %v3954_v62 = vadd.f32 %v3953_v18, %v3952_v1 }
 0x2ec   : > { %v3934_v21 = vadd.f32 %v3933_v23, %v3932_v2  ;;  %v3955_v36 = vrot.slane %v3954_v62, 1 }
 0x2ee   : > { %v3935_v4 = vmul.f32 0.015625, %v3934_v21  ;;  %v3956_v8 = vadd.f32 %v3955_v36, %v3954_v62 }
 0x2f0   : > { %v3957_v30 = vmul.f32 0.015625, %v3956_v8  ;;  %v3958_v54 = vmul.f32 %v3935_v4, %v3935_v4  ;;  %v3960_v58 = vsub.f32 %v6167_v22, %v3935_v4  ;;  %v3961_v9 = vsub.f32 %v3893_v11, %v3935_v4 }
 0x2f1   : > { %v3962_v13 = vsub.f32 %v6165_v15, %v3935_v4  ;;  %v3963_v5 = vsub.f32 %v6169_v3, %v3935_v4  ;;  %v3964_v10 = vsub.f32 %v3906_v32, %v3935_v4  ;;  %v3965_v26 = vsub.f32 %v3909_v38, %v3935_v4  ;;  %v4492_v15 = vld [vmem:[%s6199_s3 + $0x3] ss:$0 sm:$0xff] }
 0x2f2   : > { %v3959_v45 = vsub.f32 %v3957_v30, %v3958_v54  ;;  %v3966_v7 = vsub.f32 %v3914_v12, %v3935_v4  ;;  %v3967_v6 = vsub.f32 %v3917_v57, %v3935_v4 }
 0x2f4   : > { %v3968_v24 = vadd.f32 1e-05, %v3959_v45 }
 0x2f6   : > { %5167 = vrsqrt.f32 %v3968_v24 }
 0x300   : > { %v5168_v19 = vpop.eup %5167 }
 0x301   : > { %v3970_v17 = vmul.f32 %v5168_v19, %v3960_v58  ;;  %v3971_v55 = vmul.f32 %v5168_v19, %v3961_v9  ;;  %v3972_v22 = vmul.f32 %v5168_v19, %v3962_v13  ;;  %v3973_v20 = vmul.f32 %v5168_v19, %v3963_v5 }
 0x302   : > { %v3974_v3 = vmul.f32 %v5168_v19, %v3964_v10  ;;  %v3975_v11 = vmul.f32 %v5168_v19, %v3965_v26  ;;  %v3976_v16 = vmul.f32 %v5168_v19, %v3966_v7  ;;  %v3977_v53 = vmul.f32 %v5168_v19, %v3967_v6 }
 0x303   : > { %v3982_v34 = vmul.f32 %v4491_v14, %v3970_v17  ;;  %v3983_v43 = vmul.f32 %v4491_v14, %v3971_v55  ;;  %v3984_v25 = vmul.f32 %v4491_v14, %v3972_v22  ;;  %v3985_v27 = vmul.f32 %v4491_v14, %v3973_v20 }
 0x304   : > { %v3986_v28 = vmul.f32 %v4491_v14, %v3974_v3  ;;  %v3987_v12 = vmul.f32 %v4491_v14, %v3975_v11  ;;  %v3988_v31 = vmul.f32 %v4491_v14, %v3976_v16  ;;  %v3989_v33 = vmul.f32 %v4491_v14, %v3977_v53 }
 0x305   : > { %v3994_v37 = vadd.f32 %v4492_v15, %v3982_v34  ;;  %v3995_v32 = vadd.f32 %v4492_v15, %v3983_v43  ;;  %v3996_v29 = vadd.f32 %v4492_v15, %v3984_v25  ;;  %v3997_v35 = vadd.f32 %v4492_v15, %v3985_v27 }
 0x306   : > { %v3998_v57 = vadd.f32 %v4492_v15, %v3986_v28  ;;  %v3999_v41 = vadd.f32 %v4492_v15, %v3987_v12  ;;  %v4000_v46 = vadd.f32 %v4492_v15, %v3988_v31  ;;  %v4001_v40 = vadd.f32 %v4492_v15, %v3989_v33 }
 0x307   : > { %v4493_v48 = vmul.f32 -1.442695, %v3994_v37  ;;  %v4494_v50 = vmul.f32 -1.442695, %v3995_v32  ;;  %v4495_v38 = vmul.f32 -1.442695, %v3996_v29 }
 0x308   : > { %v4496_v39 = vmul.f32 -1.442695, %v3997_v35  ;;  %v4497_v52 = vmul.f32 -1.442695, %v3998_v57  ;;  %v4498_v56 = vmul.f32 -1.442695, %v3999_v41 }
 0x309   : > { %5169 = vpow2.f32 %v4493_v48  ;;  %v4499_v59 = vmul.f32 -1.442695, %v4000_v46  ;;  %v4500_v51 = vmul.f32 -1.442695, %v4001_v40 }
 0x30a   : > { %5171 = vpow2.f32 %v4494_v50 }
 0x30b   : > { %5173 = vpow2.f32 %v4495_v38 }
 0x30c   : > { %5175 = vpow2.f32 %v4496_v39 }
 0x30d   : > { %5177 = vpow2.f32 %v4497_v52 }
 0x30e   : > { %5179 = vpow2.f32 %v4498_v56 }
 0x30f   : > { %5181 = vpow2.f32 %v4499_v59 }
 0x310   : > { %5183 = vpow2.f32 %v4500_v51 }
 0x313   : > { %v5170_v42 = vpop.eup %5169 }
 0x314   : > { %v5172_v60 = vpop.eup %5171  ;;  %v4026_v61 = vadd.f32 1.0, %v5170_v42 }
 0x315   : > { %v5174_v44 = vpop.eup %5173  ;;  %v4027_v0 = vadd.f32 1.0, %v5172_v60 }
 0x316   : > { %v5176_v49 = vpop.eup %5175  ;;  %v4028_v47 = vadd.f32 1.0, %v5174_v44  ;;  %5185 = vrcp.f32 %v4026_v61 }
 0x317   : > { %v5178_v63 = vpop.eup %5177  ;;  %v4029_v1 = vadd.f32 1.0, %v5176_v49  ;;  %5187 = vrcp.f32 %v4027_v0 }
 0x318   : > { %v5180_v2 = vpop.eup %5179  ;;  %v4030_v18 = vadd.f32 1.0, %v5178_v63  ;;  %5189 = vrcp.f32 %v4028_v47 }
 0x319   : > { %v5182_v23 = vpop.eup %5181  ;;  %v4031_v62 = vadd.f32 1.0, %v5180_v2  ;;  %5191 = vrcp.f32 %v4029_v1 }
 0x31a   : > { %v5184_v21 = vpop.eup %5183  ;;  %v4032_v36 = vadd.f32 1.0, %v5182_v23  ;;  %5193 = vrcp.f32 %v4030_v18 }
 0x31b   : > { %v4033_v4 = vadd.f32 1.0, %v5184_v21  ;;  %5195 = vrcp.f32 %v4031_v62 }
 0x31c   : > { %5197 = vrcp.f32 %v4032_v36 }
 0x31d   : > { %5199 = vrcp.f32 %v4033_v4 }
 0x320   : > { %v5186_v8 = vpop.eup %5185 }
 0x321   : > { %v5188_v30 = vpop.eup %5187  ;;  %v4050_v54 = vmul.f32 %v5186_v8, %v3994_v37 }
 0x322   : > { %v5190_v58 = vpop.eup %5189  ;;  %v4051_v9 = vmul.f32 %v5188_v30, %v3995_v32 }
 0x323   : > { %v5192_v13 = vpop.eup %5191  ;;  %v4052_v5 = vmul.f32 %v5190_v58, %v3996_v29 }
 0x324   : > { %v5194_v10 = vpop.eup %5193  ;;  %v4053_v26 = vmul.f32 %v5192_v13, %v3997_v35  ;;  %v4531_v45 = vpack.c.bf16 %v4051_v9, %v4050_v54 }
 0x325   : > { %v5196_v7 = vpop.eup %5195  ;;  %v4054_v6 = vmul.f32 %v5194_v10, %v3998_v57 }
 0x326   : > { %v5198_v24 = vpop.eup %5197  ;;  %v4055_v19 = vmul.f32 %v5196_v7, %v3999_v41  ;;  %4532 = vst [vmem:[%s197_s8] sm:$0xff] %v4531_v45   ;;  %v4536_v14 = vpack.c.bf16 %v4053_v26, %v4052_v5 }
 0x327   : > { %v5200_v17 = vpop.eup %5199  ;;  %v4056_v55 = vmul.f32 %v5198_v24, %v4000_v46 }
 0x328   : > { %v4057_v22 = vmul.f32 %v5200_v17, %v4001_v40  ;;  %4548 = vst [vmem:[%s197_s8 + $0x8] sm:$0xff] %v4536_v14   ;;  %v4541_v20 = vpack.c.bf16 %v4055_v19, %v4054_v6 }
 0x32a   : > { %4549 = vst [vmem:[%s197_s8 + $0x10] sm:$0xff] %v4541_v20   ;;  %v4546_v15 = vpack.c.bf16 %v4057_v22, %v4056_v55 }
 0x32c   : > { %4550 = vst [vmem:[%s197_s8 + $0x18] sm:$0xff] %v4546_v15  }
 0x32d PF: > { %s14_s15 = sadd.s32 1, %s5207_s15  }
 0x32e   : > { %p11_p4 = scmp.ge.s32.totalorder %s14_s15, 4  }
 0x330   :  { %13 = sbr.rel (!%p11_p4) target bundleno = 1 (0x1), region = 74 }

</bundles_post_ra>
